<compile_context>
chip_gen: v5e
topology: v5e:2x2
jax: 0.10.0
libtpu: 0.0.40
codegen_flags: <defaults>
</compile_context>

<pallas_src>
import functools
import math

import jax
import jax.numpy as jnp
from jax import lax
from jax.experimental import pallas as pl
from jax.experimental.pallas import tpu as pltpu

VOCAB_SIZE = 50257          # class attribute of the PyTorch module
MAX_SEQ_LEN = 1024
LN_EPS = 1e-5               # nn.LayerNorm default
HEAD_DIM = 64               # GPT-2 convention: n_heads = d_model // 64
_MB = 1024 * 1024


def _chip_config():
    """Per-TPU-generation tile sizes / scoped-VMEM limit."""
    try:
        kind = jax.devices()[0].device_kind.lower()
    except Exception:
        kind = ""
    if ("v5" in kind) or ("v6" in kind):
        # 128 MiB physical VMEM: large row tiles, generous scoped limit.
        return dict(vmem=100 * _MB, row=512, tq=256, tk=512, tm_l=512, tv=2048)
    # v7x (64 MiB VMEM) or unknown: conservative tiles.
    return dict(vmem=48 * _MB, row=256, tq=128, tk=256, tm_l=512, tv=2048)


def _pick(n, pref):
    """Full extent at small shapes, otherwise the preferred (dividing) tile."""
    if n <= pref:
        return n
    assert n % pref == 0, (n, pref)
    return pref


# ----------------------------- in-kernel helpers -----------------------------

def _layernorm(x, w, b):
    x = x.astype(jnp.float32)
    mu = jnp.mean(x, axis=-1, keepdims=True)
    var = jnp.mean(jnp.square(x - mu), axis=-1, keepdims=True)
    return (x - mu) * lax.rsqrt(var + LN_EPS) * w + b


def _gelu_tanh(x):
    # matches nn.GELU(approximate='tanh')  ('approximate_gelu')
    return 0.5 * x * (1.0 + jnp.tanh(0.7978845608028654 * (x + 0.044715 * x * x * x)))


# --------------- kernel 1: LN1 + QKV proj -> head-major q/k/v ----------------

def _qkv_kernel(d_model, n_heads, x_ref, lnw, lnb, wqkv, bqkv,
                q_ref, k_ref, v_ref):
    D, H = d_model, n_heads
    Dh = D // H
    tr = x_ref.shape[0]
    xn = _layernorm(x_ref[...], lnw[...], lnb[...])
    qkv = jnp.dot(xn.astype(jnp.bfloat16), wqkv[...],
                  preferred_element_type=jnp.float32) + bqkv[...]

    def head_major(lo):
        h = qkv[:, lo:lo + D].reshape(tr, H, Dh)
        return jnp.swapaxes(h, 0, 1).astype(jnp.bfloat16)     # (H, tr, Dh)

    q_ref[...] = head_major(0)
    k_ref[...] = head_major(D)
    v_ref[...] = head_major(2 * D)


def make_qkv_call(B, S, D, H, tr, vmem):
    Dh = D // H
    xspec = pl.BlockSpec((None, tr, D), lambda b, i: (b, i, 0))
    hspec = pl.BlockSpec((None, H, tr, Dh), lambda b, i: (b, 0, i, 0))
    full = lambda shape: pl.BlockSpec(shape, lambda b, i: (0,) * len(shape))
    return pl.pallas_call(
        functools.partial(_qkv_kernel, D, H),
        grid=(B, S // tr),
        in_specs=[xspec, full((1, D)), full((1, D)),
                  full((D, 3 * D)), full((1, 3 * D))],
        out_specs=(hspec, hspec, hspec),
        out_shape=(jax.ShapeDtypeStruct((B, H, S, Dh), jnp.bfloat16),) * 3,
        compiler_params=pltpu.CompilerParams(
            dimension_semantics=("parallel", "parallel"),
            vmem_limit_bytes=vmem),
    )


# ---------- kernel 2: blocked-KV causal attention (online softmax) ------------

def _attn_kernel(tq, tk, q_ref, k_ref, v_ref, o_ref, m_sc, l_sc, acc_sc):
    H, _, Dh = q_ref.shape
    qi = pl.program_id(1)
    ki = pl.program_id(2)
    scale = 1.0 / math.sqrt(Dh)

    @pl.when(ki == 0)
    def _():
        m_sc[...] = jnp.full_like(m_sc, -jnp.inf)
        l_sc[...] = jnp.zeros_like(l_sc)
        acc_sc[...] = jnp.zeros_like(acc_sc)

    # Causal block skip: only touch KV blocks that overlap the visible range.
    @pl.when(ki * tk < (qi + 1) * tq)
    def _():
        s = jnp.einsum('hqd,hkd->hqk', q_ref[...], k_ref[...],
                       preferred_element_type=jnp.float32) * scale   # (H,tq,tk)
        row = lax.broadcasted_iota(jnp.int32, (tq, tk), 0) + qi * tq
        col = lax.broadcasted_iota(jnp.int32, (tq, tk), 1) + ki * tk
        s = jnp.where((col > row)[None, :, :], -1e30, s)

        m_new = jnp.maximum(m_sc[...], jnp.max(s, axis=-1, keepdims=True))
        alpha = jnp.exp(m_sc[...] - m_new)
        p = jnp.exp(s - m_new)
        l_sc[...] = alpha * l_sc[...] + jnp.sum(p, axis=-1, keepdims=True)
        acc_sc[...] = alpha * acc_sc[...] + jnp.einsum(
            'hqk,hkd->hqd', p.astype(jnp.bfloat16), v_ref[...],
            preferred_element_type=jnp.float32)
        m_sc[...] = m_new

    @pl.when(ki == pl.num_programs(2) - 1)
    def _():
        # Deferred normalization: normalize the (H, tq, Dh) accumulator.
        ctx = acc_sc[...] * pl.reciprocal(l_sc[...], approx=False)
        ctx = jnp.swapaxes(ctx, 0, 1).reshape(tq, H * Dh)
        o_ref[...] = ctx.astype(jnp.bfloat16)


def make_attn_call(B, S, D, H, tq, tk, vmem):
    Dh = D // H
    qspec = pl.BlockSpec((None, H, tq, Dh), lambda b, qi, ki: (b, 0, qi, 0))
    kvspec = pl.BlockSpec((None, H, tk, Dh), lambda b, qi, ki: (b, 0, ki, 0))
    ospec = pl.BlockSpec((None, tq, D), lambda b, qi, ki: (b, qi, 0))
    return pl.pallas_call(
        functools.partial(_attn_kernel, tq, tk),
        grid=(B, S // tq, S // tk),
        in_specs=[qspec, kvspec, kvspec],
        out_specs=ospec,
        out_shape=jax.ShapeDtypeStruct((B, S, D), jnp.bfloat16),
        scratch_shapes=[pltpu.VMEM((H, tq, 1), jnp.float32),
                        pltpu.VMEM((H, tq, 1), jnp.float32),
                        pltpu.VMEM((H, tq, Dh), jnp.float32)],
        compiler_params=pltpu.CompilerParams(
            dimension_semantics=("parallel", "parallel", "arbitrary"),
            vmem_limit_bytes=vmem),
    )


# ------- kernel 3: out-proj + residual + LN2 + MLP (tanh GELU) + residual -----

def _post_attn_mlp_kernel(x_ref, ctx_ref, wo, bo, lnw, lnb, w1, b1, w2, b2,
                          o_ref):
    x = x_ref[...]
    attn_out = jnp.dot(ctx_ref[...], wo[...],
                       preferred_element_type=jnp.float32) + bo[...]
    h = x + attn_out                                     # residual after attn
    hn = _layernorm(h, lnw[...], lnb[...])
    u = jnp.dot(hn.astype(jnp.bfloat16), w1[...],
                preferred_element_type=jnp.float32) + b1[...]
    u = _gelu_tanh(u)
    m = jnp.dot(u.astype(jnp.bfloat16), w2[...],
                preferred_element_type=jnp.float32) + b2[...]
    o_ref[...] = h + m                                   # residual after MLP


def make_post_attn_mlp_call(M, D, d_ff, tm, vmem):
    # TODO(synk): for d_model >= 1280 on v7x, stream w1/w2 over a d_ff grid
    # axis (P3 accumulator) instead of holding both full weights in VMEM.
    row = pl.BlockSpec((tm, D), lambda i: (i, 0))
    full = lambda shape: pl.BlockSpec(shape, lambda i: (0,) * len(shape))
    return pl.pallas_call(
        _post_attn_mlp_kernel,
        grid=(M // tm,),
        in_specs=[row, row,
                  full((D, D)), full((1, D)),
                  full((1, D)), full((1, D)),
                  full((D, d_ff)), full((1, d_ff)),
                  full((d_ff, D)), full((1, D))],
        out_specs=pl.BlockSpec((tm, D), lambda i: (i, 0)),
        out_shape=jax.ShapeDtypeStruct((M, D), jnp.float32),
        compiler_params=pltpu.CompilerParams(
            dimension_semantics=("parallel",),
            vmem_limit_bytes=vmem),
    )


# -------------------- kernel 4: fused final-LN + tied logits ------------------

def _logits_kernel(x_ref, lnw, lnb, wt_ref, o_ref, xn_sc):
    # Final LN computed once per row tile (v == 0), cached in bf16 VMEM scratch.
    @pl.when(pl.program_id(1) == 0)
    def _():
        xn_sc[...] = _layernorm(x_ref[...], lnw[...], lnb[...]).astype(jnp.bfloat16)
    # wte is pre-transposed to (D, Vp) in HBM -> plain MXU matmul, no per-tile
    # transpose of the vocab block.
    o_ref[...] = jnp.dot(xn_sc[...], wt_ref[...],
                         preferred_element_type=jnp.float32)


def make_logits_call(M, D, Vp, tm, tv, vmem):
    return pl.pallas_call(
        _logits_kernel,
        grid=(M // tm, Vp // tv),
        in_specs=[pl.BlockSpec((tm, D), lambda m, v: (m, 0)),
                  pl.BlockSpec((1, D), lambda m, v: (0, 0)),
                  pl.BlockSpec((1, D), lambda m, v: (0, 0)),
                  pl.BlockSpec((D, tv), lambda m, v: (0, v))],
        out_specs=pl.BlockSpec((tm, tv), lambda m, v: (m, v)),
        out_shape=jax.ShapeDtypeStruct((M, Vp), jnp.float32),
        scratch_shapes=[pltpu.VMEM((tm, D), jnp.bfloat16)],
        compiler_params=pltpu.CompilerParams(
            dimension_semantics=("parallel", "arbitrary"),
            vmem_limit_bytes=vmem),
    )


# --------------------------------- parameters ---------------------------------

def init_params(key, n_layers, d_model, vocab_pad):
    d_ff = 4 * d_model
    keys = jax.random.split(key, n_layers + 1)

    wte = jax.random.normal(keys[0], (VOCAB_SIZE, d_model), jnp.float32) * 0.02
    wte = jnp.concatenate(
        [wte, jnp.zeros((vocab_pad - VOCAB_SIZE, d_model), jnp.float32)], axis=0)
    wte_bf16 = wte.astype(jnp.bfloat16)

    params = {
        'wte': wte_bf16,                                  # (Vp, D) for gather
        'wte_T': wte_bf16.T,                              # (D, Vp) for logits
        # matches the module's torch.zeros init for pos_embs
        'wpe': jnp.zeros((MAX_SEQ_LEN, d_model), jnp.float32),
        'ln_f_w': jnp.ones((1, d_model), jnp.float32),
        'ln_f_b': jnp.zeros((1, d_model), jnp.float32),
        'layers': [],
    }

    def lin(k, fan_in, fan_out):
        return (jax.random.normal(k, (fan_in, fan_out), jnp.float32)
                * 0.02).astype(jnp.bfloat16)

    for li in range(n_layers):
        sk = jax.random.split(keys[li + 1], 6)
        wq = lin(sk[0], d_model, d_model)
        wk = lin(sk[1], d_model, d_model)
        wv = lin(sk[2], d_model, d_model)
        params['layers'].append({
            'ln1_w': jnp.ones((1, d_model), jnp.float32),
            'ln1_b': jnp.zeros((1, d_model), jnp.float32),
            'wqkv': jnp.concatenate([wq, wk, wv], axis=1),    # (D, 3D) bf16
            'bqkv': jnp.zeros((1, 3 * d_model), jnp.float32),
            'wo': lin(sk[3], d_model, d_model),
            'bo': jnp.zeros((1, d_model), jnp.float32),
            'ln2_w': jnp.ones((1, d_model), jnp.float32),
            'ln2_b': jnp.zeros((1, d_model), jnp.float32),
            'w1': lin(sk[4], d_model, d_ff),
            'b1': jnp.zeros((1, d_ff), jnp.float32),
            'w2': lin(sk[5], d_ff, d_model),
            'b2': jnp.zeros((1, d_model), jnp.float32),
        })
    return params


# ---------------------------------- forward -----------------------------------

def gpt2_forward(params, ids, n_heads, cfg):
    B, S = ids.shape
    D = params['wte'].shape[1]
    Vp = params['wte_T'].shape[1]
    M = B * S
    d_ff = 4 * D

    tr = _pick(S, cfg['row'])       # seq rows per QKV step
    tq = _pick(S, cfg['tq'])        # attention q tile
    tk = _pick(S, cfg['tk'])        # attention kv tile
    tm = _pick(M, cfg['row'])       # rows per out-proj/MLP step
    tm_l = _pick(M, cfg['tm_l'])    # rows per logits step
    tv = cfg['tv']
    assert Vp % tv == 0

    # embedding gather + positional add (glue); residual stream stays f32
    x = jnp.take(params['wte'], ids, axis=0).astype(jnp.float32) + params['wpe'][:S]

    qkv_call = make_qkv_call(B, S, D, n_heads, tr, cfg['vmem'])
    attn_call = make_attn_call(B, S, D, n_heads, tq, tk, cfg['vmem'])
    mlp_call = make_post_attn_mlp_call(M, D, d_ff, tm, cfg['vmem'])
    logits_call = make_logits_call(M, D, Vp, tm_l, tv, cfg['vmem'])

    for lp in params['layers']:
        q, k, v = qkv_call(x, lp['ln1_w'], lp['ln1_b'], lp['wqkv'], lp['bqkv'])
        ctx = attn_call(q, k, v)                       # (B, S, D) bf16
        x = mlp_call(x.reshape(M, D), ctx.reshape(M, D),
                     lp['wo'], lp['bo'], lp['ln2_w'], lp['ln2_b'],
                     lp['w1'], lp['b1'], lp['w2'], lp['b2']).reshape(B, S, D)

    logits = logits_call(x.reshape(M, D), params['ln_f_w'], params['ln_f_b'],
                         params['wte_T'])

    # TODO(synk): the vocab-pad slice below copies a full (M, 50257) array; for
    # production, return padded logits (or pad only to 50304) to avoid it.
    return logits[:, :VOCAB_SIZE].reshape(B, S, VOCAB_SIZE)


# ------------------------------------ main -------------------------------------

if __name__ == "__main__":
    n_layers = 2
    d_model = 128
    n_heads = d_model // HEAD_DIM     # GPT-2 convention -> 2 heads
    B, S = 2, 8

    cfg = _chip_config()
    vocab_pad = ((VOCAB_SIZE + cfg['tv'] - 1) // cfg['tv']) * cfg['tv']

    key = jax.random.PRNGKey(0)
    pkey, ikey = jax.random.split(key)
    params = init_params(pkey, n_layers, d_model, vocab_pad)
    ids = jax.random.randint(ikey, (B, S), 0, VOCAB_SIZE, dtype=jnp.int32)

    fwd = jax.jit(functools.partial(gpt2_forward, n_heads=n_heads, cfg=cfg))
    logits = fwd(params, ids)
    jax.block_until_ready(logits)
    assert logits.shape == (B, S, VOCAB_SIZE), logits.shape
    assert logits.dtype == jnp.float32
    print("KERNEL_OK")
</pallas_src>

<mosaic_0001>
module attributes {stable_mosaic.version = 11 : i64} {
  func.func @_qkv_kernel(%arg0: i32, %arg1: i32, %arg2: memref<1x8x128xf32, #tpu.memory_space<vmem>>, %arg3: memref<1x128xf32, #tpu.memory_space<vmem>>, %arg4: memref<1x128xf32, #tpu.memory_space<vmem>>, %arg5: memref<128x384xbf16, #tpu.memory_space<vmem>>, %arg6: memref<1x384xf32, #tpu.memory_space<vmem>>, %arg7: memref<1x2x8x64xbf16, #tpu.memory_space<vmem>>, %arg8: memref<1x2x8x64xbf16, #tpu.memory_space<vmem>>, %arg9: memref<1x2x8x64xbf16, #tpu.memory_space<vmem>>) attributes {dimension_semantics = [#tpu.dimension_semantics<parallel>, #tpu.dimension_semantics<parallel>], iteration_bounds = array<i64: 2, 1>, scalar_prefetch = 0 : i64, scratch_operands = 0 : i64, tpu.core_type = #tpu.core_type<tc>, window_params = [{transform_indices = @transform_0, window_bounds = array<i64: 1, 8, 128>}, {pipeline_mode = #tpu.pipeline_mode<synchronous>, transform_indices = @transform_1, window_bounds = array<i64: 1, 128>}, {pipeline_mode = #tpu.pipeline_mode<synchronous>, transform_indices = @transform_2, window_bounds = array<i64: 1, 128>}, {pipeline_mode = #tpu.pipeline_mode<synchronous>, transform_indices = @transform_3, window_bounds = array<i64: 128, 384>}, {pipeline_mode = #tpu.pipeline_mode<synchronous>, transform_indices = @transform_4, window_bounds = array<i64: 1, 384>}, {transform_indices = @transform_5, window_bounds = array<i64: 1, 2, 8, 64>}, {transform_indices = @transform_6, window_bounds = array<i64: 1, 2, 8, 64>}, {transform_indices = @transform_7, window_bounds = array<i64: 1, 2, 8, 64>}]} {
    %c0 = arith.constant 0 : index
    %c0_0 = arith.constant 0 : index
    %c0_1 = arith.constant 0 : index
    %0 = vector.load %arg2[%c0, %c0_0, %c0_1] : memref<1x8x128xf32, #tpu.memory_space<vmem>>, vector<1x8x128xf32>
    %1 = vector.shape_cast %0 : vector<1x8x128xf32> to vector<8x128xf32>
    %c0_2 = arith.constant 0 : index
    %c0_3 = arith.constant 0 : index
    %2 = vector.load %arg3[%c0_2, %c0_3] : memref<1x128xf32, #tpu.memory_space<vmem>>, vector<1x128xf32>
    %c0_4 = arith.constant 0 : index
    %c0_5 = arith.constant 0 : index
    %3 = vector.load %arg4[%c0_4, %c0_5] : memref<1x128xf32, #tpu.memory_space<vmem>>, vector<1x128xf32>
    %cst = arith.constant dense<0.000000e+00> : vector<8xf32>
    %4 = vector.multi_reduction <add>, %1, %cst [1] : vector<8x128xf32> to vector<8xf32>
    %5 = vector.shape_cast %4 : vector<8xf32> to vector<8x1xf32>
    %cst_6 = arith.constant 1.280000e+02 : f32
    %6 = vector.broadcast %cst_6 : f32 to vector<8x1xf32>
    %7 = arith.divf %5, %6 : vector<8x1xf32>
    %8 = vector.broadcast %7 : vector<8x1xf32> to vector<8x128xf32>
    %9 = arith.subf %1, %8 : vector<8x128xf32>
    %10 = arith.mulf %9, %9 : vector<8x128xf32>
    %cst_7 = arith.constant dense<0.000000e+00> : vector<8xf32>
    %11 = vector.multi_reduction <add>, %10, %cst_7 [1] : vector<8x128xf32> to vector<8xf32>
    %12 = vector.shape_cast %11 : vector<8xf32> to vector<8x1xf32>
    %cst_8 = arith.constant 1.280000e+02 : f32
    %13 = vector.broadcast %cst_8 : f32 to vector<8x1xf32>
    %14 = arith.divf %12, %13 : vector<8x1xf32>
    %15 = vector.broadcast %7 : vector<8x1xf32> to vector<8x128xf32>
    %16 = arith.subf %1, %15 : vector<8x128xf32>
    %cst_9 = arith.constant 9.99999974E-6 : f32
    %17 = vector.broadcast %cst_9 : f32 to vector<8x1xf32>
    %18 = arith.addf %14, %17 : vector<8x1xf32>
    %19 = math.rsqrt %18 : vector<8x1xf32>
    %20 = vector.broadcast %19 : vector<8x1xf32> to vector<8x128xf32>
    %21 = arith.mulf %16, %20 : vector<8x128xf32>
    %22 = vector.broadcast %2 : vector<1x128xf32> to vector<8x128xf32>
    %23 = arith.mulf %21, %22 : vector<8x128xf32>
    %24 = vector.broadcast %3 : vector<1x128xf32> to vector<8x128xf32>
    %25 = arith.addf %23, %24 : vector<8x128xf32>
    %26 = arith.truncf %25 : vector<8x128xf32> to vector<8x128xbf16>
    %c0_10 = arith.constant 0 : index
    %c0_11 = arith.constant 0 : index
    %27 = vector.load %arg5[%c0_10, %c0_11] : memref<128x384xbf16, #tpu.memory_space<vmem>>, vector<128x384xbf16>
    %cst_12 = arith.constant dense<0.000000e+00> : vector<8x384xf32>
    %28 = tpu.matmul %26, %27, %cst_12 {dimension_numbers = #tpu.dot_dimension_numbers<[1], [0], [0], [1], [0, 0, 1, 1], [], []>} : vector<8x128xbf16>, vector<128x384xbf16>, vector<8x384xf32> -> vector<8x384xf32>
    %c0_13 = arith.constant 0 : index
    %c0_14 = arith.constant 0 : index
    %29 = vector.load %arg6[%c0_13, %c0_14] : memref<1x384xf32, #tpu.memory_space<vmem>>, vector<1x384xf32>
    %30 = vector.broadcast %29 : vector<1x384xf32> to vector<8x384xf32>
    %31 = arith.addf %28, %30 : vector<8x384xf32>
    %32 = vector.extract_strided_slice %31 {offsets = [0, 0], sizes = [8, 128], strides = [1, 1]} : vector<8x384xf32> to vector<8x128xf32>
    %33 = vector.shape_cast %32 : vector<8x128xf32> to vector<8x2x64xf32>
    %34 = tpu.transpose %33, [1, 0, 2] : vector<8x2x64xf32> -> vector<2x8x64xf32>
    %35 = arith.truncf %34 : vector<2x8x64xf32> to vector<2x8x64xbf16>
    %c0_15 = arith.constant 0 : index
    %c0_16 = arith.constant 0 : index
    %c0_17 = arith.constant 0 : index
    %c0_18 = arith.constant 0 : index
    %36 = vector.load %arg7[%c0_15, %c0_16, %c0_17, %c0_18] : memref<1x2x8x64xbf16, #tpu.memory_space<vmem>>, vector<1x2x8x64xbf16>
    %37 = vector.shape_cast %36 : vector<1x2x8x64xbf16> to vector<2x8x64xbf16>
    %38 = vector.shape_cast %35 : vector<2x8x64xbf16> to vector<1x2x8x64xbf16>
    tpu.vector_store %arg7[%c0_15, %c0_16, %c0_17, %c0_18], %38 {strides = array<i32>} : memref<1x2x8x64xbf16, #tpu.memory_space<vmem>>, vector<1x2x8x64xbf16>,
    %39 = vector.extract_strided_slice %31 {offsets = [0, 128], sizes = [8, 128], strides = [1, 1]} : vector<8x384xf32> to vector<8x128xf32>
    %40 = vector.shape_cast %39 : vector<8x128xf32> to vector<8x2x64xf32>
    %41 = tpu.transpose %40, [1, 0, 2] : vector<8x2x64xf32> -> vector<2x8x64xf32>
    %42 = arith.truncf %41 : vector<2x8x64xf32> to vector<2x8x64xbf16>
    %c0_19 = arith.constant 0 : index
    %c0_20 = arith.constant 0 : index
    %c0_21 = arith.constant 0 : index
    %c0_22 = arith.constant 0 : index
    %43 = vector.load %arg8[%c0_19, %c0_20, %c0_21, %c0_22] : memref<1x2x8x64xbf16, #tpu.memory_space<vmem>>, vector<1x2x8x64xbf16>
    %44 = vector.shape_cast %43 : vector<1x2x8x64xbf16> to vector<2x8x64xbf16>
    %45 = vector.shape_cast %42 : vector<2x8x64xbf16> to vector<1x2x8x64xbf16>
    tpu.vector_store %arg8[%c0_19, %c0_20, %c0_21, %c0_22], %45 {strides = array<i32>} : memref<1x2x8x64xbf16, #tpu.memory_space<vmem>>, vector<1x2x8x64xbf16>,
    %46 = vector.extract_strided_slice %31 {offsets = [0, 256], sizes = [8, 128], strides = [1, 1]} : vector<8x384xf32> to vector<8x128xf32>
    %47 = vector.shape_cast %46 : vector<8x128xf32> to vector<8x2x64xf32>
    %48 = tpu.transpose %47, [1, 0, 2] : vector<8x2x64xf32> -> vector<2x8x64xf32>
    %49 = arith.truncf %48 : vector<2x8x64xf32> to vector<2x8x64xbf16>
    %c0_23 = arith.constant 0 : index
    %c0_24 = arith.constant 0 : index
    %c0_25 = arith.constant 0 : index
    %c0_26 = arith.constant 0 : index
    %50 = vector.load %arg9[%c0_23, %c0_24, %c0_25, %c0_26] : memref<1x2x8x64xbf16, #tpu.memory_space<vmem>>, vector<1x2x8x64xbf16>
    %51 = vector.shape_cast %50 : vector<1x2x8x64xbf16> to vector<2x8x64xbf16>
    %52 = vector.shape_cast %49 : vector<2x8x64xbf16> to vector<1x2x8x64xbf16>
    tpu.vector_store %arg9[%c0_23, %c0_24, %c0_25, %c0_26], %52 {strides = array<i32>} : memref<1x2x8x64xbf16, #tpu.memory_space<vmem>>, vector<1x2x8x64xbf16>,
    return
  }
  func.func @transform_0(%arg0: i32, %arg1: i32) -> (i32, i32, i32) {
    %c0_i32 = arith.constant 0 : i32
    %c0_i32_0 = arith.constant 0 : i32
    return %arg0, %arg1, %c0_i32 : i32, i32, i32
  }
  func.func @transform_1(%arg0: i32, %arg1: i32) -> (i32, i32) {
    %c0_i32 = arith.constant 0 : i32
    %c0_i32_0 = arith.constant 0 : i32
    %c0_i32_1 = arith.constant 0 : i32
    return %c0_i32, %c0_i32_0 : i32, i32
  }
  func.func @transform_2(%arg0: i32, %arg1: i32) -> (i32, i32) {
    %c0_i32 = arith.constant 0 : i32
    %c0_i32_0 = arith.constant 0 : i32
    %c0_i32_1 = arith.constant 0 : i32
    return %c0_i32, %c0_i32_0 : i32, i32
  }
  func.func @transform_3(%arg0: i32, %arg1: i32) -> (i32, i32) {
    %c0_i32 = arith.constant 0 : i32
    %c0_i32_0 = arith.constant 0 : i32
    %c0_i32_1 = arith.constant 0 : i32
    return %c0_i32, %c0_i32_0 : i32, i32
  }
  func.func @transform_4(%arg0: i32, %arg1: i32) -> (i32, i32) {
    %c0_i32 = arith.constant 0 : i32
    %c0_i32_0 = arith.constant 0 : i32
    %c0_i32_1 = arith.constant 0 : i32
    return %c0_i32, %c0_i32_0 : i32, i32
  }
  func.func @transform_5(%arg0: i32, %arg1: i32) -> (i32, i32, i32, i32) {
    %c0_i32 = arith.constant 0 : i32
    %c0_i32_0 = arith.constant 0 : i32
    %c0_i32_1 = arith.constant 0 : i32
    return %arg0, %c0_i32, %arg1, %c0_i32_0 : i32, i32, i32, i32
  }
  func.func @transform_6(%arg0: i32, %arg1: i32) -> (i32, i32, i32, i32) {
    %c0_i32 = arith.constant 0 : i32
    %c0_i32_0 = arith.constant 0 : i32
    %c0_i32_1 = arith.constant 0 : i32
    return %arg0, %c0_i32, %arg1, %c0_i32_0 : i32, i32, i32, i32
  }
  func.func @transform_7(%arg0: i32, %arg1: i32) -> (i32, i32, i32, i32) {
    %c0_i32 = arith.constant 0 : i32
    %c0_i32_0 = arith.constant 0 : i32
    %c0_i32_1 = arith.constant 0 : i32
    return %arg0, %c0_i32, %arg1, %c0_i32_0 : i32, i32, i32, i32
  }
}

module attributes {stable_mosaic.version = 11 : i64} {
  func.func @_attn_kernel(%arg0: i32, %arg1: i32, %arg2: i32, %arg3: memref<1x2x8x64xbf16, #tpu.memory_space<vmem>>, %arg4: memref<1x2x8x64xbf16, #tpu.memory_space<vmem>>, %arg5: memref<1x2x8x64xbf16, #tpu.memory_space<vmem>>, %arg6: memref<1x8x128xbf16, #tpu.memory_space<vmem>>, %arg7: memref<2x8x1xf32, #tpu.memory_space<vmem>>, %arg8: memref<2x8x1xf32, #tpu.memory_space<vmem>>, %arg9: memref<2x8x64xf32, #tpu.memory_space<vmem>>) attributes {dimension_semantics = [#tpu.dimension_semantics<parallel>, #tpu.dimension_semantics<parallel>, #tpu.dimension_semantics<arbitrary>], iteration_bounds = array<i64: 2, 1, 1>, scalar_prefetch = 0 : i64, scratch_operands = 3 : i64, tpu.core_type = #tpu.core_type<tc>, window_params = [{transform_indices = @transform_0, window_bounds = array<i64: 1, 2, 8, 64>}, {transform_indices = @transform_1, window_bounds = array<i64: 1, 2, 8, 64>}, {transform_indices = @transform_2, window_bounds = array<i64: 1, 2, 8, 64>}, {transform_indices = @transform_3, window_bounds = array<i64: 1, 8, 128>}]} {
    %c0_i32 = arith.constant 0 : i32
    %0 = arith.cmpi eq, %arg2, %c0_i32 : i32
    %1 = arith.extui %0 : i1 to i32
    %c0_i32_0 = arith.constant 0 : i32
    %2 = arith.cmpi ne, %1, %c0_i32_0 : i32
    scf.if %2 {
      %cst = arith.constant 0xFF800000 : f32
      %12 = vector.broadcast %cst : f32 to vector<2x8x1xf32>
      %c0 = arith.constant 0 : index
      %c0_5 = arith.constant 0 : index
      %c0_6 = arith.constant 0 : index
      %13 = vector.load %arg7[%c0, %c0_5, %c0_6] : memref<2x8x1xf32, #tpu.memory_space<vmem>>, vector<2x8x1xf32>
      tpu.vector_store %arg7[%c0, %c0_5, %c0_6], %12 {strides = array<i32>} : memref<2x8x1xf32, #tpu.memory_space<vmem>>, vector<2x8x1xf32>,
      %cst_7 = arith.constant 0.000000e+00 : f32
      %14 = vector.broadcast %cst_7 : f32 to vector<2x8x1xf32>
      %c0_8 = arith.constant 0 : index
      %c0_9 = arith.constant 0 : index
      %c0_10 = arith.constant 0 : index
      %15 = vector.load %arg8[%c0_8, %c0_9, %c0_10] : memref<2x8x1xf32, #tpu.memory_space<vmem>>, vector<2x8x1xf32>
      tpu.vector_store %arg8[%c0_8, %c0_9, %c0_10], %14 {strides = array<i32>} : memref<2x8x1xf32, #tpu.memory_space<vmem>>, vector<2x8x1xf32>,
      %cst_11 = arith.constant 0.000000e+00 : f32
      %16 = vector.broadcast %cst_11 : f32 to vector<2x8x64xf32>
      %c0_12 = arith.constant 0 : index
      %c0_13 = arith.constant 0 : index
      %c0_14 = arith.constant 0 : index
      %17 = vector.load %arg9[%c0_12, %c0_13, %c0_14] : memref<2x8x64xf32, #tpu.memory_space<vmem>>, vector<2x8x64xf32>
      tpu.vector_store %arg9[%c0_12, %c0_13, %c0_14], %16 {strides = array<i32>} : memref<2x8x64xf32, #tpu.memory_space<vmem>>, vector<2x8x64xf32>,
    } else {
    }
    %c8_i32 = arith.constant 8 : i32
    %3 = arith.muli %arg2, %c8_i32 : i32
    %c1_i32 = arith.constant 1 : i32
    %4 = arith.addi %arg1, %c1_i32 : i32
    %c8_i32_1 = arith.constant 8 : i32
    %5 = arith.muli %4, %c8_i32_1 : i32
    %6 = arith.cmpi slt, %3, %5 : i32
    %7 = arith.extui %6 : i1 to i32
    %c0_i32_2 = arith.constant 0 : i32
    %8 = arith.cmpi ne, %7, %c0_i32_2 : i32
    scf.if %8 {
      %c0 = arith.constant 0 : index
      %c0_5 = arith.constant 0 : index
      %c0_6 = arith.constant 0 : index
      %c0_7 = arith.constant 0 : index
      %12 = vector.load %arg3[%c0, %c0_5, %c0_6, %c0_7] : memref<1x2x8x64xbf16, #tpu.memory_space<vmem>>, vector<1x2x8x64xbf16>
      %13 = vector.shape_cast %12 : vector<1x2x8x64xbf16> to vector<2x8x64xbf16>
      %c0_8 = arith.constant 0 : index
      %c0_9 = arith.constant 0 : index
      %c0_10 = arith.constant 0 : index
      %c0_11 = arith.constant 0 : index
      %14 = vector.load %arg4[%c0_8, %c0_9, %c0_10, %c0_11] : memref<1x2x8x64xbf16, #tpu.memory_space<vmem>>, vector<1x2x8x64xbf16>
      %15 = vector.shape_cast %14 : vector<1x2x8x64xbf16> to vector<2x8x64xbf16>
      "tpu.trace_start"() <{level = 10 : i32, message = "hqd,hkd->hqk"}> : () -> ()
      %cst = arith.constant dense<0.000000e+00> : vector<2x8x8xf32>
      %16 = tpu.matmul %13, %15, %cst {dimension_numbers = #tpu.dot_dimension_numbers<[2], [2], [1], [1], [0, 0, 0, 1, 1, 1], [0], [0]>} : vector<2x8x64xbf16>, vector<2x8x64xbf16>, vector<2x8x8xf32> -> vector<2x8x8xf32>
      "tpu.trace_stop"() : () -> ()
      %cst_12 = arith.constant 1.250000e-01 : f32
      %17 = vector.broadcast %cst_12 : f32 to vector<2x8x8xf32>
      %18 = arith.mulf %16, %17 : vector<2x8x8xf32>
      %19 = tpu.iota {dimensions = array<i32: 0>} : vector<8x8xi32>
      %c8_i32_13 = arith.constant 8 : i32
      %20 = arith.muli %arg1, %c8_i32_13 : i32
      %21 = vector.broadcast %20 : i32 to vector<8x8xi32>
      %22 = arith.addi %19, %21 : vector<8x8xi32>
      %23 = tpu.iota {dimensions = array<i32: 1>} : vector<8x8xi32>
      %c8_i32_14 = arith.constant 8 : i32
      %24 = arith.muli %arg2, %c8_i32_14 : i32
      %25 = vector.broadcast %24 : i32 to vector<8x8xi32>
      %26 = arith.addi %23, %25 : vector<8x8xi32>
      %27 = arith.cmpi sgt, %26, %22 : vector<8x8xi32>
      %28 = vector.shape_cast %27 : vector<8x8xi1> to vector<1x8x8xi1>
      %cst_15 = arith.constant -1.000000e+30 : f32
      %29 = vector.shape_cast %28 : vector<1x8x8xi1> to vector<1x8x8xi1>
      %30 = vector.broadcast %29 : vector<1x8x8xi1> to vector<2x8x8xi1>
      %31 = vector.broadcast %cst_15 : f32 to vector<2x8x8xf32>
      %32 = arith.select %30, %31, %18 : vector<2x8x8xi1>, vector<2x8x8xf32>
      %c0_16 = arith.constant 0 : index
      %c0_17 = arith.constant 0 : index
      %c0_18 = arith.constant 0 : index
      %33 = vector.load %arg7[%c0_16, %c0_17, %c0_18] : memref<2x8x1xf32, #tpu.memory_space<vmem>>, vector<2x8x1xf32>
      %cst_19 = arith.constant dense<0xFF800000> : vector<2x8xf32>
      %34 = vector.multi_reduction <maximumf>, %32, %cst_19 [2] : vector<2x8x8xf32> to vector<2x8xf32>
      %35 = vector.shape_cast %34 : vector<2x8xf32> to vector<2x8x1xf32>
      %36 = arith.maximumf %33, %35 : vector<2x8x1xf32>
      %c0_20 = arith.constant 0 : index
      %c0_21 = arith.constant 0 : index
      %c0_22 = arith.constant 0 : index
      %37 = vector.load %arg7[%c0_20, %c0_21, %c0_22] : memref<2x8x1xf32, #tpu.memory_space<vmem>>, vector<2x8x1xf32>
      %38 = arith.subf %37, %36 : vector<2x8x1xf32>
      %39 = math.exp %38 : vector<2x8x1xf32>
      %40 = vector.broadcast %36 : vector<2x8x1xf32> to vector<2x8x8xf32>
      %41 = arith.subf %32, %40 : vector<2x8x8xf32>
      %42 = math.exp %41 : vector<2x8x8xf32>
      %c0_23 = arith.constant 0 : index
      %c0_24 = arith.constant 0 : index
      %c0_25 = arith.constant 0 : index
      %43 = vector.load %arg8[%c0_23, %c0_24, %c0_25] : memref<2x8x1xf32, #tpu.memory_space<vmem>>, vector<2x8x1xf32>
      %44 = arith.mulf %39, %43 : vector<2x8x1xf32>
      %cst_26 = arith.constant dense<0.000000e+00> : vector<2x8xf32>
      %45 = vector.multi_reduction <add>, %42, %cst_26 [2] : vector<2x8x8xf32> to vector<2x8xf32>
      %46 = vector.shape_cast %45 : vector<2x8xf32> to vector<2x8x1xf32>
      %47 = arith.addf %44, %46 : vector<2x8x1xf32>
      %c0_27 = arith.constant 0 : index
      %c0_28 = arith.constant 0 : index
      %c0_29 = arith.constant 0 : index
      %48 = vector.load %arg8[%c0_27, %c0_28, %c0_29] : memref<2x8x1xf32, #tpu.memory_space<vmem>>, vector<2x8x1xf32>
      tpu.vector_store %arg8[%c0_27, %c0_28, %c0_29], %47 {strides = array<i32>} : memref<2x8x1xf32, #tpu.memory_space<vmem>>, vector<2x8x1xf32>,
      %c0_30 = arith.constant 0 : index
      %c0_31 = arith.constant 0 : index
      %c0_32 = arith.constant 0 : index
      %49 = vector.load %arg9[%c0_30, %c0_31, %c0_32] : memref<2x8x64xf32, #tpu.memory_space<vmem>>, vector<2x8x64xf32>
      %50 = vector.broadcast %39 : vector<2x8x1xf32> to vector<2x8x64xf32>
      %51 = arith.mulf %50, %49 : vector<2x8x64xf32>
      %52 = arith.truncf %42 : vector<2x8x8xf32> to vector<2x8x8xbf16>
      %c0_33 = arith.constant 0 : index
      %c0_34 = arith.constant 0 : index
      %c0_35 = arith.constant 0 : index
      %c0_36 = arith.constant 0 : index
      %53 = vector.load %arg5[%c0_33, %c0_34, %c0_35, %c0_36] : memref<1x2x8x64xbf16, #tpu.memory_space<vmem>>, vector<1x2x8x64xbf16>
      %54 = vector.shape_cast %53 : vector<1x2x8x64xbf16> to vector<2x8x64xbf16>
      "tpu.trace_start"() <{level = 10 : i32, message = "hqk,hkd->hqd"}> : () -> ()
      %cst_37 = arith.constant dense<0.000000e+00> : vector<2x8x64xf32>
      %55 = tpu.matmul %52, %54, %cst_37 {dimension_numbers = #tpu.dot_dimension_numbers<[2], [1], [1], [2], [0, 0, 0, 1, 1, 2], [0], [0]>} : vector<2x8x8xbf16>, vector<2x8x64xbf16>, vector<2x8x64xf32> -> vector<2x8x64xf32>
      "tpu.trace_stop"() : () -> ()
      %56 = arith.addf %51, %55 : vector<2x8x64xf32>
      %c0_38 = arith.constant 0 : index
      %c0_39 = arith.constant 0 : index
      %c0_40 = arith.constant 0 : index
      %57 = vector.load %arg9[%c0_38, %c0_39, %c0_40] : memref<2x8x64xf32, #tpu.memory_space<vmem>>, vector<2x8x64xf32>
      tpu.vector_store %arg9[%c0_38, %c0_39, %c0_40], %56 {strides = array<i32>} : memref<2x8x64xf32, #tpu.memory_space<vmem>>, vector<2x8x64xf32>,
      %c0_41 = arith.constant 0 : index
      %c0_42 = arith.constant 0 : index
      %c0_43 = arith.constant 0 : index
      %58 = vector.load %arg7[%c0_41, %c0_42, %c0_43] : memref<2x8x1xf32, #tpu.memory_space<vmem>>, vector<2x8x1xf32>
      tpu.vector_store %arg7[%c0_41, %c0_42, %c0_43], %36 {strides = array<i32>} : memref<2x8x1xf32, #tpu.memory_space<vmem>>, vector<2x8x1xf32>,
    } else {
    }
    %c0_i32_3 = arith.constant 0 : i32
    %9 = arith.cmpi eq, %arg2, %c0_i32_3 : i32
    %10 = arith.extui %9 : i1 to i32
    %c0_i32_4 = arith.constant 0 : i32
    %11 = arith.cmpi ne, %10, %c0_i32_4 : i32
    scf.if %11 {
      %c0 = arith.constant 0 : index
      %c0_5 = arith.constant 0 : index
      %c0_6 = arith.constant 0 : index
      %12 = vector.load %arg9[%c0, %c0_5, %c0_6] : memref<2x8x64xf32, #tpu.memory_space<vmem>>, vector<2x8x64xf32>
      %c0_7 = arith.constant 0 : index
      %c0_8 = arith.constant 0 : index
      %c0_9 = arith.constant 0 : index
      %13 = vector.load %arg8[%c0_7, %c0_8, %c0_9] : memref<2x8x1xf32, #tpu.memory_space<vmem>>, vector<2x8x1xf32>
      %14 = tpu.reciprocal %13 : vector<2x8x1xf32> -> vector<2x8x1xf32>
      %15 = vector.broadcast %14 : vector<2x8x1xf32> to vector<2x8x64xf32>
      %16 = arith.mulf %12, %15 : vector<2x8x64xf32>
      %17 = tpu.transpose %16, [1, 0, 2] : vector<2x8x64xf32> -> vector<8x2x64xf32>
      %18 = vector.shape_cast %17 : vector<8x2x64xf32> to vector<8x128xf32>
      %19 = arith.truncf %18 : vector<8x128xf32> to vector<8x128xbf16>
      %c0_10 = arith.constant 0 : index
      %c0_11 = arith.constant 0 : index
      %c0_12 = arith.constant 0 : index
      %20 = vector.load %arg6[%c0_10, %c0_11, %c0_12] : memref<1x8x128xbf16, #tpu.memory_space<vmem>>, vector<1x8x128xbf16>
      %21 = vector.shape_cast %20 : vector<1x8x128xbf16> to vector<8x128xbf16>
      %22 = vector.shape_cast %19 : vector<8x128xbf16> to vector<1x8x128xbf16>
      tpu.vector_store %arg6[%c0_10, %c0_11, %c0_12], %22 {strides = array<i32>} : memref<1x8x128xbf16, #tpu.memory_space<vmem>>, vector<1x8x128xbf16>,
    } else {
    }
    return
  }
  func.func @transform_0(%arg0: i32, %arg1: i32, %arg2: i32) -> (i32, i32, i32, i32) {
    %c0_i32 = arith.constant 0 : i32
    %c0_i32_0 = arith.constant 0 : i32
    %c0_i32_1 = arith.constant 0 : i32
    return %arg0, %c0_i32, %arg1, %c0_i32_0 : i32, i32, i32, i32
  }
  func.func @transform_1(%arg0: i32, %arg1: i32, %arg2: i32) -> (i32, i32, i32, i32) {
    %c0_i32 = arith.constant 0 : i32
    %c0_i32_0 = arith.constant 0 : i32
    %c0_i32_1 = arith.constant 0 : i32
    return %arg0, %c0_i32, %arg2, %c0_i32_0 : i32, i32, i32, i32
  }
  func.func @transform_2(%arg0: i32, %arg1: i32, %arg2: i32) -> (i32, i32, i32, i32) {
    %c0_i32 = arith.constant 0 : i32
    %c0_i32_0 = arith.constant 0 : i32
    %c0_i32_1 = arith.constant 0 : i32
    return %arg0, %c0_i32, %arg2, %c0_i32_0 : i32, i32, i32, i32
  }
  func.func @transform_3(%arg0: i32, %arg1: i32, %arg2: i32) -> (i32, i32, i32) {
    %c0_i32 = arith.constant 0 : i32
    %c0_i32_0 = arith.constant 0 : i32
    return %arg0, %arg1, %c0_i32 : i32, i32, i32
  }
}

module attributes {stable_mosaic.version = 11 : i64} {
  func.func @_post_attn_mlp_kernel(%arg0: i32, %arg1: memref<16x128xf32, #tpu.memory_space<vmem>>, %arg2: memref<16x128xbf16, #tpu.memory_space<vmem>>, %arg3: memref<128x128xbf16, #tpu.memory_space<vmem>>, %arg4: memref<1x128xf32, #tpu.memory_space<vmem>>, %arg5: memref<1x128xf32, #tpu.memory_space<vmem>>, %arg6: memref<1x128xf32, #tpu.memory_space<vmem>>, %arg7: memref<128x512xbf16, #tpu.memory_space<vmem>>, %arg8: memref<1x512xf32, #tpu.memory_space<vmem>>, %arg9: memref<512x128xbf16, #tpu.memory_space<vmem>>, %arg10: memref<1x128xf32, #tpu.memory_space<vmem>>, %arg11: memref<16x128xf32, #tpu.memory_space<vmem>>) attributes {dimension_semantics = [#tpu.dimension_semantics<parallel>], iteration_bounds = array<i64: 1>, scalar_prefetch = 0 : i64, scratch_operands = 0 : i64, tpu.core_type = #tpu.core_type<tc>, window_params = [{transform_indices = @transform_0, window_bounds = array<i64: 16, 128>}, {transform_indices = @transform_1, window_bounds = array<i64: 16, 128>}, {pipeline_mode = #tpu.pipeline_mode<synchronous>, transform_indices = @transform_2, window_bounds = array<i64: 128, 128>}, {pipeline_mode = #tpu.pipeline_mode<synchronous>, transform_indices = @transform_3, window_bounds = array<i64: 1, 128>}, {pipeline_mode = #tpu.pipeline_mode<synchronous>, transform_indices = @transform_4, window_bounds = array<i64: 1, 128>}, {pipeline_mode = #tpu.pipeline_mode<synchronous>, transform_indices = @transform_5, window_bounds = array<i64: 1, 128>}, {pipeline_mode = #tpu.pipeline_mode<synchronous>, transform_indices = @transform_6, window_bounds = array<i64: 128, 512>}, {pipeline_mode = #tpu.pipeline_mode<synchronous>, transform_indices = @transform_7, window_bounds = array<i64: 1, 512>}, {pipeline_mode = #tpu.pipeline_mode<synchronous>, transform_indices = @transform_8, window_bounds = array<i64: 512, 128>}, {pipeline_mode = #tpu.pipeline_mode<synchronous>, transform_indices = @transform_9, window_bounds = array<i64: 1, 128>}, {transform_indices = @transform_10, window_bounds = array<i64: 16, 128>}]} {
    %c0 = arith.constant 0 : index
    %c0_0 = arith.constant 0 : index
    %0 = vector.load %arg1[%c0, %c0_0] : memref<16x128xf32, #tpu.memory_space<vmem>>, vector<16x128xf32>
    %c0_1 = arith.constant 0 : index
    %c0_2 = arith.constant 0 : index
    %1 = vector.load %arg2[%c0_1, %c0_2] : memref<16x128xbf16, #tpu.memory_space<vmem>>, vector<16x128xbf16>
    %c0_3 = arith.constant 0 : index
    %c0_4 = arith.constant 0 : index
    %2 = vector.load %arg3[%c0_3, %c0_4] : memref<128x128xbf16, #tpu.memory_space<vmem>>, vector<128x128xbf16>
    %cst = arith.constant dense<0.000000e+00> : vector<16x128xf32>
    %3 = tpu.matmul %1, %2, %cst {dimension_numbers = #tpu.dot_dimension_numbers<[1], [0], [0], [1], [0, 0, 1, 1], [], []>} : vector<16x128xbf16>, vector<128x128xbf16>, vector<16x128xf32> -> vector<16x128xf32>
    %c0_5 = arith.constant 0 : index
    %c0_6 = arith.constant 0 : index
    %4 = vector.load %arg4[%c0_5, %c0_6] : memref<1x128xf32, #tpu.memory_space<vmem>>, vector<1x128xf32>
    %5 = vector.broadcast %4 : vector<1x128xf32> to vector<16x128xf32>
    %6 = arith.addf %3, %5 : vector<16x128xf32>
    %7 = arith.addf %0, %6 : vector<16x128xf32>
    %c0_7 = arith.constant 0 : index
    %c0_8 = arith.constant 0 : index
    %8 = vector.load %arg5[%c0_7, %c0_8] : memref<1x128xf32, #tpu.memory_space<vmem>>, vector<1x128xf32>
    %c0_9 = arith.constant 0 : index
    %c0_10 = arith.constant 0 : index
    %9 = vector.load %arg6[%c0_9, %c0_10] : memref<1x128xf32, #tpu.memory_space<vmem>>, vector<1x128xf32>
    %cst_11 = arith.constant dense<0.000000e+00> : vector<16xf32>
    %10 = vector.multi_reduction <add>, %7, %cst_11 [1] : vector<16x128xf32> to vector<16xf32>
    %11 = vector.shape_cast %10 : vector<16xf32> to vector<16x1xf32>
    %cst_12 = arith.constant 1.280000e+02 : f32
    %12 = vector.broadcast %cst_12 : f32 to vector<16x1xf32>
    %13 = arith.divf %11, %12 : vector<16x1xf32>
    %14 = vector.broadcast %13 : vector<16x1xf32> to vector<16x128xf32>
    %15 = arith.subf %7, %14 : vector<16x128xf32>
    %16 = arith.mulf %15, %15 : vector<16x128xf32>
    %cst_13 = arith.constant dense<0.000000e+00> : vector<16xf32>
    %17 = vector.multi_reduction <add>, %16, %cst_13 [1] : vector<16x128xf32> to vector<16xf32>
    %18 = vector.shape_cast %17 : vector<16xf32> to vector<16x1xf32>
    %cst_14 = arith.constant 1.280000e+02 : f32
    %19 = vector.broadcast %cst_14 : f32 to vector<16x1xf32>
    %20 = arith.divf %18, %19 : vector<16x1xf32>
    %21 = vector.broadcast %13 : vector<16x1xf32> to vector<16x128xf32>
    %22 = arith.subf %7, %21 : vector<16x128xf32>
    %cst_15 = arith.constant 9.99999974E-6 : f32
    %23 = vector.broadcast %cst_15 : f32 to vector<16x1xf32>
    %24 = arith.addf %20, %23 : vector<16x1xf32>
    %25 = math.rsqrt %24 : vector<16x1xf32>
    %26 = vector.broadcast %25 : vector<16x1xf32> to vector<16x128xf32>
    %27 = arith.mulf %22, %26 : vector<16x128xf32>
    %28 = vector.broadcast %8 : vector<1x128xf32> to vector<16x128xf32>
    %29 = arith.mulf %27, %28 : vector<16x128xf32>
    %30 = vector.broadcast %9 : vector<1x128xf32> to vector<16x128xf32>
    %31 = arith.addf %29, %30 : vector<16x128xf32>
    %32 = arith.truncf %31 : vector<16x128xf32> to vector<16x128xbf16>
    %c0_16 = arith.constant 0 : index
    %c0_17 = arith.constant 0 : index
    %33 = vector.load %arg7[%c0_16, %c0_17] : memref<128x512xbf16, #tpu.memory_space<vmem>>, vector<128x512xbf16>
    %cst_18 = arith.constant dense<0.000000e+00> : vector<16x512xf32>
    %34 = tpu.matmul %32, %33, %cst_18 {dimension_numbers = #tpu.dot_dimension_numbers<[1], [0], [0], [1], [0, 0, 1, 1], [], []>} : vector<16x128xbf16>, vector<128x512xbf16>, vector<16x512xf32> -> vector<16x512xf32>
    %c0_19 = arith.constant 0 : index
    %c0_20 = arith.constant 0 : index
    %35 = vector.load %arg8[%c0_19, %c0_20] : memref<1x512xf32, #tpu.memory_space<vmem>>, vector<1x512xf32>
    %36 = vector.broadcast %35 : vector<1x512xf32> to vector<16x512xf32>
    %37 = arith.addf %34, %36 : vector<16x512xf32>
    %cst_21 = arith.constant 5.000000e-01 : f32
    %38 = vector.broadcast %cst_21 : f32 to vector<16x512xf32>
    %39 = arith.mulf %38, %37 : vector<16x512xf32>
    %cst_22 = arith.constant 4.471500e-02 : f32
    %40 = vector.broadcast %cst_22 : f32 to vector<16x512xf32>
    %41 = arith.mulf %40, %37 : vector<16x512xf32>
    %42 = arith.mulf %41, %37 : vector<16x512xf32>
    %43 = arith.mulf %42, %37 : vector<16x512xf32>
    %44 = arith.addf %37, %43 : vector<16x512xf32>
    %cst_23 = arith.constant 0.797884583 : f32
    %45 = vector.broadcast %cst_23 : f32 to vector<16x512xf32>
    %46 = arith.mulf %45, %44 : vector<16x512xf32>
    %47 = math.tanh %46 : vector<16x512xf32>
    %cst_24 = arith.constant 1.000000e+00 : f32
    %48 = vector.broadcast %cst_24 : f32 to vector<16x512xf32>
    %49 = arith.addf %48, %47 : vector<16x512xf32>
    %50 = arith.mulf %39, %49 : vector<16x512xf32>
    %51 = arith.truncf %50 : vector<16x512xf32> to vector<16x512xbf16>
    %c0_25 = arith.constant 0 : index
    %c0_26 = arith.constant 0 : index
    %52 = vector.load %arg9[%c0_25, %c0_26] : memref<512x128xbf16, #tpu.memory_space<vmem>>, vector<512x128xbf16>
    %cst_27 = arith.constant dense<0.000000e+00> : vector<16x128xf32>
    %53 = tpu.matmul %51, %52, %cst_27 {dimension_numbers = #tpu.dot_dimension_numbers<[1], [0], [0], [1], [0, 0, 1, 1], [], []>} : vector<16x512xbf16>, vector<512x128xbf16>, vector<16x128xf32> -> vector<16x128xf32>
    %c0_28 = arith.constant 0 : index
    %c0_29 = arith.constant 0 : index
    %54 = vector.load %arg10[%c0_28, %c0_29] : memref<1x128xf32, #tpu.memory_space<vmem>>, vector<1x128xf32>
    %55 = vector.broadcast %54 : vector<1x128xf32> to vector<16x128xf32>
    %56 = arith.addf %53, %55 : vector<16x128xf32>
    %57 = arith.addf %7, %56 : vector<16x128xf32>
    %c0_30 = arith.constant 0 : index
    %c0_31 = arith.constant 0 : index
    %58 = vector.load %arg11[%c0_30, %c0_31] : memref<16x128xf32, #tpu.memory_space<vmem>>, vector<16x128xf32>
    tpu.vector_store %arg11[%c0_30, %c0_31], %57 {strides = array<i32>} : memref<16x128xf32, #tpu.memory_space<vmem>>, vector<16x128xf32>,
    return
  }
  func.func @transform_0(%arg0: i32) -> (i32, i32) {
    %c0_i32 = arith.constant 0 : i32
    %c0_i32_0 = arith.constant 0 : i32
    return %arg0, %c0_i32 : i32, i32
  }
  func.func @transform_1(%arg0: i32) -> (i32, i32) {
    %c0_i32 = arith.constant 0 : i32
    %c0_i32_0 = arith.constant 0 : i32
    return %arg0, %c0_i32 : i32, i32
  }
  func.func @transform_2(%arg0: i32) -> (i32, i32) {
    %c0_i32 = arith.constant 0 : i32
    %c0_i32_0 = arith.constant 0 : i32
    %c0_i32_1 = arith.constant 0 : i32
    return %c0_i32, %c0_i32_0 : i32, i32
  }
  func.func @transform_3(%arg0: i32) -> (i32, i32) {
    %c0_i32 = arith.constant 0 : i32
    %c0_i32_0 = arith.constant 0 : i32
    %c0_i32_1 = arith.constant 0 : i32
    return %c0_i32, %c0_i32_0 : i32, i32
  }
  func.func @transform_4(%arg0: i32) -> (i32, i32) {
    %c0_i32 = arith.constant 0 : i32
    %c0_i32_0 = arith.constant 0 : i32
    %c0_i32_1 = arith.constant 0 : i32
    return %c0_i32, %c0_i32_0 : i32, i32
  }
  func.func @transform_5(%arg0: i32) -> (i32, i32) {
    %c0_i32 = arith.constant 0 : i32
    %c0_i32_0 = arith.constant 0 : i32
    %c0_i32_1 = arith.constant 0 : i32
    return %c0_i32, %c0_i32_0 : i32, i32
  }
  func.func @transform_6(%arg0: i32) -> (i32, i32) {
    %c0_i32 = arith.constant 0 : i32
    %c0_i32_0 = arith.constant 0 : i32
    %c0_i32_1 = arith.constant 0 : i32
    return %c0_i32, %c0_i32_0 : i32, i32
  }
  func.func @transform_7(%arg0: i32) -> (i32, i32) {
    %c0_i32 = arith.constant 0 : i32
    %c0_i32_0 = arith.constant 0 : i32
    %c0_i32_1 = arith.constant 0 : i32
    return %c0_i32, %c0_i32_0 : i32, i32
  }
  func.func @transform_8(%arg0: i32) -> (i32, i32) {
    %c0_i32 = arith.constant 0 : i32
    %c0_i32_0 = arith.constant 0 : i32
    %c0_i32_1 = arith.constant 0 : i32
    return %c0_i32, %c0_i32_0 : i32, i32
  }
  func.func @transform_9(%arg0: i32) -> (i32, i32) {
    %c0_i32 = arith.constant 0 : i32
    %c0_i32_0 = arith.constant 0 : i32
    %c0_i32_1 = arith.constant 0 : i32
    return %c0_i32, %c0_i32_0 : i32, i32
  }
  func.func @transform_10(%arg0: i32) -> (i32, i32) {
    %c0_i32 = arith.constant 0 : i32
    %c0_i32_0 = arith.constant 0 : i32
    return %arg0, %c0_i32 : i32, i32
  }
}

module attributes {stable_mosaic.version = 11 : i64} {
  func.func @_logits_kernel(%arg0: i32, %arg1: i32, %arg2: memref<16x128xf32, #tpu.memory_space<vmem>>, %arg3: memref<1x128xf32, #tpu.memory_space<vmem>>, %arg4: memref<1x128xf32, #tpu.memory_space<vmem>>, %arg5: memref<128x2048xbf16, #tpu.memory_space<vmem>>, %arg6: memref<16x2048xf32, #tpu.memory_space<vmem>>, %arg7: memref<16x128xbf16, #tpu.memory_space<vmem>>) attributes {dimension_semantics = [#tpu.dimension_semantics<parallel>, #tpu.dimension_semantics<arbitrary>], iteration_bounds = array<i64: 1, 25>, scalar_prefetch = 0 : i64, scratch_operands = 1 : i64, tpu.core_type = #tpu.core_type<tc>, window_params = [{transform_indices = @transform_0, window_bounds = array<i64: 16, 128>}, {pipeline_mode = #tpu.pipeline_mode<synchronous>, transform_indices = @transform_1, window_bounds = array<i64: 1, 128>}, {pipeline_mode = #tpu.pipeline_mode<synchronous>, transform_indices = @transform_2, window_bounds = array<i64: 1, 128>}, {transform_indices = @transform_3, window_bounds = array<i64: 128, 2048>}, {transform_indices = @transform_4, window_bounds = array<i64: 16, 2048>}]} {
    %c0_i32 = arith.constant 0 : i32
    %0 = arith.cmpi eq, %arg1, %c0_i32 : i32
    %1 = arith.extui %0 : i1 to i32
    %c0_i32_0 = arith.constant 0 : i32
    %2 = arith.cmpi ne, %1, %c0_i32_0 : i32
    scf.if %2 {
      %c0_6 = arith.constant 0 : index
      %c0_7 = arith.constant 0 : index
      %7 = vector.load %arg2[%c0_6, %c0_7] : memref<16x128xf32, #tpu.memory_space<vmem>>, vector<16x128xf32>
      %c0_8 = arith.constant 0 : index
      %c0_9 = arith.constant 0 : index
      %8 = vector.load %arg3[%c0_8, %c0_9] : memref<1x128xf32, #tpu.memory_space<vmem>>, vector<1x128xf32>
      %c0_10 = arith.constant 0 : index
      %c0_11 = arith.constant 0 : index
      %9 = vector.load %arg4[%c0_10, %c0_11] : memref<1x128xf32, #tpu.memory_space<vmem>>, vector<1x128xf32>
      %cst_12 = arith.constant dense<0.000000e+00> : vector<16xf32>
      %10 = vector.multi_reduction <add>, %7, %cst_12 [1] : vector<16x128xf32> to vector<16xf32>
      %11 = vector.shape_cast %10 : vector<16xf32> to vector<16x1xf32>
      %cst_13 = arith.constant 1.280000e+02 : f32
      %12 = vector.broadcast %cst_13 : f32 to vector<16x1xf32>
      %13 = arith.divf %11, %12 : vector<16x1xf32>
      %14 = vector.broadcast %13 : vector<16x1xf32> to vector<16x128xf32>
      %15 = arith.subf %7, %14 : vector<16x128xf32>
      %16 = arith.mulf %15, %15 : vector<16x128xf32>
      %cst_14 = arith.constant dense<0.000000e+00> : vector<16xf32>
      %17 = vector.multi_reduction <add>, %16, %cst_14 [1] : vector<16x128xf32> to vector<16xf32>
      %18 = vector.shape_cast %17 : vector<16xf32> to vector<16x1xf32>
      %cst_15 = arith.constant 1.280000e+02 : f32
      %19 = vector.broadcast %cst_15 : f32 to vector<16x1xf32>
      %20 = arith.divf %18, %19 : vector<16x1xf32>
      %21 = vector.broadcast %13 : vector<16x1xf32> to vector<16x128xf32>
      %22 = arith.subf %7, %21 : vector<16x128xf32>
      %cst_16 = arith.constant 9.99999974E-6 : f32
      %23 = vector.broadcast %cst_16 : f32 to vector<16x1xf32>
      %24 = arith.addf %20, %23 : vector<16x1xf32>
      %25 = math.rsqrt %24 : vector<16x1xf32>
      %26 = vector.broadcast %25 : vector<16x1xf32> to vector<16x128xf32>
      %27 = arith.mulf %22, %26 : vector<16x128xf32>
      %28 = vector.broadcast %8 : vector<1x128xf32> to vector<16x128xf32>
      %29 = arith.mulf %27, %28 : vector<16x128xf32>
      %30 = vector.broadcast %9 : vector<1x128xf32> to vector<16x128xf32>
      %31 = arith.addf %29, %30 : vector<16x128xf32>
      %32 = arith.truncf %31 : vector<16x128xf32> to vector<16x128xbf16>
      %c0_17 = arith.constant 0 : index
      %c0_18 = arith.constant 0 : index
      %33 = vector.load %arg7[%c0_17, %c0_18] : memref<16x128xbf16, #tpu.memory_space<vmem>>, vector<16x128xbf16>
      tpu.vector_store %arg7[%c0_17, %c0_18], %32 {strides = array<i32>} : memref<16x128xbf16, #tpu.memory_space<vmem>>, vector<16x128xbf16>,
    } else {
    }
    %c0 = arith.constant 0 : index
    %c0_1 = arith.constant 0 : index
    %3 = vector.load %arg7[%c0, %c0_1] : memref<16x128xbf16, #tpu.memory_space<vmem>>, vector<16x128xbf16>
    %c0_2 = arith.constant 0 : index
    %c0_3 = arith.constant 0 : index
    %4 = vector.load %arg5[%c0_2, %c0_3] : memref<128x2048xbf16, #tpu.memory_space<vmem>>, vector<128x2048xbf16>
    %cst = arith.constant dense<0.000000e+00> : vector<16x2048xf32>
    %5 = tpu.matmul %3, %4, %cst {dimension_numbers = #tpu.dot_dimension_numbers<[1], [0], [0], [1], [0, 0, 1, 1], [], []>} : vector<16x128xbf16>, vector<128x2048xbf16>, vector<16x2048xf32> -> vector<16x2048xf32>
    %c0_4 = arith.constant 0 : index
    %c0_5 = arith.constant 0 : index
    %6 = vector.load %arg6[%c0_4, %c0_5] : memref<16x2048xf32, #tpu.memory_space<vmem>>, vector<16x2048xf32>
    tpu.vector_store %arg6[%c0_4, %c0_5], %5 {strides = array<i32>} : memref<16x2048xf32, #tpu.memory_space<vmem>>, vector<16x2048xf32>,
    return
  }
  func.func @transform_0(%arg0: i32, %arg1: i32) -> (i32, i32) {
    %c0_i32 = arith.constant 0 : i32
    %c0_i32_0 = arith.constant 0 : i32
    return %arg0, %c0_i32 : i32, i32
  }
  func.func @transform_1(%arg0: i32, %arg1: i32) -> (i32, i32) {
    %c0_i32 = arith.constant 0 : i32
    %c0_i32_0 = arith.constant 0 : i32
    %c0_i32_1 = arith.constant 0 : i32
    return %c0_i32, %c0_i32_0 : i32, i32
  }
  func.func @transform_2(%arg0: i32, %arg1: i32) -> (i32, i32) {
    %c0_i32 = arith.constant 0 : i32
    %c0_i32_0 = arith.constant 0 : i32
    %c0_i32_1 = arith.constant 0 : i32
    return %c0_i32, %c0_i32_0 : i32, i32
  }
  func.func @transform_3(%arg0: i32, %arg1: i32) -> (i32, i32) {
    %c0_i32 = arith.constant 0 : i32
    %c0_i32_0 = arith.constant 0 : i32
    return %c0_i32, %arg1 : i32, i32
  }
  func.func @transform_4(%arg0: i32, %arg1: i32) -> (i32, i32) {
    %c0_i32 = arith.constant 0 : i32
    return %arg0, %arg1 : i32, i32
  }
}

</mosaic_0001>

<bundles_post_ra>
// kernel: gpt2_forward.8
= control target key start
LH: loop header
LB: loop body
LE: loop exit
PB: predicated region body
PF: predicated region fallthrough
CT: control target
= control target key end

     0   :  { %s837_s12 = smov 0   ;;  %s839_s13 = smov 0   ;;  %s926_s0 = inlined_call_operand.vmem [shape: bf16[2,2,8,64], index: 0, kind: input, shape index: {}]   ;;  %s927_s1 = inlined_call_operand.vmem [shape: bf16[2,2,8,64], index: 1, kind: input, shape index: {}]   ;;  %s928_s2 = inlined_call_operand.vmem [shape: bf16[2,2,8,64], index: 2, kind: input, shape index: {}]   ;;  %s929_s3 = inlined_call_operand.vmem [shape: bf16[2,8,128], index: 3, kind: output, shape index: {}]  }
   0x1   :  { %s841_s14 = smov 0  }
   0x2 LB: > { %s32_s15 = sadd.s32 1, %s805_s13  ;;  %p725_p0 = scmp.ge.s32.totalorder %s809_s14, 1  ;;  %s809_s14 = sphi %s841_s14, %s13_s14   ;;  %s805_s13 = sphi %s839_s13, %s931_s13   ;;  %s801_s12 = sphi %s837_s12, %s930_s12  }
   0x3   : > { %p34_p1 = scmp.ge.s32.totalorder %s32_s15, 2  ;;  %p193_p2 = scmp.lt.s32.totalorder %s809_s14, 3 }
   0x5   : > { %s933_s15 = smov (%p34_p1, %s32_s15), 0  ;;  %p194_p3 = pnand %p725_p0, %p193_p2 }
   0x6   : > { %p238_p4 = scmp.lt.s32.totalorder (!%p194_p3), %s801_s12, 1  ;;  %s816_s26 = smov (!%p194_p3), 64  }
   0x7   : > { %197 = sbr.rel (%p194_p3) target bundleno = 808 (0x328), region = 32 }
   0xc   : > { %s935_s12 = smov (!%p238_p4, %s801_s12), 1  ;;  %vm279_vm0 = vcmask 523264   ;;  %vm274_vm1 = vcmask 7168   ;;  %v811_v6 = vmov -inf   ;;  %v334_v7 = vlaneseq }
   0xd   : > { %s858_s16 = sshll.u32 %s935_s12, 3  ;;  %275 = vst.msk [vmem:[#allocation2] sm:$0xff] %vm274_vm1, %v811_v6  ;;  %vm350_vm3 = vcmask 64512   ;;  %v812_v20 = vmov 0   ;;  %v813_v21 = vmov 0.0   ;;  %vm417_vm4 = vcmask 1043456  }
   0xe   : > { %s253_s19 = scalar_lea.vmem %s927_s1, %s858_s16  ;;  %s245_s22 = scalar_lea.vmem %s926_s0, %s858_s16  ;;  %276 = vst.msk [vmem:[#allocation2 + $0x8] sm:$0xff] %vm274_vm1, %v811_v6  ;;  %v335_v8 = vshrl.u32 %v334_v7, 7  ;;  %v340_v9 = vand.u32 127, %v334_v7  ;;  %772 = vset.pattern.permute.xlu1 %v812_v20  ;;  %773 = vset.pattern.permute.xlu0 %v812_v20  ;;  %vm507_vm13 = vcmask 1047556  }
   0xf   : > { %v291_v0 = vld [vmem:[%s253_s19] sm:$0xf]  ;;  %v292_v1 = vld [vmem:[%s253_s19 + $0x4] sm:$0xf]  ;;  %774 = vset.pattern.permute.xlu2 %v812_v20  ;;  %280 = vst.msk [vmem:[#allocation4] sm:$0xff] %vm279_vm0, %v813_v21  ;;  %s261_s25 = scalar_lea.vmem %s928_s2, %s858_s16  ;;  %s732_s27 = sshll.u32 %s935_s12, 2 }
  0x10   : > { %v298_v2 = vsel %vm279_vm0, %v291_v0, 0  ;;  %v317_v3 = vsel %vm279_vm0, %v292_v1, 0  ;;  %v289_v4 = vld [vmem:[%s245_s22] sm:$0xf]  ;;  %v290_v5 = vld [vmem:[%s245_s22 + $0x4] sm:$0xf]  ;;  %vm343_vm2 = vcmp.gt.s32.totalorder %v340_v9, %v335_v8  ;;  %s268_s30 = scalar_lea.vmem %s929_s3, %s732_s27 }
  0x11   : > { %307 = vmatpush.bf16.xpose.msra.mxu0 %v298_v2  ;;  %326 = vmatpush.bf16.xpose.msra.mxu1 %v317_v3  ;;  %277 = vst.msk [vmem:[#allocation3] sm:$0xff] %vm274_vm1, %v813_v21  ;;  %v412_v34 = vld [vmem:[%s261_s25] sm:$0xf]  ;;  %v413_v36 = vld [vmem:[%s261_s25 + $0x4] sm:$0xf] }
  0x12   : > { %278 = vst.msk [vmem:[#allocation3 + $0x8] sm:$0xff] %vm274_vm1, %v813_v21  ;;  %v419_v35 = vsel %vm417_vm4, %v412_v34, 0  ;;  %v438_v37 = vsel %vm417_vm4, %v413_v36, 0 }
  0x13   : > { %281 = vst.msk [vmem:[#allocation4 + $0x8] sm:$0xff] %vm279_vm0, %v813_v21  ;;  %428 = vmatpush.bf16.msra.mxu2 %v419_v35  ;;  %447 = vmatpush.bf16.msra.mxu3 %v438_v37  ;;  %v815_v35 = vmov 1934713408  }
  0x14   : > { %v348_v22 = vld [vmem:[#allocation2] sm:$0xff]  ;;  %v532_v36 = vunpack.c.l.s4 %v815_v35 }
  0x15   : > { %v349_v27 = vld [vmem:[#allocation2 + $0x8] sm:$0xff] }
  0x16   : > { %v396_v59 = vld [vmem:[#allocation4] sm:$0xff] }
  0x18   : > { %733 = vmatmul.msk.bf16.vlgmr.msra.gmra.mxu0 %vm279_vm0, %v289_v4  ;;  %734 = vmatmul.msk.bf16.vlgmr.msra.gmra.mxu1 %vm279_vm0, %v290_v5  ;;  %v381_v50 = vld [vmem:[#allocation3] sm:$0xff] }
  0x19   : > { %v382_v54 = vld [vmem:[#allocation3 + $0x8] sm:$0xff] }
  0x1a   : > { %v397_v4 = vld [vmem:[#allocation4 + $0x8] sm:$0xff] }
  0x95   : > { %v309_v10 = vpop.f32.mrf.mxu0  ;;  %v328_v11 = vpop.f32.mrf.mxu1 }
  0x96   : > { %v332_v12 = vmul.f32 0.125, %v309_v10  ;;  %v333_v13 = vmul.f32 0.125, %v328_v11 }
  0x98   : > { %v346_v14 = vsel %vm343_vm2, -1e+30, %v332_v12  ;;  %v347_v16 = vsel %vm343_vm2, -1e+30, %v333_v13 }
  0x99   : > { %v351_v15 = vsel %vm350_vm3, %v346_v14, -inf  ;;  %v354_v19 = vsel %vm350_vm3, %v347_v16, -inf }
  0x9a   : > { %352 = vmax.xlane.f32.xlu0 %v351_v15 }
  0x9d   : > { %v311_v17 = vpop.f32.mrf.mxu0  ;;  %v330_v18 = vpop.f32.mrf.mxu1 }
  0xa2   : > { %355 = vmax.xlane.f32.xlu0 %v354_v19 }
 0x10d   : > { %v353_v23 = vpop.xlane.xlu0 %352 }
 0x10e   : > { %v357_v24 = vmax.f32 %v348_v22, %v353_v23 }
 0x110   : > { %v359_v25 = vsub.f32 %v348_v22, %v357_v24  ;;  %457 = vst.msk [vmem:[#allocation2] sm:$0xff] %vm274_vm1, %v357_v24  ;;  %367 = vperm.xlu1 %772, %v357_v24  }
 0x112   : > { %v361_v26 = vmul.f32 1.442695, %v359_v25 }
 0x114   : > { %775 = vpow2.f32 %v361_v26 }
 0x115   : > { %v356_v28 = vpop.xlane.xlu0 %355 }
 0x116   : > { %v358_v29 = vmax.f32 %v349_v27, %v356_v28 }
 0x118   : > { %v360_v30 = vsub.f32 %v349_v27, %v358_v29  ;;  %458 = vst.msk [vmem:[#allocation2 + $0x8] sm:$0xff] %vm274_vm1, %v358_v29  ;;  %372 = vperm.xlu1 %772, %v358_v29  }
 0x11a   : > { %v776_v31 = vpop.eup %775  ;;  %v363_v32 = vmul.f32 1.442695, %v360_v30  ;;  %v814_v30 = vmov 1983009808  }
 0x11b   : > { %400 = vperm.xlu0 %773, %v776_v31   ;;  %v383_v51 = vmul.f32 %v776_v31, %v381_v50  ;;  %v510_v31 = vunpack.c.l.s4 %v814_v30 }
 0x11c   : > { %777 = vpow2.f32 %v363_v32 }
 0x122   : > { %v778_v33 = vpop.eup %777 }
 0x123   : > { %405 = vperm.xlu1 %772, %v778_v33   ;;  %v384_v55 = vmul.f32 %v778_v33, %v382_v54  ;;  %v511_v33 = vunpack.c.0.s8 %v510_v31 }
 0x182   : > { %v368_v38 = vpop.permute.xlu1 %367 }
 0x183   : > { %v375_v39 = vsub.f32 %v346_v14, %v368_v38 }
 0x185   : > { %v377_v40 = vmul.f32 1.442695, %v375_v39 }
 0x187   : > { %779 = vpow2.f32 %v377_v40 }
 0x18a   : > { %v373_v41 = vpop.permute.xlu1 %372 }
 0x18b   : > { %v376_v42 = vsub.f32 %v347_v16, %v373_v41 }
 0x18d   : > { %v780_v43 = vpop.eup %779  ;;  %v379_v44 = vmul.f32 1.442695, %v376_v42  ;;  %v401_v60 = vpop.permute.xlu0 %400 }
 0x18e   : > { %v385_v45 = vsel %vm350_vm3, %v780_v43, 0.0  ;;  %v410_v46 = vpack.c.bf16 %v780_v43, %v780_v43  ;;  %v408_v61 = vmul.f32 %v401_v60, %v396_v59  ;;  %v533_v43 = vunpack.c.0.s8 %v532_v36 }
 0x18f   : > { %781 = vpow2.f32 %v379_v44  ;;  %386 = vadd.xlane.f32.xlu2 %v385_v45 }
 0x190   : > { %735 = vmatmul.msk.bf16.vlgmr.msra.gmra.mxu2 %vm350_vm3, %v410_v46 }
 0x195   : > { %v782_v47 = vpop.eup %781  ;;  %v406_v5 = vpop.permute.xlu1 %405 }
 0x196   : > { %v388_v48 = vsel %vm350_vm3, %v782_v47, 0.0  ;;  %v411_v49 = vpack.c.bf16 %v782_v47, %v782_v47  ;;  %v409_v9 = vmul.f32 %v406_v5, %v397_v4 }
 0x197   : > { %389 = vadd.xlane.f32.xlu2 %v388_v48 }
 0x198   : > { %736 = vmatmul.msk.bf16.vlgmr.msra.gmra.mxu3 %vm350_vm3, %v411_v49 }
 0x202   : > { %v387_v52 = vpop.xlane.xlu2 %386 }
 0x203   : > { %v391_v53 = vadd.f32 %v387_v52, %v383_v51 }
 0x205   : > { %394 = vst.msk [vmem:[#allocation3] sm:$0xff] %vm274_vm1, %v391_v53 }
 0x20a   : > { %v390_v56 = vpop.xlane.xlu2 %389 }
 0x20b   : > { %v392_v57 = vadd.f32 %v390_v56, %v384_v55 }
 0x20c   : > { %v464_v58 = vld [vmem:[#allocation3] sm:$0xff] }
 0x20d   : > { %395 = vst.msk [vmem:[#allocation3 + $0x8] sm:$0xff] %vm274_vm1, %v392_v57  ;;  %783 = vrcp.f32 %v464_v58  ;;  %v477_v6 = vand.u32 2147483648, %v464_v58  ;;  %v475_v8 = vand.u32 2147483647, %v464_v58  ;;  %vm471_vm6 = vweird.f32 %v464_v58 }
 0x20f   : > { %v478_v14 = vor.u32 1.1754944e-38, %v477_v6  ;;  %vm476_vm8 = vcmp.eq.f32.partialorder %v475_v8, 8.507059e+37 }
 0x213   : > { %v784_v62 = vpop.eup %783  ;;  %v430_v63 = vpop.f32.mrf.mxu2 }
 0x214   : > { %v453_v0 = vadd.f32 %v430_v63, %v408_v61  ;;  %v467_v1 = vmul.f32 %v784_v62, %v464_v58  ;;  %v465_v2 = vld [vmem:[#allocation3 + $0x8] sm:$0xff]  ;;  %vm472_vm5 = vweird.f32 %v784_v62 }
 0x215   : > { %785 = vrcp.f32 %v465_v2  ;;  %vm473_vm7 = vmor %vm471_vm6, %vm472_vm5  ;;  %v491_v20 = vand.u32 2147483648, %v465_v2  ;;  %v489_v22 = vand.u32 2147483647, %v465_v2  ;;  %vm485_vm10 = vweird.f32 %v465_v2 }
 0x216   : > { %455 = vst.msk [vmem:[#allocation4] sm:$0xff] %vm279_vm0, %v453_v0  ;;  %v468_v3 = vsub.f32 1.0, %v467_v1 }
 0x217   : > { %v492_v25 = vor.u32 1.1754944e-38, %v491_v20  ;;  %vm490_vm12 = vcmp.eq.f32.partialorder %v489_v22, 8.507059e+37 }
 0x218   : > { %v469_v7 = vmul.f32 %v784_v62, %v468_v3 }
 0x21a   : > { %v470_v10 = vadd.f32 %v784_v62, %v469_v7 }
 0x21b   : > { %v786_v11 = vpop.eup %785  ;;  %v432_v12 = vpop.f32.mrf.mxu2 }
 0x21c   : > { %v449_v13 = vpop.f32.mrf.mxu3  ;;  %v474_v16 = vsel %vm473_vm7, %v784_v62, %v470_v10  ;;  %v481_v17 = vmul.f32 %v786_v11, %v465_v2  ;;  %vm486_vm9 = vweird.f32 %v786_v11 }
 0x21d   : > { %v454_v15 = vadd.f32 %v449_v13, %v409_v9  ;;  %v479_v18 = vsel %vm476_vm8, %v478_v14, %v474_v16  ;;  %vm487_vm11 = vmor %vm485_vm10, %vm486_vm9  ;;  %v462_v29 = vld [vmem:[#allocation4] sm:$0xff] }
 0x21e   : > { %496 = vperm.xlu2 %774, %v479_v18   ;;  %v482_v19 = vsub.f32 1.0, %v481_v17 }
 0x21f   : > { %456 = vst.msk [vmem:[#allocation4 + $0x8] sm:$0xff] %vm279_vm0, %v454_v15 }
 0x220   : > { %v483_v21 = vmul.f32 %v786_v11, %v482_v19 }
 0x222   : > { %v484_v23 = vadd.f32 %v786_v11, %v483_v21 }
 0x224   : > { %v451_v24 = vpop.f32.mrf.mxu3  ;;  %v488_v26 = vsel %vm487_vm11, %v786_v11, %v484_v23 }
 0x225   : > { %v493_v27 = vsel %vm490_vm12, %v492_v25, %v488_v26 }
 0x226   : > { %501 = vperm.xlu1 %772, %v493_v27   ;;  %v463_v39 = vld [vmem:[#allocation4 + $0x8] sm:$0xff] }
 0x278   : > { %v497_v28 = vpop.permute.xlu2 %496 }
 0x279   : > { %v504_v32 = vmul.f32 %v497_v28, %v462_v29 }
 0x27b   : > { %v506_v34 = vrot.slane %v504_v32, 4  ;;  %v512_v38 = vperm.slane %v504_v32, %v511_v33 }
 0x27d   : > { %v508_v37 = vsel %vm507_vm13, 0.0, %v506_v34  ;;  %v529_v44 = vrot.slane %v512_v38, 4 }
 0x27e   : > { %v516_v42 = vperm.slane %v508_v37, %v511_v33 }
 0x280   : > { %v541_v50 = vrot.slane %v516_v42, 4 }
 0x298   : > { %v502_v40 = vpop.permute.xlu1 %501 }
 0x299   : > { %v505_v41 = vmul.f32 %v502_v40, %v463_v39 }
 0x29b   : > { %v517_v45 = vrot.slane %v505_v41, 4  ;;  %v522_v46 = vperm.slane %v505_v41, %v511_v33 }
 0x29d   : > { %v518_v47 = vsel %vm507_vm13, 0.0, %v517_v45  ;;  %v527_v48 = vrot.slane %v522_v46, 4  ;;  %v530_v49 = vsel %vm507_vm13, %v522_v46, %v529_v44 }
 0x29e   : > { %v526_v51 = vperm.slane %v518_v47, %v511_v33  ;;  %v538_v52 = vperm.slane %v530_v49, %v533_v43 }
 0x29f   : > { %v528_v53 = vsel %vm507_vm13, %v527_v48, %v512_v38 }
 0x2a0   : > { %v534_v54 = vperm.slane %v528_v53, %v533_v43  ;;  %v539_v55 = vrot.slane %v526_v51, 4  ;;  %v542_v56 = vsel %vm507_vm13, %v526_v51, %v541_v50  ;;  %v553_v57 = vrot.slane %v538_v52, 4 }
 0x2a1   : > { %v550_v58 = vperm.slane %v542_v56, %v533_v43 }
 0x2a2   : > { %v540_v59 = vsel %vm507_vm13, %v539_v55, %v516_v42  ;;  %v551_v60 = vrot.slane %v534_v54, 4  ;;  %v554_v61 = vsel %vm507_vm13, 0.0, %v553_v57  ;;  %v559_v4 = vsel %vm507_vm13, %v553_v57, %v534_v54 }
 0x2a3   : > { %v546_v62 = vperm.slane %v540_v59, %v533_v43  ;;  %v557_v63 = vrot.slane %v550_v58, 4  ;;  %v564_v0 = vrot.slane %v554_v61, 4  ;;  %v563_v9 = vperm.slane %v559_v4, %v511_v33 }
 0x2a4   : > { %v552_v1 = vsel %vm507_vm13, 0.0, %v551_v60 }
 0x2a5   : > { %v555_v2 = vrot.slane %v546_v62, 4  ;;  %v558_v3 = vsel %vm507_vm13, 0.0, %v557_v63  ;;  %v565_v5 = vsel %vm507_vm13, %v564_v0, %v552_v1  ;;  %v570_v10 = vsel %vm507_vm13, %v557_v63, %v546_v62 }
 0x2a6   : > { %v575_v6 = vrot.slane %v558_v3, 4  ;;  %v569_v7 = vperm.slane %v565_v5, %v511_v33  ;;  %v574_v15 = vperm.slane %v570_v10, %v511_v33 }
 0x2a7   : > { %v556_v8 = vsel %vm507_vm13, 0.0, %v555_v2 }
 0x2a8   : > { %v576_v11 = vsel %vm507_vm13, %v575_v6, %v556_v8  ;;  %v581_v12 = vrot.slane %v569_v7, 4 }
 0x2a9   : > { %v580_v13 = vperm.slane %v576_v11, %v511_v33 }
 0x2aa   : > { %v582_v14 = vsel %vm507_vm13, %v581_v12, %v563_v9 }
 0x2ab   : > { %v586_v16 = vperm.slane %v582_v14, %v533_v43  ;;  %v587_v17 = vrot.slane %v580_v13, 4 }
 0x2ad   : > { %v588_v18 = vsel %vm507_vm13, %v587_v17, %v574_v15  ;;  %v595_v19 = vrot.slane %v586_v16, 4 }
 0x2ae   : > { %v592_v20 = vperm.slane %v588_v18, %v533_v43 }
 0x2b0   : > { %v596_v21 = vsel %vm507_vm13, %v592_v20, %v595_v19  ;;  %v593_v22 = vrot.slane %v592_v20, 4 }
 0x2b1   : > { %598 = vrot.lane.b32.xlu1 %v596_v21, %s816_s26 }
 0x2b2   : > { %v594_v23 = vsel %vm507_vm13, %v593_v22, %v586_v16 }
 0x323   : > { %v599_v24 = vpop.permute.xlu1 %598 }
 0x324   : > { %v602_v25 = vsel %vm279_vm0, %v594_v23, %v599_v24 }
 0x325   : > { %v603_v26 = vpack.c.bf16 %v602_v25, %v602_v25 }
 0x327   : > { %604 = vst [vmem:[%s268_s30] sm:$0xf] %v603_v26 }
 0x328 PF: > { %s13_s14 = sadd.s32 1, %s809_s14   ;;  %s930_s12 = smov %s805_s13 }
 0x329   : > { %p10_p5 = scmp.ge.s32.totalorder %s13_s14, 4   ;;  %s931_s13 = smov %s933_s15 }
 0x32b   :  { %12 = sbr.rel (!%p10_p5) target bundleno = 2 (0x2), region = 80 }

// kernel: gpt2_forward.7
= control target key start
LH: loop header
LB: loop body
LE: loop exit
PB: predicated region body
PF: predicated region fallthrough
CT: control target
= control target key end

     0   :  { %13 = vsyncpa [#allocation3], 0  ;;  %s1825_s0 = inlined_call_operand.vmem [shape: f32[2,8,128], index: 0, kind: input, shape index: {}]   ;;  %s1826_s1 = inlined_call_operand.hbm [shape: f32[1,128], index: 1, kind: input, shape index: {}]   ;;  %s1827_s2 = inlined_call_operand.hbm [shape: f32[1,128], index: 2, kind: input, shape index: {}]   ;;  %s1828_s3 = inlined_call_operand.hbm [shape: bf16[128,384], index: 3, kind: input, shape index: {}]   ;;  %s1829_s4 = inlined_call_operand.hbm [shape: f32[1,384], index: 4, kind: input, shape index: {}]   ;;  %s1830_s5 = inlined_call_operand.vmem [shape: bf16[2,2,8,64], index: 5, kind: output, shape index: {0}]   ;;  %s1831_s6 = inlined_call_operand.vmem [shape: bf16[2,2,8,64], index: 6, kind: output, shape index: {1}]   ;;  %s1832_s7 = inlined_call_operand.vmem [shape: bf16[2,2,8,64], index: 7, kind: output, shape index: {2}]  }
   0x1   :  { %14 = vsyncpa [#allocation5], 0 }
   0x2   :  { %15 = vsyncpa [#allocation8], 0  ;;  %s1600_s24 = smov 0   ;;  %s1602_s25 = smov 0  }
   0x3   :  { %s1604_s26 = smov 0  }
   0x4 LB: > { %s258_s29 = sshll.u32 %s1827_s2, 4  ;;  %s1167_s30 = sadd.s32 4294967295, %s1548_s26   ;;  %s1548_s26 = sphi %s1604_s26, %s21_s26   ;;  %s1544_s25 = sphi %s1602_s25, %s1837_s25   ;;  %s1540_s24 = sphi %s1600_s24, %s1836_s24   ;;  %s259_s29 = int_to_ptr.hbm [resolvable:$true] %s258_s29 }
   0x5   : > { %p1169_p0 = scmp.ge.s32.totalorder %s1548_s26, 1  ;;  %p234_p1 = scmp.lt.s32.totalorder %s1548_s26, 3 }
   0x6   : > { %p1621_p2 = scmp.eq.s32.totalorder %s1167_s30, 0  ;;  %s1550_s10 = smov [#allocation4]  }
   0x7   : > { %p1625_p3 = pnand %p1169_p0, %p234_p1  ;;  %s260_s11 = sshll.u32 %s1550_s10, 4  ;;  %s261_s11 = int_to_ptr.vmem [resolvable:$true] %s260_s11 }
   0x8   : > { %s33_s13 = sadd.s32 1, %s1544_s25  ;;  %s246_s16 = sshll.u32 %s1826_s1, 4  ;;  %s247_s16 = int_to_ptr.hbm [resolvable:$true] %s246_s16 }
   0x9   : > { %p1328_p4 = pneg %p1625_p3  ;;  %p35_p6 = scmp.ge.s32.totalorder %s33_s13, 2 }
   0xa   : > { %s269_s19 = sshll.u32 %s1828_s3, 4  ;;  %s1551_s20 = smov [#allocation2]   ;;  %s270_s19 = int_to_ptr.hbm [resolvable:$true] %s269_s19 }
   0xb   : > { %p1633_p5 = pnand %p1621_p2, %p1328_p4  ;;  %s1839_s13 = smov (%p35_p6, %s33_s13), 0 }
   0xc   : > { %s248_s21 = sshll.u32 %s1551_s20, 4  ;;  %s1552_s22 = smov [#allocation6]   ;;  %s249_s21 = int_to_ptr.vmem [resolvable:$true] %s248_s21 }
   0xd   : > { %1334 = dma.hbm_to_vmem [thread:$0]  (!%p1633_p5), %s259_s29, 16, %s261_s11, [#allocation5]  }
   0xe   : > { %1331 = dma.hbm_to_vmem [thread:$0]  (!%p1633_p5), %s247_s16, 16, %s249_s21, [#allocation3]  }
   0xf   : > { %s271_s23 = sshll.u32 %s1552_s22, 4  ;;  %s1553_s27 = smov 192   ;;  %s272_s23 = int_to_ptr.vmem [resolvable:$true] %s271_s23 }
  0x10   : > { %s1554_s28 = smov 12   ;;  %s284_s10 = sshll.u32 %s1829_s4, 4  ;;  %s285_s10 = int_to_ptr.hbm [resolvable:$true] %s284_s10 }
  0x11   : > { %1337 = dma.hbm_to_vmem [thread:$0]  (!%p1633_p5), %s270_s19, 3072, %s272_s23, [#allocation5], %s1553_s27, %s1553_s27, %s1554_s28  }
  0x12   : > { %s1555_s11 = smov [#allocation7]   ;;  %309 = sbr.rel (%p1625_p3) target bundleno = 595 (0x253), region = 40 }
  0x13   : > { %s286_s14 = sshll.u32 %s1555_s11, 4  ;;  %s287_s14 = int_to_ptr.vmem [resolvable:$true] %s286_s14 }
  0x14   : > { %1340 = dma.hbm_to_vmem [thread:$0]  (!%p1633_p5), %s285_s10, 48, %s287_s14, [#allocation8]  }
  0x17   : > { %1527 = dma.done.wait (%p1621_p2), [#allocation3], 16  }
  0x18   : > { %1529 = vsyncadd (%p1621_p2), [#allocation3], 4294967280 }
  0x19   : > { %1531 = dma.done.wait (%p1621_p2), [#allocation5], 3088  }
  0x1a   : > { %1533 = vsyncadd (%p1621_p2), [#allocation5], 4294964208 }
  0x1b   : > { %1535 = dma.done.wait (%p1621_p2), [#allocation8], 48  }
  0x1c   : > { %1537 = vsyncadd (%p1621_p2), [#allocation8], 4294967248  ;;  %p378_p7 = scmp.lt.s32.totalorder %s1540_s24, 1  ;;  %v1556_v1 = vmov 128.0   ;;  %v1273_v2 = vld [vmem:[#allocation6 + $0xa8] sm:$0xf] }
  0x1d   : > { %1390 = vrcp.f32 %v1556_v1  ;;  %v1310_v3 = vld [vmem:[#allocation6 + $0xb0] sm:$0xf0]  ;;  %v1309_v4 = vld [vmem:[#allocation6 + $0xac] sm:$0xf]  ;;  %v1275_v6 = vld [vmem:[#allocation6 + $0xb4] sm:$0xf0] }
  0x1e   : > { %s1841_s24 = smov (!%p378_p7, %s1540_s24), 1  ;;  %v1274_v5 = vor.u32 %v1310_v3, %v1273_v2  ;;  %v1281_v7 = vld [vmem:[#allocation6 + $0xb0] sm:$0xf]  ;;  %v1311_v8 = vld [vmem:[#allocation6 + $0xb8] sm:$0xf0]  ;;  %v1278_v9 = vor.u32 %v1309_v4, %v1275_v6  ;;  %vm660_vm4 = vcmask 1047556  }
  0x1f   : > { %s1673_s9 = sshll.u32 %s1841_s24, 3  ;;  %v1282_v10 = vor.u32 %v1311_v8, %v1281_v7  ;;  %v1261_v21 = vld [vmem:[#allocation6 + $0x90] sm:$0xf]  ;;  %v1307_v22 = vld [vmem:[#allocation6 + $0x98] sm:$0xf0]  ;;  %s1557_s24 = smov 64  }
  0x20   : > { %s384_s16 = scalar_lea.vmem %s1825_s0, %s1673_s9  ;;  %616 = vmatpush.bf16.msra.mxu0 %v1274_v5  ;;  %629 = vmatpush.bf16.msra.mxu1 %v1278_v9  ;;  %v1306_v23 = vld [vmem:[#allocation6 + $0x94] sm:$0xf]  ;;  %v1262_v24 = vor.u32 %v1307_v22, %v1261_v21  ;;  %v1263_v25 = vld [vmem:[#allocation6 + $0x9c] sm:$0xf0]  ;;  %v1269_v26 = vld [vmem:[#allocation6 + $0x98] sm:$0xf]  ;;  %s400_s18 = scalar_lea.vmem %s1831_s6, %s1673_s9 }
  0x21   : > { %v409_v0 = vld [vmem:[%s384_s16] sm:$0xff]  ;;  %642 = vmatpush.bf16.msra.mxu2 %v1282_v10  ;;  %v1308_v27 = vld [vmem:[#allocation6 + $0xa0] sm:$0xf0]  ;;  %v1266_v28 = vor.u32 %v1306_v23, %v1263_v25  ;;  %v1249_v30 = vld [vmem:[#allocation6 + $0x78] sm:$0xf]  ;;  %vm752_vm5 = vcmask 519168   ;;  %s392_s21 = scalar_lea.vmem %s1830_s5, %s1673_s9  ;;  %s408_s27 = scalar_lea.vmem %s1832_s7, %s1673_s9 }
  0x22   : > { %412 = vadd.xlane.f32.xlu0 %v409_v0  ;;  %v1270_v29 = vor.u32 %v1308_v27, %v1269_v26  ;;  %v1304_v31 = vld [vmem:[#allocation6 + $0x80] sm:$0xf0]  ;;  %v1303_v32 = vld [vmem:[#allocation6 + $0x7c] sm:$0xf]  ;;  %v1251_v34 = vld [vmem:[#allocation6 + $0x84] sm:$0xf0] }
  0x23   : > { %v1391_v11 = vpop.eup %1390  ;;  %v1250_v33 = vor.u32 %v1304_v31, %v1249_v30  ;;  %v1257_v35 = vld [vmem:[#allocation6 + $0x80] sm:$0xf]  ;;  %v1305_v36 = vld [vmem:[#allocation6 + $0x88] sm:$0xf0]  ;;  %v1254_v37 = vor.u32 %v1303_v32, %v1251_v34  ;;  %v1300_v41 = vld [vmem:[#allocation6 + $0x64] sm:$0xf] }
  0x24   : > { %v415_v12 = vmul.f32 128.0, %v1391_v11  ;;  %vm419_vm0 = vweird.f32 %v1391_v11  ;;  %617 = vmatpush.bf16.msra.mxu0 %v1262_v24  ;;  %630 = vmatpush.bf16.msra.mxu1 %v1266_v28  ;;  %v1258_v38 = vor.u32 %v1305_v36, %v1257_v35  ;;  %v1237_v39 = vld [vmem:[#allocation6 + $0x60] sm:$0xf]  ;;  %v1301_v40 = vld [vmem:[#allocation6 + $0x68] sm:$0xf0] }
  0x25   : > { %643 = vmatpush.bf16.msra.mxu2 %v1270_v29  ;;  %v1238_v42 = vor.u32 %v1301_v40, %v1237_v39  ;;  %v1239_v43 = vld [vmem:[#allocation6 + $0x6c] sm:$0xf0]  ;;  %v1245_v44 = vld [vmem:[#allocation6 + $0x68] sm:$0xf]  ;;  %v1302_v45 = vld [vmem:[#allocation6 + $0x70] sm:$0xf0] }
  0x26   : > { %v416_v13 = vsub.f32 1.0, %v415_v12  ;;  %v1242_v46 = vor.u32 %v1300_v41, %v1239_v43  ;;  %v1246_v47 = vor.u32 %v1302_v45, %v1245_v44  ;;  %v1225_v48 = vld [vmem:[#allocation6 + $0x48] sm:$0xf]  ;;  %v1298_v49 = vld [vmem:[#allocation6 + $0x50] sm:$0xf0] }
  0x27   : > { %v1297_v50 = vld [vmem:[#allocation6 + $0x4c] sm:$0xf]  ;;  %v1226_v51 = vor.u32 %v1298_v49, %v1225_v48  ;;  %v1227_v52 = vld [vmem:[#allocation6 + $0x54] sm:$0xf0]  ;;  %v1233_v53 = vld [vmem:[#allocation6 + $0x50] sm:$0xf] }
  0x28   : > { %v417_v14 = vmul.f32 %v1391_v11, %v416_v13  ;;  %618 = vmatpush.bf16.msra.mxu0 %v1250_v33  ;;  %631 = vmatpush.bf16.msra.mxu1 %v1254_v37  ;;  %v1299_v54 = vld [vmem:[#allocation6 + $0x58] sm:$0xf0]  ;;  %v1230_v55 = vor.u32 %v1297_v50, %v1227_v52  ;;  %v1213_v57 = vld [vmem:[#allocation6 + $0x30] sm:$0xf]  ;;  %v1294_v59 = vld [vmem:[#allocation6 + $0x34] sm:$0xf] }
  0x29   : > { %644 = vmatpush.bf16.msra.mxu2 %v1258_v38  ;;  %v1234_v56 = vor.u32 %v1299_v54, %v1233_v53  ;;  %v1295_v58 = vld [vmem:[#allocation6 + $0x38] sm:$0xf0]  ;;  %v1215_v61 = vld [vmem:[#allocation6 + $0x3c] sm:$0xf0]  ;;  %v1221_v62 = vld [vmem:[#allocation6 + $0x38] sm:$0xf] }
  0x2a   : > { %v418_v15 = vadd.f32 %v1391_v11, %v417_v14  ;;  %v1214_v60 = vor.u32 %v1295_v58, %v1213_v57  ;;  %v1296_v63 = vld [vmem:[#allocation6 + $0x40] sm:$0xf0]  ;;  %v1201_v2 = vld [vmem:[#allocation6 + $0x18] sm:$0xf]  ;;  %v1291_v4 = vld [vmem:[#allocation6 + $0x1c] sm:$0xf] }
  0x2b   : > { %v1222_v1 = vor.u32 %v1296_v63, %v1221_v62  ;;  %v1292_v3 = vld [vmem:[#allocation6 + $0x20] sm:$0xf0]  ;;  %v1203_v6 = vld [vmem:[#allocation6 + $0x24] sm:$0xf0]  ;;  %v1209_v7 = vld [vmem:[#allocation6 + $0x20] sm:$0xf] }
  0x2c   : > { %v1679_v16 = vsel %vm419_vm0, %v1391_v11, %v418_v15  ;;  %619 = vmatpush.bf16.msra.mxu0 %v1238_v42  ;;  %632 = vmatpush.bf16.msra.mxu1 %v1242_v46  ;;  %v1202_v5 = vor.u32 %v1292_v3, %v1201_v2  ;;  %v1293_v8 = vld [vmem:[#allocation6 + $0x28] sm:$0xf0]  ;;  %v1206_v9 = vor.u32 %v1291_v4, %v1203_v6  ;;  %v1189_v11 = vld [vmem:[#allocation6] sm:$0xf]  ;;  %v1288_v13 = vld [vmem:[#allocation6 + $0x4] sm:$0xf] }
  0x2d   : > { %645 = vmatpush.bf16.msra.mxu2 %v1246_v47  ;;  %v1210_v10 = vor.u32 %v1293_v8, %v1209_v7  ;;  %v1289_v12 = vld [vmem:[#allocation6 + $0x8] sm:$0xf0]  ;;  %v1191_v15 = vld [vmem:[#allocation6 + $0xc] sm:$0xf0]  ;;  %v1388_v31 = vld [vmem:[#allocation2] ss:$0 sm:$0xff] }
  0x2e   : > { %v1190_v14 = vor.u32 %v1289_v12, %v1189_v11  ;;  %v1389_v34 = vld [vmem:[#allocation4] ss:$0 sm:$0xff]  ;;  %v1558_v50 = vmov 1983009808   ;;  %v1559_v57 = vmov 1934713408  }
  0x2f   : > { %v685_v58 = vunpack.c.l.s4 %v1559_v57 }
  0x30   : > { %620 = vmatpush.bf16.msra.mxu0 %v1226_v51  ;;  %633 = vmatpush.bf16.msra.mxu1 %v1230_v55  ;;  %v663_v51 = vunpack.c.l.s4 %v1558_v50 }
  0x31   : > { %646 = vmatpush.bf16.msra.mxu2 %v1234_v56 }
  0x32   : > { %v1688_v53 = vunpack.c.0.s8 %v663_v51 }
  0x34   : > { %621 = vmatpush.bf16.msra.mxu0 %v1214_v60 }
  0x35   : > { %647 = vmatpush.bf16.msra.mxu2 %v1222_v1 }
  0x38   : > { %622 = vmatpush.bf16.msra.mxu0 %v1202_v5  ;;  %v1699_v5 = vunpack.c.0.s8 %v685_v58 }
  0x39   : > { %648 = vmatpush.bf16.msra.mxu2 %v1210_v10 }
  0x3c   : > { %623 = vmatpush.bf16.msra.mxu0 %v1190_v14 }
  0x95   : > { %v413_v17 = vpop.xlane.xlu0 %412 }
  0x96   : > { %v421_v18 = vmul.f32 %v1679_v16, %v413_v17  ;;  %v1197_v17 = vld [vmem:[#allocation6 + $0x8] sm:$0xf] }
  0x98   : > { %v1682_v19 = vsub.f32 %v409_v0, %v421_v18  ;;  %v1218_v0 = vor.u32 %v1294_v59, %v1215_v61  ;;  %v1290_v18 = vld [vmem:[#allocation6 + $0x10] sm:$0xf0] }
  0x99   : > { %v1198_v21 = vor.u32 %v1290_v18, %v1197_v17 }
  0x9a   : > { %v423_v20 = vmul.f32 %v1682_v19, %v1682_v19  ;;  %634 = vmatpush.bf16.msra.mxu1 %v1218_v0 }
  0x9b   : > { %649 = vmatpush.bf16.msra.mxu2 %v1198_v21 }
  0x9c   : > { %424 = vadd.xlane.f32.xlu0 %v423_v20  ;;  %v1194_v20 = vor.u32 %v1288_v13, %v1191_v15 }
  0x9e   : > { %635 = vmatpush.bf16.msra.mxu1 %v1206_v9 }
  0xa2   : > { %636 = vmatpush.bf16.msra.mxu1 %v1194_v20 }
 0x10f   : > { %v425_v22 = vpop.xlane.xlu0 %424 }
 0x110   : > { %v426_v23 = vmul.f32 %v425_v22, %v1679_v16  ;;  %v480_v16 = vld [vmem:[#allocation7] sm:$0x7] }
 0x111   : > { %v482_v38 = vperm.slane %v480_v16, 0  ;;  %v483_v39 = vperm.slane %v480_v16, 1  ;;  %v484_v46 = vperm.slane %v480_v16, 2 }
 0x112   : > { %v427_v24 = vadd.f32 1e-05, %v426_v23 }
 0x114   : > { %1392 = vrsqrt.f32 %v427_v24  ;;  %vm434_vm2 = vweird.f32 %v427_v24 }
 0x11a   : > { %v1393_v25 = vpop.eup %1392 }
 0x11b   : > { %v429_v26 = vmul.f32 %v1393_v25, %v427_v24  ;;  %vm435_vm1 = vweird.f32 %v1393_v25 }
 0x11c   : > { %vm436_vm3 = vmor %vm434_vm2, %vm435_vm1 }
 0x11d   : > { %v430_v27 = vmul.f32 %v1393_v25, %v429_v26 }
 0x11f   : > { %v431_v28 = vmul.f32 0.5, %v430_v27 }
 0x121   : > { %v432_v29 = vsub.f32 1.5, %v431_v28 }
 0x123   : > { %v433_v30 = vmul.f32 %v1393_v25, %v432_v29 }
 0x125   : > { %v437_v32 = vsel %vm436_vm3, %v1393_v25, %v433_v30 }
 0x126   : > { %v438_v33 = vmul.f32 %v437_v32, %v1682_v19 }
 0x128   : > { %v442_v35 = vmul.f32 %v1388_v31, %v438_v33 }
 0x12a   : > { %v446_v36 = vadd.f32 %v1389_v34, %v442_v35 }
 0x12c   : > { %v447_v37 = vpack.c.bf16 %v446_v36, %v446_v36 }
 0x12e   : > { %624 = vmatmul.bf16.vlgmr.msra.gmra.mxu0 %v447_v37  ;;  %637 = vmatmul.bf16.vlgmr.msra.gmra.mxu1 %v447_v37 }
 0x12f   : > { %650 = vmatmul.bf16.vlgmr.msra.gmra.mxu2 %v447_v37 }
 0x1ab   : > { %v625_v40 = vpop.f32.mrf.mxu0  ;;  %v638_v41 = vpop.f32.mrf.mxu1 }
 0x1ac   : > { %v626_v42 = vadd.f32 %v625_v40, %v482_v38  ;;  %v639_v43 = vadd.f32 %v638_v41, %v483_v39 }
 0x1ae   : > { %v1383_v44 = vpack.i.bf16 %v639_v43, %v626_v42  ;;  %v759_v52 = vrot.slane %v639_v43, 4  ;;  %v659_v54 = vrot.slane %v626_v42, 4  ;;  %v764_v56 = vperm.slane %v639_v43, %v1688_v53 }
 0x1af   : > { %v665_v60 = vperm.slane %v626_v42, %v1688_v53 }
 0x1b0   : > { %1384 = vrot.lane.b32.xlu1 %v1383_v44, %s1557_s24  ;;  %v760_v55 = vsel %vm660_vm4, 0.0, %v759_v52  ;;  %v661_v59 = vsel %vm660_vm4, 0.0, %v659_v54  ;;  %v781_v3 = vrot.slane %v764_v56, 4 }
 0x1b1   : > { %v768_v61 = vperm.slane %v760_v55, %v1688_v53  ;;  %v669_v2 = vperm.slane %v661_v59, %v1688_v53  ;;  %v682_v10 = vrot.slane %v665_v60, 4 }
 0x1b2   : > { %v651_v45 = vpop.f32.mrf.mxu2 }
 0x1b3   : > { %v627_v19 = vpop.f32.mrf.mxu0  ;;  %v640_v47 = vpop.f32.mrf.mxu1  ;;  %v652_v48 = vadd.f32 %v651_v45, %v484_v46  ;;  %v793_v11 = vrot.slane %v768_v61, 4  ;;  %v694_v23 = vrot.slane %v669_v2, 4 }
 0x1b5   : > { %v857_v62 = vrot.slane %v652_v48, 4  ;;  %v1697_v4 = vperm.slane %v652_v48, %v1688_v53 }
 0x1b7   : > { %v858_v12 = vsel %vm660_vm4, 0.0, %v857_v62  ;;  %v879_v24 = vrot.slane %v1697_v4, 4 }
 0x1b8   : > { %854 = vrot.lane.b32.xlu1 %v652_v48, %s1557_s24  ;;  %v1716_v31 = vperm.slane %v858_v12, %v1688_v53 }
 0x1ba   : > { %v653_v49 = vpop.f32.mrf.mxu2 }
 0x222   : > { %v1385_v63 = vpop.permute.xlu1 %1384 }
 0x223   : > { %v1387_v0 = vunpack.i.h.bf16 %v1385_v63  ;;  %v1386_v1 = vunpack.i.l.bf16 %v1385_v63 }
 0x225   : > { %v769_v6 = vrot.slane %v1387_v0, 4  ;;  %v774_v7 = vperm.slane %v1387_v0, %v1688_v53  ;;  %v670_v8 = vrot.slane %v1386_v1, 4  ;;  %v675_v9 = vperm.slane %v1386_v1, %v1688_v53 }
 0x227   : > { %v770_v13 = vsel %vm660_vm4, 0.0, %v769_v6  ;;  %v779_v14 = vrot.slane %v774_v7, 4  ;;  %v782_v15 = vsel %vm660_vm4, %v774_v7, %v781_v3  ;;  %v671_v17 = vsel %vm660_vm4, 0.0, %v670_v8 }
 0x228   : > { %v778_v18 = vperm.slane %v770_v13, %v1688_v53  ;;  %v790_v20 = vperm.slane %v782_v15, %v1699_v5  ;;  %v679_v21 = vperm.slane %v671_v17, %v1688_v53  ;;  %v680_v22 = vrot.slane %v675_v9, 4 }
 0x229   : > { %v780_v25 = vsel %vm660_vm4, %v779_v14, %v764_v56  ;;  %v683_v26 = vsel %vm660_vm4, %v675_v9, %v682_v10 }
 0x22a   : > { %v786_v27 = vperm.slane %v780_v25, %v1699_v5  ;;  %v791_v28 = vrot.slane %v778_v18, 4  ;;  %v794_v29 = vsel %vm660_vm4, %v778_v18, %v793_v11  ;;  %v805_v30 = vrot.slane %v790_v20, 4  ;;  %v855_v49 = vpop.permute.xlu1 %854 }
 0x22b   : > { %v802_v32 = vperm.slane %v794_v29, %v1699_v5  ;;  %v681_v33 = vsel %vm660_vm4, %v680_v22, %v665_v60  ;;  %v692_v34 = vrot.slane %v679_v21, 4  ;;  %v691_v41 = vperm.slane %v683_v26, %v1699_v5 }
 0x22c   : > { %v792_v35 = vsel %vm660_vm4, %v791_v28, %v768_v61  ;;  %v803_v36 = vrot.slane %v786_v27, 4  ;;  %v806_v37 = vsel %vm660_vm4, 0.0, %v805_v30  ;;  %v811_v16 = vsel %vm660_vm4, %v805_v30, %v786_v27 }
 0x22d   : > { %v798_v38 = vperm.slane %v792_v35, %v1699_v5  ;;  %v809_v39 = vrot.slane %v802_v32, 4  ;;  %v816_v40 = vrot.slane %v806_v37, 4  ;;  %v687_v43 = vperm.slane %v681_v33, %v1699_v5 }
 0x22e   : > { %v804_v42 = vsel %vm660_vm4, 0.0, %v803_v36  ;;  %v693_v44 = vsel %vm660_vm4, %v692_v34, %v669_v2  ;;  %v695_v45 = vsel %vm660_vm4, %v679_v21, %v694_v23  ;;  %v815_v47 = vperm.slane %v811_v16, %v1688_v53 }
 0x22f   : > { %v807_v46 = vrot.slane %v798_v38, 4  ;;  %v810_v19 = vsel %vm660_vm4, 0.0, %v809_v39  ;;  %v817_v48 = vsel %vm660_vm4, %v816_v40, %v804_v42  ;;  %v822_v51 = vsel %vm660_vm4, %v809_v39, %v798_v38 }
 0x230   : > { %v821_v50 = vperm.slane %v817_v48, %v1688_v53  ;;  %v827_v52 = vrot.slane %v810_v19, 4  ;;  %v699_v54 = vperm.slane %v693_v44, %v1699_v5  ;;  %v703_v56 = vperm.slane %v695_v45, %v1699_v5 }
 0x231   : > { %v808_v55 = vsel %vm660_vm4, 0.0, %v807_v46  ;;  %v704_v57 = vrot.slane %v687_v43, 4  ;;  %v706_v58 = vrot.slane %v691_v41, 4  ;;  %v867_v62 = vrot.slane %v855_v49, 4 }
 0x232   : > { %v828_v59 = vsel %vm660_vm4, %v827_v52, %v808_v55  ;;  %v833_v60 = vrot.slane %v821_v50, 4  ;;  %v708_v61 = vrot.slane %v699_v54, 4  ;;  %v710_v2 = vrot.slane %v703_v56, 4 }
 0x233   : > { %v832_v63 = vperm.slane %v828_v59, %v1688_v53  ;;  %v705_v0 = vsel %vm660_vm4, 0.0, %v704_v57  ;;  %v707_v1 = vsel %vm660_vm4, 0.0, %v706_v58  ;;  %v826_v3 = vperm.slane %v822_v51, %v1688_v53 }
 0x234   : > { %v834_v6 = vsel %vm660_vm4, %v833_v60, %v815_v47  ;;  %v709_v7 = vsel %vm660_vm4, 0.0, %v708_v61  ;;  %v717_v8 = vrot.slane %v707_v1, 4  ;;  %v711_v11 = vsel %vm660_vm4, 0.0, %v710_v2 }
 0x235   : > { %v838_v9 = vperm.slane %v834_v6, %v1699_v5  ;;  %v839_v10 = vrot.slane %v832_v63, 4  ;;  %v712_v12 = vsel %vm660_vm4, %v706_v58, %v687_v43  ;;  %v723_v14 = vsel %vm660_vm4, %v710_v2, %v699_v54 }
 0x236   : > { %v718_v13 = vsel %vm660_vm4, %v717_v8, %v705_v0  ;;  %v728_v15 = vrot.slane %v711_v11, 4  ;;  %v868_v17 = vsel %vm660_vm4, 0.0, %v867_v62  ;;  %v891_v18 = vrot.slane %v1716_v31, 4 }
 0x237   : > { %v840_v20 = vsel %vm660_vm4, %v839_v10, %v826_v3  ;;  %v847_v21 = vrot.slane %v838_v9, 4  ;;  %v722_v22 = vperm.slane %v718_v13, %v1688_v53  ;;  %v872_v26 = vperm.slane %v855_v49, %v1688_v53 }
 0x238   : > { %v844_v23 = vperm.slane %v840_v20, %v1699_v5  ;;  %v729_v25 = vsel %vm660_vm4, %v728_v15, %v709_v7  ;;  %v876_v27 = vperm.slane %v868_v17, %v1688_v53  ;;  %v716_v28 = vperm.slane %v712_v12, %v1688_v53 }
 0x239   : > { %v727_v29 = vperm.slane %v723_v14, %v1688_v53  ;;  %v733_v30 = vperm.slane %v729_v25, %v1688_v53  ;;  %v734_v32 = vrot.slane %v722_v22, 4  ;;  %v877_v35 = vrot.slane %v872_v26, 4 }
 0x23a   : > { %v845_v33 = vrot.slane %v844_v23, 4  ;;  %v848_v34 = vsel %vm660_vm4, %v844_v23, %v847_v21  ;;  %v880_v36 = vsel %vm660_vm4, %v872_v26, %v879_v24  ;;  %v889_v43 = vrot.slane %v876_v27, 4 }
 0x23b   : > { %v850_v37 = vpack.c.bf16 %v848_v34, %v848_v34  ;;  %v735_v16 = vsel %vm660_vm4, %v734_v32, %v716_v28  ;;  %v740_v38 = vrot.slane %v733_v30, 4  ;;  %v888_v39 = vperm.slane %v880_v36, %v1699_v5 }
 0x23c   : > { %v846_v40 = vsel %vm660_vm4, %v845_v33, %v838_v9  ;;  %v739_v41 = vperm.slane %v735_v16, %v1699_v5  ;;  %v878_v42 = vsel %vm660_vm4, %v877_v35, %v1697_v4  ;;  %v892_v46 = vsel %vm660_vm4, %v876_v27, %v891_v18 }
 0x23d   : > { %v849_v44 = vpack.c.bf16 %v846_v40, %v846_v40  ;;  %852 = vst.msk [vmem:[%s400_s18 + $0x4] sm:$0xf] %vm752_vm5, %v850_v37  ;;  %v741_v24 = vsel %vm660_vm4, %v740_v38, %v727_v29  ;;  %v884_v45 = vperm.slane %v878_v42, %v1699_v5  ;;  %v890_v48 = vsel %vm660_vm4, %v889_v43, %v1716_v31 }
 0x23e   : > { %v745_v19 = vperm.slane %v741_v24, %v1699_v5  ;;  %v748_v47 = vrot.slane %v739_v41, 4  ;;  %v900_v49 = vperm.slane %v892_v46, %v1699_v5  ;;  %v896_v4 = vperm.slane %v890_v48, %v1699_v5 }
 0x23f   : > { %851 = vst.msk [vmem:[%s400_s18] sm:$0xf] %vm752_vm5, %v849_v44  ;;  %v901_v50 = vrot.slane %v884_v45, 4  ;;  %v903_v51 = vrot.slane %v888_v39, 4 }
 0x240   : > { %v746_v52 = vrot.slane %v745_v19, 4  ;;  %v749_v54 = vsel %vm660_vm4, %v745_v19, %v748_v47  ;;  %v907_v55 = vrot.slane %v900_v49, 4  ;;  %v905_v58 = vrot.slane %v896_v4, 4 }
 0x241   : > { %v751_v56 = vpack.c.bf16 %v749_v54, %v749_v54  ;;  %v902_v57 = vsel %vm660_vm4, 0.0, %v901_v50  ;;  %v904_v31 = vsel %vm660_vm4, 0.0, %v903_v51  ;;  %v909_v0 = vsel %vm660_vm4, %v903_v51, %v884_v45 }
 0x242   : > { %v747_v59 = vsel %vm660_vm4, %v746_v52, %v739_v41  ;;  %v908_v60 = vsel %vm660_vm4, 0.0, %v907_v55  ;;  %v914_v61 = vrot.slane %v904_v31, 4  ;;  %v906_v63 = vsel %vm660_vm4, 0.0, %v905_v58 }
 0x243   : > { %v750_v62 = vpack.c.bf16 %v747_v59, %v747_v59  ;;  %754 = vst.msk [vmem:[%s392_s21 + $0x4] sm:$0xf] %vm752_vm5, %v751_v56  ;;  %v925_v2 = vrot.slane %v908_v60, 4  ;;  %v920_v6 = vsel %vm660_vm4, %v907_v55, %v896_v4  ;;  %v913_v8 = vperm.slane %v909_v0, %v1688_v53 }
 0x244   : > { %v915_v1 = vsel %vm660_vm4, %v914_v61, %v902_v57  ;;  %v924_v11 = vperm.slane %v920_v6, %v1688_v53 }
 0x245   : > { %753 = vst.msk [vmem:[%s392_s21] sm:$0xf] %vm752_vm5, %v750_v62  ;;  %v919_v3 = vperm.slane %v915_v1, %v1688_v53  ;;  %v926_v7 = vsel %vm660_vm4, %v925_v2, %v906_v63 }
 0x246   : > { %v930_v9 = vperm.slane %v926_v7, %v1688_v53 }
 0x247   : > { %v931_v10 = vrot.slane %v919_v3, 4 }
 0x248   : > { %v937_v13 = vrot.slane %v930_v9, 4 }
 0x249   : > { %v932_v12 = vsel %vm660_vm4, %v931_v10, %v913_v8 }
 0x24a   : > { %v936_v14 = vperm.slane %v932_v12, %v1699_v5  ;;  %v938_v15 = vsel %vm660_vm4, %v937_v13, %v924_v11 }
 0x24b   : > { %v942_v17 = vperm.slane %v938_v15, %v1699_v5 }
 0x24c   : > { %v945_v18 = vrot.slane %v936_v14, 4 }
 0x24d   : > { %v943_v20 = vrot.slane %v942_v17, 4 }
 0x24e   : > { %v946_v21 = vsel %vm660_vm4, %v942_v17, %v945_v18 }
 0x24f   : > { %v948_v22 = vpack.c.bf16 %v946_v21, %v946_v21  ;;  %v944_v53 = vsel %vm660_vm4, %v943_v20, %v936_v14 }
 0x250   : > { %v947_v23 = vpack.c.bf16 %v944_v53, %v944_v53 }
 0x251   : > { %950 = vst.msk [vmem:[%s408_s27 + $0x4] sm:$0xf] %vm752_vm5, %v948_v22 }
 0x252   : > { %949 = vst.msk [vmem:[%s408_s27] sm:$0xf] %vm752_vm5, %v947_v23 }
 0x253 PF: > { %s21_s26 = sadd.s32 1, %s1548_s26   ;;  %s1836_s24 = smov %s1544_s25 }
 0x254   : > { %p18_p8 = scmp.ge.s32.totalorder %s21_s26, 4   ;;  %s1837_s25 = smov %s1839_s13 }
 0x256   :  { %20 = sbr.rel (!%p18_p8) target bundleno = 4 (0x4), region = 111 }
 0x25b   :  { %1022 = vsyncpa [#allocation3], 1 }
 0x25c   :  { %1024 = vsyncpa [#allocation3 + $0x1], 1 }
 0x25d   :  { %1025 = vsyncpa [#allocation5], 1 }
 0x25e   :  { %1026 = vsyncpa [#allocation8], 1 }

// kernel: gpt2_forward.13
= control target key start
LH: loop header
LB: loop body
LE: loop exit
PB: predicated region body
PF: predicated region fallthrough
CT: control target
= control target key end

     0   :  { %s3038_s0 = inlined_call_operand.vmem [shape: f32[16,128], index: 0, kind: input, shape index: {}]   ;;  %s3039_s1 = inlined_call_operand.hbm [shape: f32[1,128], index: 1, kind: input, shape index: {}]   ;;  %s3040_s2 = inlined_call_operand.hbm [shape: f32[1,128], index: 2, kind: input, shape index: {}]   ;;  %s3041_s3 = inlined_call_operand.hbm [shape: bf16[128,51200], index: 3, kind: input, shape index: {}]   ;;  %s3042_s4 = inlined_call_operand.vmem [shape: f32[16,51200], index: 4, kind: output, shape index: {}]  }
   0x1   :  { %3043 = sst [smem:[#allocation12_spill]] %s3039_s1 }
   0x2   :  { %9 = vsyncpa [#allocation4], 0 }
   0x3   :  { %10 = vsyncpa [#allocation6], 0  ;;  %s2522_s15 = smov 0   ;;  %s2524_s16 = smov 0  }
   0x4   :  { %s2526_s17 = smov 0   ;;  %s2528_s18 = smov 0  }
   0x5   :  { %s2530_s19 = smov 0   ;;  %s2532_s20 = smov 0  }
   0x6 LB: > { %s2551_s21 = sadd.s32 4294967295, %s2489_s20   ;;  %s103_s22 = sadd.s32 1, %s2477_s17  ;;  %s2489_s20 = sphi %s2532_s20, %s16_s20   ;;  %s2485_s19 = sphi %s2530_s19, %s3054_s19   ;;  %s2481_s18 = sphi %s2528_s18, %s3053_s18   ;;  %s2477_s17 = sphi %s2526_s17, %s3052_s17   ;;  %s2473_s16 = sphi %s2524_s16, %s3051_s16   ;;  %s2469_s15 = sphi %s2522_s15, %s3050_s15  }
   0x7   : > { %p110_p0 = scmp.ne.s32.totalorder %s2477_s17, %s2473_s16  ;;  %p111_p1 = scmp.eq.s32.totalorder %s2489_s20, 0 }
   0x8   : > { %p116_p2 = scmp.ne.s32.totalorder %s2473_s16, %s2469_s15  ;;  %p117_p3 = scmp.eq.s32.totalorder %s2551_s21, 0 }
   0x9   : > { %p2559_p4 = por %p111_p1, %p110_p0  ;;  %p142_p5 = scmp.eq.s32.totalorder %s2551_s21, 24 }
   0xa   : > { %p2566_p6 = por %p117_p3, %p116_p2  ;;  %p1582_p7 = scmp.ge.s32.totalorder %s2489_s20, 1 }
   0xb   : > { %p2571_p8 = por %p142_p5, %p110_p0  ;;  %p155_p9 = scmp.lt.s32.totalorder %s2489_s20, 26 }
   0xc   : > { %s3047_s1 = sld [smem:[#allocation12_spill]]  ;;  %s2491_s30 = smov [#allocation3]  }
   0xd   : > { %p2579_p10 = pnand %p1582_p7, %p155_p9  ;;  %s178_s5 = sshll.u32 %s2491_s30, 4  ;;  %s179_s5 = int_to_ptr.vmem [resolvable:$true] %s178_s5 }
   0xe   : > { %p2276_p12 = scmp.lt.s32.totalorder %s2489_s20, 25  ;;  %s188_s8 = sshll.u32 %s3040_s2, 4  ;;  %s189_s8 = int_to_ptr.hbm [resolvable:$true] %s188_s8 }
   0xf   : > { %p2263_p11 = pneg %p2579_p10  ;;  %s2492_s10 = smov [#allocation5]  }
  0x10   : > { %p2593_p0 = pnand %p2276_p12, %p2559_p4  ;;  %s190_s11 = sshll.u32 %s2492_s10, 4  ;;  %s191_s11 = int_to_ptr.vmem [resolvable:$true] %s190_s11 }
  0x11   : > { %p2264_p13 = pnand %p2263_p11, %p117_p3  ;;  %s201_s12 = sand.u32 1, %s2489_s20  }
  0x12   : > { %s176_s28 = sshll.u32 %s3047_s1, 4  ;;  %s25_s13 = sadd.s32 1, %s2485_s19  ;;  %s177_s28 = int_to_ptr.hbm [resolvable:$true] %s176_s28 }
  0x13   : > { %2266 = dma.hbm_to_vmem [thread:$0]  (!%p2264_p13), %s177_s28, 16, %s179_s5, [#allocation4]  }
  0x14   : > { %2269 = dma.hbm_to_vmem [thread:$0]  (!%p2264_p13), %s189_s8, 16, %s191_s11, [#allocation6]  }
  0x15   : > { %p26_p1 = scmp.ge.s32.totalorder %s25_s13, 25  ;;  %s203_s14 = sand.u32 1, %s2477_s17  }
  0x16   : > { %s1587_s15 = sshll.u32 %s203_s14, 10  ;;  %s2117_s23 = sshll.u32 %s2485_s19, 6 }
  0x17   : > { %s3056_s13 = smov (%p26_p1, %s25_s13), 0  ;;  %s210_s28 = scalar_lea.hbm %s3041_s3, %s2117_s23 }
  0x18   : > { %s100_s30 = ssub.s32 %s2485_s19, %s3056_s13  ;;  %s211_s5 = sshll.u32 %s210_s28, 4  ;;  %s212_s5 = int_to_ptr.hbm [resolvable:$true] %s211_s5 }
  0x19   : > { %p101_p2 = scmp.eq.s32.totalorder %s100_s30, 0  ;;  %s205_s6 = scalar_lea.vmem [#allocation7], %s1587_s15 }
  0x1a   : > { %s213_s7 = sshll.u32 %s205_s6, 4  ;;  %s202_s10 = scalar_lea.sflag [#allocation4], %s201_s12  ;;  %s214_s7 = int_to_ptr.vmem [resolvable:$true] %s213_s7 }
  0x1b   : > { %s2611_s8 = scalar_select %p101_p2, %s2477_s17, %s103_s22  }
  0x1c   : > { %s2493_s11 = smov 25600   ;;  %s2494_s14 = smov 1024  }
  0x1d   : > { %s2495_s1 = smov 64   ;;  %225 = sbr.rel (%p2579_p10) target bundleno = 608 (0x260), region = 36 }
  0x1e   : > { %2273 = dma.hbm_to_vmem [thread:$0]  (!%p2593_p0), %s212_s5, 16384, %s214_s7, %s202_s10, %s2493_s11, %s2494_s14, %s2495_s1  }
  0x22   : > { %2456 = dma.done.wait (%p117_p3), [#allocation4], 16  }
  0x23   : > { %2458 = vsyncadd (%p117_p3), [#allocation4], 4294967280 }
  0x24   : > { %2460 = dma.done.wait (%p117_p3), [#allocation6], 16  }
  0x25   : > { %2462 = vsyncadd (%p117_p3), [#allocation6], 4294967280  ;;  %s237_s22 = sand.u32 1, %s2551_s21   ;;  %s239_s1 = sand.u32 1, %s2473_s16  }
  0x26   : > { %s1593_s9 = sshll.u32 %s239_s1, 10  ;;  %s238_s29 = scalar_lea.sflag [#allocation4], %s237_s22 }
  0x27   : > { %s2627_s12 = scalar_lea.vmem [#allocation7], %s1593_s9 }
  0x28   : > { %2464 = dma.done.wait (%p2566_p6), %s238_s29, 16384  }
  0x29   : > { %2466 = vsyncadd (%p2566_p6), %s238_s29, 4294950912  ;;  %s1594_s15 = sshll.u32 %s239_s1, 8  ;;  %p1595_p4 = scmp.ne.s32.totalorder %s2481_s18, 0 }
  0x2a   : > { %s2633_s23 = scalar_lea.vmem [#allocation8], %s1594_s15 }
  0x2b   : > { %283 = sbr.rel (%p1595_p4) target bundleno = 326 (0x146), region = 52 }
  0x30   : > { %v284_v0 = vld [vmem:[%s3038_s0] sm:$0xff]  ;;  %v285_v1 = vld [vmem:[%s3038_s0 + $0x8] sm:$0xff]  ;;  %v2496_v2 = vmov 128.0  }
  0x31   : > { %288 = vadd.xlane.f32.xlu0 %v284_v0  ;;  %2335 = vrcp.f32 %v2496_v2  ;;  %v2333_v35 = vld [vmem:[#allocation3] ss:$0 sm:$0xff]  ;;  %v2334_v39 = vld [vmem:[#allocation5] ss:$0 sm:$0xff] }
  0x37   : > { %v2336_v3 = vpop.eup %2335 }
  0x38   : > { %v293_v4 = vmul.f32 128.0, %v2336_v3  ;;  %vm297_vm0 = vweird.f32 %v2336_v3 }
  0x39   : > { %290 = vadd.xlane.f32.xlu0 %v285_v1 }
  0x3a   : > { %v294_v5 = vsub.f32 1.0, %v293_v4 }
  0x3c   : > { %v295_v6 = vmul.f32 %v2336_v3, %v294_v5 }
  0x3e   : > { %v296_v7 = vadd.f32 %v2336_v3, %v295_v6 }
  0x40   : > { %v298_v8 = vsel %vm297_vm0, %v2336_v3, %v296_v7 }
  0xa4   : > { %v289_v9 = vpop.xlane.xlu0 %288 }
  0xa5   : > { %v299_v10 = vmul.f32 %v298_v8, %v289_v9 }
  0xa7   : > { %v301_v11 = vsub.f32 %v284_v0, %v299_v10 }
  0xa9   : > { %v303_v12 = vmul.f32 %v301_v11, %v301_v11 }
  0xab   : > { %305 = vadd.xlane.f32.xlu1 %v303_v12 }
  0xac   : > { %v291_v13 = vpop.xlane.xlu0 %290 }
  0xad   : > { %v300_v14 = vmul.f32 %v298_v8, %v291_v13 }
  0xaf   : > { %v302_v15 = vsub.f32 %v285_v1, %v300_v14 }
  0xb1   : > { %v304_v16 = vmul.f32 %v302_v15, %v302_v15 }
  0xb3   : > { %307 = vadd.xlane.f32.xlu1 %v304_v16 }
 0x11e   : > { %v306_v17 = vpop.xlane.xlu1 %305 }
 0x11f   : > { %v309_v18 = vmul.f32 %v306_v17, %v298_v8 }
 0x121   : > { %v311_v19 = vadd.f32 1e-05, %v309_v18 }
 0x123   : > { %2337 = vrsqrt.f32 %v311_v19  ;;  %vm319_vm2 = vweird.f32 %v311_v19 }
 0x126   : > { %v308_v20 = vpop.xlane.xlu1 %307 }
 0x127   : > { %v310_v21 = vmul.f32 %v308_v20, %v298_v8 }
 0x129   : > { %v2338_v22 = vpop.eup %2337  ;;  %v312_v23 = vadd.f32 1e-05, %v310_v21 }
 0x12a   : > { %v314_v24 = vmul.f32 %v2338_v22, %v311_v19  ;;  %vm320_vm1 = vweird.f32 %v2338_v22 }
 0x12b   : > { %2339 = vrsqrt.f32 %v312_v23  ;;  %vm321_vm3 = vmor %vm319_vm2, %vm320_vm1  ;;  %vm329_vm5 = vweird.f32 %v312_v23 }
 0x12c   : > { %v315_v25 = vmul.f32 %v2338_v22, %v314_v24 }
 0x12e   : > { %v316_v26 = vmul.f32 0.5, %v315_v25 }
 0x130   : > { %v317_v27 = vsub.f32 1.5, %v316_v26 }
 0x131   : > { %v2340_v28 = vpop.eup %2339 }
 0x132   : > { %v318_v29 = vmul.f32 %v2338_v22, %v317_v27  ;;  %v324_v30 = vmul.f32 %v2340_v28, %v312_v23  ;;  %vm330_vm4 = vweird.f32 %v2340_v28 }
 0x133   : > { %vm331_vm6 = vmor %vm329_vm5, %vm330_vm4 }
 0x134   : > { %v325_v31 = vmul.f32 %v2340_v28, %v324_v30  ;;  %v322_v32 = vsel %vm321_vm3, %v2338_v22, %v318_v29 }
 0x135   : > { %v333_v36 = vmul.f32 %v322_v32, %v301_v11 }
 0x136   : > { %v326_v33 = vmul.f32 0.5, %v325_v31 }
 0x137   : > { %v338_v40 = vmul.f32 %v2333_v35, %v333_v36 }
 0x138   : > { %v327_v34 = vsub.f32 1.5, %v326_v33 }
 0x139   : > { %v343_v43 = vadd.f32 %v2334_v39, %v338_v40 }
 0x13a   : > { %v328_v37 = vmul.f32 %v2340_v28, %v327_v34 }
 0x13c   : > { %v332_v38 = vsel %vm331_vm6, %v2340_v28, %v328_v37 }
 0x13d   : > { %v334_v41 = vmul.f32 %v332_v38, %v302_v15 }
 0x13f   : > { %v339_v42 = vmul.f32 %v2333_v35, %v334_v41 }
 0x141   : > { %v344_v44 = vadd.f32 %v2334_v39, %v339_v42 }
 0x143   : > { %v2251_v45 = vpack.c.bf16 %v344_v44, %v343_v43 }
 0x145   : > { %2252 = vst [vmem:[#allocation2] sm:$0xff] %v2251_v45  }
 0x146 PF: > { %v2050_v46 = vld [vmem:[%s2627_s12 + $0x380] sm:$0xf]  ;;  %v2231_v48 = vld [vmem:[%s2627_s12 + $0x384] sm:$0xf]  ;;  %v2058_v51 = vld [vmem:[%s2627_s12 + $0x388] sm:$0xf] }
 0x147   : > { %v2239_v47 = vld [vmem:[%s2627_s12 + $0x3bc] sm:$0xf0]  ;;  %v2052_v50 = vld [vmem:[%s2627_s12 + $0x3c0] sm:$0xf0]  ;;  %v2240_v52 = vld [vmem:[%s2627_s12 + $0x3c4] sm:$0xf0] }
 0x148   : > { %v2051_v49 = vor.u32 %v2239_v47, %v2050_v46  ;;  %v2055_v53 = vor.u32 %v2231_v48, %v2052_v50  ;;  %v2059_v54 = vor.u32 %v2240_v52, %v2058_v51  ;;  %v2232_v55 = vld [vmem:[%s2627_s12 + $0x38c] sm:$0xf]  ;;  %v1986_v57 = vld [vmem:[%s2627_s12 + $0x300] sm:$0xf]  ;;  %v2215_v60 = vld [vmem:[%s2627_s12 + $0x304] sm:$0xf] }
 0x149   : > { %v2060_v56 = vld [vmem:[%s2627_s12 + $0x3c8] sm:$0xf0]  ;;  %v2223_v59 = vld [vmem:[%s2627_s12 + $0x33c] sm:$0xf0]  ;;  %v1988_v61 = vld [vmem:[%s2627_s12 + $0x340] sm:$0xf0] }
 0x14a   : > { %1125 = vmatpush.bf16.msra.mxu0 %v2051_v49  ;;  %v2063_v58 = vor.u32 %v2232_v55, %v2060_v56  ;;  %1139 = vmatpush.bf16.msra.mxu1 %v2055_v53  ;;  %v1987_v62 = vor.u32 %v2223_v59, %v1986_v57  ;;  %v1991_v63 = vor.u32 %v2215_v60, %v1988_v61  ;;  %v1994_v0 = vld [vmem:[%s2627_s12 + $0x308] sm:$0xf]  ;;  %v2216_v2 = vld [vmem:[%s2627_s12 + $0x30c] sm:$0xf]  ;;  %v1922_v5 = vld [vmem:[%s2627_s12 + $0x280] sm:$0xf] }
 0x14b   : > { %1153 = vmatpush.bf16.msra.mxu2 %v2059_v54  ;;  %v2224_v1 = vld [vmem:[%s2627_s12 + $0x344] sm:$0xf0]  ;;  %v1996_v4 = vld [vmem:[%s2627_s12 + $0x348] sm:$0xf0]  ;;  %v2207_v6 = vld [vmem:[%s2627_s12 + $0x2bc] sm:$0xf0] }
 0x14c   : > { %1167 = vmatpush.bf16.msra.mxu3 %v2063_v58  ;;  %v1995_v3 = vor.u32 %v2224_v1, %v1994_v0  ;;  %v1999_v7 = vor.u32 %v2216_v2, %v1996_v4  ;;  %v2199_v8 = vld [vmem:[%s2627_s12 + $0x284] sm:$0xf]  ;;  %v1930_v10 = vld [vmem:[%s2627_s12 + $0x288] sm:$0xf]  ;;  %v1923_v11 = vor.u32 %v2207_v6, %v1922_v5  ;;  %v2200_v13 = vld [vmem:[%s2627_s12 + $0x28c] sm:$0xf] }
 0x14d   : > { %v1924_v9 = vld [vmem:[%s2627_s12 + $0x2c0] sm:$0xf0]  ;;  %v2208_v12 = vld [vmem:[%s2627_s12 + $0x2c4] sm:$0xf0]  ;;  %v1932_v14 = vld [vmem:[%s2627_s12 + $0x2c8] sm:$0xf0] }
 0x14e   : > { %1126 = vmatpush.bf16.msra.mxu0 %v1987_v62  ;;  %1140 = vmatpush.bf16.msra.mxu1 %v1991_v63  ;;  %v1927_v15 = vor.u32 %v2199_v8, %v1924_v9  ;;  %v1931_v16 = vor.u32 %v2208_v12, %v1930_v10  ;;  %v1858_v17 = vld [vmem:[%s2627_s12 + $0x200] sm:$0xf]  ;;  %v2183_v19 = vld [vmem:[%s2627_s12 + $0x204] sm:$0xf]  ;;  %v1935_v20 = vor.u32 %v2200_v13, %v1932_v14  ;;  %v1866_v22 = vld [vmem:[%s2627_s12 + $0x208] sm:$0xf] }
 0x14f   : > { %1154 = vmatpush.bf16.msra.mxu2 %v1995_v3  ;;  %v2191_v18 = vld [vmem:[%s2627_s12 + $0x23c] sm:$0xf0]  ;;  %v1860_v21 = vld [vmem:[%s2627_s12 + $0x240] sm:$0xf0]  ;;  %v2192_v23 = vld [vmem:[%s2627_s12 + $0x244] sm:$0xf0] }
 0x150   : > { %1168 = vmatpush.bf16.msra.mxu3 %v1999_v7  ;;  %v2184_v24 = vld [vmem:[%s2627_s12 + $0x20c] sm:$0xf]  ;;  %v1859_v26 = vor.u32 %v2191_v18, %v1858_v17  ;;  %v1863_v27 = vor.u32 %v2183_v19, %v1860_v21  ;;  %v1867_v28 = vor.u32 %v2192_v23, %v1866_v22  ;;  %v1794_v29 = vld [vmem:[%s2627_s12 + $0x180] sm:$0xf]  ;;  %v2167_v31 = vld [vmem:[%s2627_s12 + $0x184] sm:$0xf] }
 0x151   : > { %v1868_v25 = vld [vmem:[%s2627_s12 + $0x248] sm:$0xf0]  ;;  %v2175_v30 = vld [vmem:[%s2627_s12 + $0x1bc] sm:$0xf0]  ;;  %v1796_v33 = vld [vmem:[%s2627_s12 + $0x1c0] sm:$0xf0] }
 0x152   : > { %1127 = vmatpush.bf16.msra.mxu0 %v1923_v11  ;;  %1141 = vmatpush.bf16.msra.mxu1 %v1927_v15  ;;  %v1871_v32 = vor.u32 %v2184_v24, %v1868_v25  ;;  %v1802_v34 = vld [vmem:[%s2627_s12 + $0x188] sm:$0xf]  ;;  %v2168_v36 = vld [vmem:[%s2627_s12 + $0x18c] sm:$0xf]  ;;  %v1795_v38 = vor.u32 %v2175_v30, %v1794_v29  ;;  %v1799_v39 = vor.u32 %v2167_v31, %v1796_v33  ;;  %v1730_v41 = vld [vmem:[%s2627_s12 + $0x100] sm:$0xf] }
 0x153   : > { %1155 = vmatpush.bf16.msra.mxu2 %v1931_v16  ;;  %v2176_v35 = vld [vmem:[%s2627_s12 + $0x1c4] sm:$0xf0]  ;;  %v1804_v37 = vld [vmem:[%s2627_s12 + $0x1c8] sm:$0xf0]  ;;  %v2159_v42 = vld [vmem:[%s2627_s12 + $0x13c] sm:$0xf0] }
 0x154   : > { %1169 = vmatpush.bf16.msra.mxu3 %v1935_v20  ;;  %v1803_v40 = vor.u32 %v2176_v35, %v1802_v34  ;;  %v2151_v43 = vld [vmem:[%s2627_s12 + $0x104] sm:$0xf]  ;;  %v1807_v44 = vor.u32 %v2168_v36, %v1804_v37  ;;  %v1738_v46 = vld [vmem:[%s2627_s12 + $0x108] sm:$0xf]  ;;  %v2152_v48 = vld [vmem:[%s2627_s12 + $0x10c] sm:$0xf]  ;;  %v1731_v50 = vor.u32 %v2159_v42, %v1730_v41 }
 0x155   : > { %v1732_v45 = vld [vmem:[%s2627_s12 + $0x140] sm:$0xf0]  ;;  %v2160_v47 = vld [vmem:[%s2627_s12 + $0x144] sm:$0xf0]  ;;  %v1740_v49 = vld [vmem:[%s2627_s12 + $0x148] sm:$0xf0] }
 0x156   : > { %1128 = vmatpush.bf16.msra.mxu0 %v1859_v26  ;;  %1142 = vmatpush.bf16.msra.mxu1 %v1863_v27  ;;  %v1735_v51 = vor.u32 %v2151_v43, %v1732_v45  ;;  %v1739_v52 = vor.u32 %v2160_v47, %v1738_v46  ;;  %v1666_v53 = vld [vmem:[%s2627_s12 + $0x80] sm:$0xf]  ;;  %v2135_v55 = vld [vmem:[%s2627_s12 + $0x84] sm:$0xf]  ;;  %v1743_v56 = vor.u32 %v2152_v48, %v1740_v49  ;;  %v1674_v58 = vld [vmem:[%s2627_s12 + $0x88] sm:$0xf] }
 0x157   : > { %1156 = vmatpush.bf16.msra.mxu2 %v1867_v28  ;;  %v2143_v54 = vld [vmem:[%s2627_s12 + $0xbc] sm:$0xf0]  ;;  %v1668_v57 = vld [vmem:[%s2627_s12 + $0xc0] sm:$0xf0]  ;;  %v2144_v59 = vld [vmem:[%s2627_s12 + $0xc4] sm:$0xf0] }
 0x158   : > { %1170 = vmatpush.bf16.msra.mxu3 %v1871_v32  ;;  %v2136_v60 = vld [vmem:[%s2627_s12 + $0x8c] sm:$0xf]  ;;  %v1667_v62 = vor.u32 %v2143_v54, %v1666_v53  ;;  %v1602_v63 = vld [vmem:[%s2627_s12] sm:$0xf]  ;;  %v1671_v1 = vor.u32 %v2135_v55, %v1668_v57  ;;  %v1675_v2 = vor.u32 %v2144_v59, %v1674_v58  ;;  %v2119_v3 = vld [vmem:[%s2627_s12 + $0x4] sm:$0xf] }
 0x159   : > { %v1676_v61 = vld [vmem:[%s2627_s12 + $0xc8] sm:$0xf0]  ;;  %v2127_v0 = vld [vmem:[%s2627_s12 + $0x3c] sm:$0xf0]  ;;  %v1604_v4 = vld [vmem:[%s2627_s12 + $0x40] sm:$0xf0] }
 0x15a   : > { %1129 = vmatpush.bf16.msra.mxu0 %v1795_v38  ;;  %1143 = vmatpush.bf16.msra.mxu1 %v1799_v39  ;;  %v1610_v5 = vld [vmem:[%s2627_s12 + $0x8] sm:$0xf]  ;;  %v1679_v6 = vor.u32 %v2136_v60, %v1676_v61  ;;  %v2120_v8 = vld [vmem:[%s2627_s12 + $0xc] sm:$0xf]  ;;  %v2066_v10 = vld [vmem:[%s2627_s12 + $0x390] sm:$0xf]  ;;  %v1603_v13 = vor.u32 %v2127_v0, %v1602_v63  ;;  %v1607_v17 = vor.u32 %v2119_v3, %v1604_v4 }
 0x15b   : > { %1157 = vmatpush.bf16.msra.mxu2 %v1803_v40  ;;  %v2128_v7 = vld [vmem:[%s2627_s12 + $0x44] sm:$0xf0]  ;;  %v1612_v9 = vld [vmem:[%s2627_s12 + $0x48] sm:$0xf0]  ;;  %v2241_v11 = vld [vmem:[%s2627_s12 + $0x3cc] sm:$0xf0] }
 0x15c   : > { %1171 = vmatpush.bf16.msra.mxu3 %v1807_v44  ;;  %v2233_v12 = vld [vmem:[%s2627_s12 + $0x394] sm:$0xf]  ;;  %v2074_v15 = vld [vmem:[%s2627_s12 + $0x398] sm:$0xf]  ;;  %v1611_v18 = vor.u32 %v2128_v7, %v1610_v5  ;;  %v2234_v19 = vld [vmem:[%s2627_s12 + $0x39c] sm:$0xf]  ;;  %v1615_v21 = vor.u32 %v2120_v8, %v1612_v9  ;;  %v2067_v22 = vor.u32 %v2241_v11, %v2066_v10 }
 0x15d   : > { %v2068_v14 = vld [vmem:[%s2627_s12 + $0x3d0] sm:$0xf0]  ;;  %v2242_v16 = vld [vmem:[%s2627_s12 + $0x3d4] sm:$0xf0]  ;;  %v2076_v20 = vld [vmem:[%s2627_s12 + $0x3d8] sm:$0xf0] }
 0x15e   : > { %1130 = vmatpush.bf16.msra.mxu0 %v1731_v50  ;;  %1144 = vmatpush.bf16.msra.mxu1 %v1735_v51  ;;  %v2071_v23 = vor.u32 %v2233_v12, %v2068_v14  ;;  %v2075_v24 = vor.u32 %v2242_v16, %v2074_v15  ;;  %v2002_v25 = vld [vmem:[%s2627_s12 + $0x310] sm:$0xf]  ;;  %v2217_v27 = vld [vmem:[%s2627_s12 + $0x314] sm:$0xf]  ;;  %v2079_v28 = vor.u32 %v2234_v19, %v2076_v20  ;;  %v2010_v30 = vld [vmem:[%s2627_s12 + $0x318] sm:$0xf] }
 0x15f   : > { %1158 = vmatpush.bf16.msra.mxu2 %v1739_v52  ;;  %v2225_v26 = vld [vmem:[%s2627_s12 + $0x34c] sm:$0xf0]  ;;  %v2004_v29 = vld [vmem:[%s2627_s12 + $0x350] sm:$0xf0]  ;;  %v2226_v31 = vld [vmem:[%s2627_s12 + $0x354] sm:$0xf0] }
 0x160   : > { %1172 = vmatpush.bf16.msra.mxu3 %v1743_v56  ;;  %v2218_v32 = vld [vmem:[%s2627_s12 + $0x31c] sm:$0xf]  ;;  %v2003_v34 = vor.u32 %v2225_v26, %v2002_v25  ;;  %v2007_v35 = vor.u32 %v2217_v27, %v2004_v29  ;;  %v2011_v36 = vor.u32 %v2226_v31, %v2010_v30  ;;  %v1938_v37 = vld [vmem:[%s2627_s12 + $0x290] sm:$0xf]  ;;  %v2201_v39 = vld [vmem:[%s2627_s12 + $0x294] sm:$0xf] }
 0x161   : > { %v2012_v33 = vld [vmem:[%s2627_s12 + $0x358] sm:$0xf0]  ;;  %v2209_v38 = vld [vmem:[%s2627_s12 + $0x2cc] sm:$0xf0]  ;;  %v1940_v41 = vld [vmem:[%s2627_s12 + $0x2d0] sm:$0xf0] }
 0x162   : > { %1131 = vmatpush.bf16.msra.mxu0 %v1667_v62  ;;  %1145 = vmatpush.bf16.msra.mxu1 %v1671_v1  ;;  %v2015_v40 = vor.u32 %v2218_v32, %v2012_v33  ;;  %v1946_v42 = vld [vmem:[%s2627_s12 + $0x298] sm:$0xf]  ;;  %v2202_v44 = vld [vmem:[%s2627_s12 + $0x29c] sm:$0xf]  ;;  %v1939_v46 = vor.u32 %v2209_v38, %v1938_v37  ;;  %v1943_v48 = vor.u32 %v2201_v39, %v1940_v41  ;;  %v1874_v50 = vld [vmem:[%s2627_s12 + $0x210] sm:$0xf] }
 0x163   : > { %1159 = vmatpush.bf16.msra.mxu2 %v1675_v2  ;;  %v2210_v43 = vld [vmem:[%s2627_s12 + $0x2d4] sm:$0xf0]  ;;  %v1948_v45 = vld [vmem:[%s2627_s12 + $0x2d8] sm:$0xf0]  ;;  %v2193_v51 = vld [vmem:[%s2627_s12 + $0x24c] sm:$0xf0] }
 0x164   : > { %1173 = vmatpush.bf16.msra.mxu3 %v1679_v6  ;;  %v2730_v47 = vld [vmem:[#allocation2] sm:$0xff]  ;;  %v1947_v49 = vor.u32 %v2210_v43, %v1946_v42  ;;  %v1951_v53 = vor.u32 %v2202_v44, %v1948_v45  ;;  %v2186_v57 = vld [vmem:[%s2627_s12 + $0x21c] sm:$0xf]  ;;  %v1875_v59 = vor.u32 %v2193_v51, %v1874_v50  ;;  %v1810_v62 = vld [vmem:[%s2627_s12 + $0x190] sm:$0xf]  ;;  %s2247_s24 = sshll.u32 (%p2571_p8), %s2481_s18, 7 }
 0x165   : > { %v2185_v52 = vld [vmem:[%s2627_s12 + $0x214] sm:$0xf]  ;;  %v1882_v55 = vld [vmem:[%s2627_s12 + $0x218] sm:$0xf]  ;;  %v1884_v58 = vld [vmem:[%s2627_s12 + $0x258] sm:$0xf0]  ;;  %s2956_s6 = scalar_lea.vmem (%p2571_p8), %s3042_s4, %s2247_s24 }
 0x166   : > { %1132 = vmatpush.bf16.msra.mxu0 %v1603_v13  ;;  %1146 = vmatpush.bf16.msra.mxu1 %v1607_v17  ;;  %v1876_v54 = vld [vmem:[%s2627_s12 + $0x250] sm:$0xf0]  ;;  %v2194_v56 = vld [vmem:[%s2627_s12 + $0x254] sm:$0xf0]  ;;  %v2177_v63 = vld [vmem:[%s2627_s12 + $0x1cc] sm:$0xf0]  ;;  %v1887_v1 = vor.u32 %v2186_v57, %v1884_v58 }
 0x167   : > { %1160 = vmatpush.bf16.msra.mxu2 %v1611_v18  ;;  %v1879_v60 = vor.u32 %v2185_v52, %v1876_v54  ;;  %v1883_v61 = vor.u32 %v2194_v56, %v1882_v55  ;;  %v2169_v0 = vld [vmem:[%s2627_s12 + $0x194] sm:$0xf]  ;;  %v1818_v3 = vld [vmem:[%s2627_s12 + $0x198] sm:$0xf]  ;;  %v2170_v5 = vld [vmem:[%s2627_s12 + $0x19c] sm:$0xf]  ;;  %v1811_v7 = vor.u32 %v2177_v63, %v1810_v62 }
 0x168   : > { %1174 = vmatpush.bf16.msra.mxu3 %v1615_v21  ;;  %v1812_v2 = vld [vmem:[%s2627_s12 + $0x1d0] sm:$0xf0]  ;;  %v2178_v4 = vld [vmem:[%s2627_s12 + $0x1d4] sm:$0xf0]  ;;  %v1820_v6 = vld [vmem:[%s2627_s12 + $0x1d8] sm:$0xf0] }
 0x169   : > { %1133 = vmatmul.bf16.vlgmr.msra.gmra.mxu0 %v2730_v47  ;;  %1147 = vmatmul.bf16.vlgmr.msra.gmra.mxu1 %v2730_v47  ;;  %v1815_v8 = vor.u32 %v2169_v0, %v1812_v2  ;;  %v1819_v9 = vor.u32 %v2178_v4, %v1818_v3  ;;  %v1746_v10 = vld [vmem:[%s2627_s12 + $0x110] sm:$0xf]  ;;  %v2153_v12 = vld [vmem:[%s2627_s12 + $0x114] sm:$0xf]  ;;  %v1823_v13 = vor.u32 %v2170_v5, %v1820_v6  ;;  %v1754_v15 = vld [vmem:[%s2627_s12 + $0x118] sm:$0xf] }
 0x16a   : > { %1181 = vmatpush.bf16.msrb.mxu0 %v2067_v22  ;;  %1195 = vmatpush.bf16.msrb.mxu1 %v2071_v23  ;;  %v2161_v11 = vld [vmem:[%s2627_s12 + $0x14c] sm:$0xf0]  ;;  %v1748_v14 = vld [vmem:[%s2627_s12 + $0x150] sm:$0xf0]  ;;  %v2162_v16 = vld [vmem:[%s2627_s12 + $0x154] sm:$0xf0] }
 0x16b   : > { %1209 = vmatpush.bf16.msrb.mxu2 %v2075_v24  ;;  %1175 = vmatmul.bf16.vlgmr.msra.gmra.mxu3 %v2730_v47  ;;  %v2154_v17 = vld [vmem:[%s2627_s12 + $0x11c] sm:$0xf]  ;;  %v1747_v19 = vor.u32 %v2161_v11, %v1746_v10  ;;  %v1751_v20 = vor.u32 %v2153_v12, %v1748_v14  ;;  %v1755_v21 = vor.u32 %v2162_v16, %v1754_v15  ;;  %v1682_v22 = vld [vmem:[%s2627_s12 + $0x90] sm:$0xf]  ;;  %v2137_v24 = vld [vmem:[%s2627_s12 + $0x94] sm:$0xf] }
 0x16c   : > { %1223 = vmatpush.bf16.msrb.mxu3 %v2079_v28  ;;  %1161 = vmatmul.bf16.vlgmr.msra.gmra.mxu2 %v2730_v47  ;;  %v1756_v18 = vld [vmem:[%s2627_s12 + $0x158] sm:$0xf0]  ;;  %v2145_v23 = vld [vmem:[%s2627_s12 + $0xcc] sm:$0xf0]  ;;  %v1684_v26 = vld [vmem:[%s2627_s12 + $0xd0] sm:$0xf0] }
 0x16d   : > { %v1759_v25 = vor.u32 %v2154_v17, %v1756_v18  ;;  %v1690_v27 = vld [vmem:[%s2627_s12 + $0x98] sm:$0xf]  ;;  %v2138_v29 = vld [vmem:[%s2627_s12 + $0x9c] sm:$0xf]  ;;  %v1683_v31 = vor.u32 %v2145_v23, %v1682_v22  ;;  %v1618_v32 = vld [vmem:[%s2627_s12 + $0x10] sm:$0xf] }
 0x16e   : > { %1182 = vmatpush.bf16.msrb.mxu0 %v2003_v34  ;;  %1196 = vmatpush.bf16.msrb.mxu1 %v2007_v35  ;;  %v2146_v28 = vld [vmem:[%s2627_s12 + $0xd4] sm:$0xf0]  ;;  %v1692_v30 = vld [vmem:[%s2627_s12 + $0xd8] sm:$0xf0]  ;;  %v2129_v33 = vld [vmem:[%s2627_s12 + $0x4c] sm:$0xf0]  ;;  %v1687_v34 = vor.u32 %v2137_v24, %v1684_v26 }
 0x16f   : > { %1210 = vmatpush.bf16.msrb.mxu2 %v2011_v36  ;;  %v1691_v35 = vor.u32 %v2146_v28, %v1690_v27  ;;  %v2121_v36 = vld [vmem:[%s2627_s12 + $0x14] sm:$0xf]  ;;  %v1626_v38 = vld [vmem:[%s2627_s12 + $0x18] sm:$0xf]  ;;  %v1695_v39 = vor.u32 %v2138_v29, %v1692_v30  ;;  %v2122_v41 = vld [vmem:[%s2627_s12 + $0x1c] sm:$0xf] }
 0x170   : > { %1224 = vmatpush.bf16.msrb.mxu3 %v2015_v40  ;;  %v1620_v37 = vld [vmem:[%s2627_s12 + $0x50] sm:$0xf0]  ;;  %v2130_v40 = vld [vmem:[%s2627_s12 + $0x54] sm:$0xf0]  ;;  %v1628_v42 = vld [vmem:[%s2627_s12 + $0x58] sm:$0xf0] }
 0x171   : > { %v2082_v43 = vld [vmem:[%s2627_s12 + $0x3a0] sm:$0xf]  ;;  %v2235_v45 = vld [vmem:[%s2627_s12 + $0x3a4] sm:$0xf]  ;;  %v2244_v50 = vld [vmem:[%s2627_s12 + $0x3e4] sm:$0xf0]  ;;  %v1623_v51 = vor.u32 %v2121_v36, %v1620_v37  ;;  %v1627_v52 = vor.u32 %v2130_v40, %v1626_v38  ;;  %v1631_v55 = vor.u32 %v2122_v41, %v1628_v42 }
 0x172   : > { %1183 = vmatpush.bf16.msrb.mxu0 %v1939_v46  ;;  %1197 = vmatpush.bf16.msrb.mxu1 %v1943_v48  ;;  %v2243_v44 = vld [vmem:[%s2627_s12 + $0x3dc] sm:$0xf0]  ;;  %v1619_v46 = vor.u32 %v2129_v33, %v1618_v32  ;;  %v2084_v48 = vld [vmem:[%s2627_s12 + $0x3e0] sm:$0xf0]  ;;  %v2092_v54 = vld [vmem:[%s2627_s12 + $0x3e8] sm:$0xf0] }
 0x173   : > { %1211 = vmatpush.bf16.msrb.mxu2 %v1947_v49  ;;  %v2090_v49 = vld [vmem:[%s2627_s12 + $0x3a8] sm:$0xf]  ;;  %v2083_v56 = vor.u32 %v2243_v44, %v2082_v43  ;;  %v2087_v57 = vor.u32 %v2235_v45, %v2084_v48  ;;  %v2020_v63 = vld [vmem:[%s2627_s12 + $0x360] sm:$0xf0]  ;;  %v2220_v2 = vld [vmem:[%s2627_s12 + $0x32c] sm:$0xf] }
 0x174   : > { %1225 = vmatpush.bf16.msrb.mxu3 %v1951_v53  ;;  %v2236_v53 = vld [vmem:[%s2627_s12 + $0x3ac] sm:$0xf]  ;;  %v2091_v58 = vor.u32 %v2244_v50, %v2090_v49  ;;  %v2026_v0 = vld [vmem:[%s2627_s12 + $0x328] sm:$0xf]  ;;  %v1956_v11 = vld [vmem:[%s2627_s12 + $0x2e0] sm:$0xf0] }
 0x175   : > { %v2095_v62 = vor.u32 %v2236_v53, %v2092_v54  ;;  %v2028_v3 = vld [vmem:[%s2627_s12 + $0x368] sm:$0xf0]  ;;  %v1962_v12 = vld [vmem:[%s2627_s12 + $0x2a8] sm:$0xf]  ;;  %v1892_v23 = vld [vmem:[%s2627_s12 + $0x260] sm:$0xf0] }
 0x176   : > { %1184 = vmatpush.bf16.msrb.mxu0 %v1875_v59  ;;  %1198 = vmatpush.bf16.msrb.mxu1 %v1879_v60  ;;  %v2018_v59 = vld [vmem:[%s2627_s12 + $0x320] sm:$0xf]  ;;  %v2031_v10 = vor.u32 %v2220_v2, %v2028_v3  ;;  %v2204_v14 = vld [vmem:[%s2627_s12 + $0x2ac] sm:$0xf]  ;;  %v1898_v24 = vld [vmem:[%s2627_s12 + $0x228] sm:$0xf] }
 0x177   : > { %1212 = vmatpush.bf16.msrb.mxu2 %v1883_v61  ;;  %v2227_v60 = vld [vmem:[%s2627_s12 + $0x35c] sm:$0xf0]  ;;  %v2219_v61 = vld [vmem:[%s2627_s12 + $0x324] sm:$0xf]  ;;  %v1964_v15 = vld [vmem:[%s2627_s12 + $0x2e8] sm:$0xf0] }
 0x178   : > { %1226 = vmatpush.bf16.msrb.mxu3 %v1887_v1  ;;  %v2228_v1 = vld [vmem:[%s2627_s12 + $0x364] sm:$0xf0]  ;;  %v2019_v4 = vor.u32 %v2227_v60, %v2018_v59  ;;  %v2023_v5 = vor.u32 %v2219_v61, %v2020_v63  ;;  %v1967_v22 = vor.u32 %v2204_v14, %v1964_v15  ;;  %v2188_v26 = vld [vmem:[%s2627_s12 + $0x22c] sm:$0xf]  ;;  %v2179_v32 = vld [vmem:[%s2627_s12 + $0x1dc] sm:$0xf0] }
 0x179   : > { %v2027_v6 = vor.u32 %v2228_v1, %v2026_v0  ;;  %v1900_v27 = vld [vmem:[%s2627_s12 + $0x268] sm:$0xf0]  ;;  %v2171_v33 = vld [vmem:[%s2627_s12 + $0x1a4] sm:$0xf]  ;;  %v1834_v36 = vld [vmem:[%s2627_s12 + $0x1a8] sm:$0xf] }
 0x17a   : > { %1185 = vmatpush.bf16.msrb.mxu0 %v1811_v7  ;;  %1199 = vmatpush.bf16.msrb.mxu1 %v1815_v8  ;;  %v1954_v7 = vld [vmem:[%s2627_s12 + $0x2a0] sm:$0xf]  ;;  %v2180_v37 = vld [vmem:[%s2627_s12 + $0x1e4] sm:$0xf0]  ;;  %v2172_v38 = vld [vmem:[%s2627_s12 + $0x1ac] sm:$0xf] }
 0x17b   : > { %1213 = vmatpush.bf16.msrb.mxu2 %v1819_v9  ;;  %v2211_v8 = vld [vmem:[%s2627_s12 + $0x2dc] sm:$0xf0]  ;;  %v2203_v9 = vld [vmem:[%s2627_s12 + $0x2a4] sm:$0xf]  ;;  %v1835_v42 = vor.u32 %v2180_v37, %v1834_v36  ;;  %v1770_v49 = vld [vmem:[%s2627_s12 + $0x128] sm:$0xf] }
 0x17c   : > { %1227 = vmatpush.bf16.msrb.mxu3 %v1823_v13  ;;  %v2212_v13 = vld [vmem:[%s2627_s12 + $0x2e4] sm:$0xf0]  ;;  %v1955_v16 = vor.u32 %v2211_v8, %v1954_v7  ;;  %v1959_v17 = vor.u32 %v2203_v9, %v1956_v11  ;;  %v1762_v43 = vld [vmem:[%s2627_s12 + $0x120] sm:$0xf]  ;;  %v2155_v45 = vld [vmem:[%s2627_s12 + $0x124] sm:$0xf] }
 0x17d   : > { %v1963_v18 = vor.u32 %v2212_v13, %v1962_v12  ;;  %v2163_v44 = vld [vmem:[%s2627_s12 + $0x15c] sm:$0xf0]  ;;  %v1764_v48 = vld [vmem:[%s2627_s12 + $0x160] sm:$0xf0]  ;;  %v2164_v50 = vld [vmem:[%s2627_s12 + $0x164] sm:$0xf0] }
 0x17e   : > { %1186 = vmatpush.bf16.msrb.mxu0 %v1747_v19  ;;  %1200 = vmatpush.bf16.msrb.mxu1 %v1751_v20  ;;  %v1890_v19 = vld [vmem:[%s2627_s12 + $0x220] sm:$0xf]  ;;  %v1763_v53 = vor.u32 %v2163_v44, %v1762_v43  ;;  %v1767_v54 = vor.u32 %v2155_v45, %v1764_v48  ;;  %v1700_v60 = vld [vmem:[%s2627_s12 + $0xe0] sm:$0xf0]  ;;  %v1706_v61 = vld [vmem:[%s2627_s12 + $0xa8] sm:$0xf] }
 0x17f   : > { %1214 = vmatpush.bf16.msrb.mxu2 %v1755_v21  ;;  %v2195_v20 = vld [vmem:[%s2627_s12 + $0x25c] sm:$0xf0]  ;;  %v2187_v21 = vld [vmem:[%s2627_s12 + $0x224] sm:$0xf]  ;;  %v2140_v63 = vld [vmem:[%s2627_s12 + $0xac] sm:$0xf] }
 0x180   : > { %1228 = vmatpush.bf16.msrb.mxu3 %v1759_v25  ;;  %v2196_v25 = vld [vmem:[%s2627_s12 + $0x264] sm:$0xf0]  ;;  %v1891_v28 = vor.u32 %v2195_v20, %v1890_v19  ;;  %v1895_v29 = vor.u32 %v2187_v21, %v1892_v23  ;;  %v1708_v0 = vld [vmem:[%s2627_s12 + $0xe8] sm:$0xf0]  ;;  %v1634_v2 = vld [vmem:[%s2627_s12 + $0x20] sm:$0xf] }
 0x181   : > { %v1899_v30 = vor.u32 %v2196_v25, %v1898_v24  ;;  %v2131_v3 = vld [vmem:[%s2627_s12 + $0x5c] sm:$0xf0]  ;;  %v1636_v7 = vld [vmem:[%s2627_s12 + $0x60] sm:$0xf0]  ;;  %v1642_v8 = vld [vmem:[%s2627_s12 + $0x28] sm:$0xf]  ;;  %v1711_v9 = vor.u32 %v2140_v63, %v1708_v0 }
 0x182   : > { %1187 = vmatpush.bf16.msrb.mxu0 %v1683_v31  ;;  %1201 = vmatpush.bf16.msrb.mxu1 %v1687_v34  ;;  %v1826_v31 = vld [vmem:[%s2627_s12 + $0x1a0] sm:$0xf]  ;;  %v1903_v34 = vor.u32 %v2188_v26, %v1900_v27  ;;  %v2124_v11 = vld [vmem:[%s2627_s12 + $0x2c] sm:$0xf]  ;;  %v2098_v13 = vld [vmem:[%s2627_s12 + $0x3b0] sm:$0xf] }
 0x183   : > { %1215 = vmatpush.bf16.msrb.mxu2 %v1691_v35  ;;  %v1828_v35 = vld [vmem:[%s2627_s12 + $0x1e0] sm:$0xf0]  ;;  %v1827_v40 = vor.u32 %v2179_v32, %v1826_v31  ;;  %v1644_v12 = vld [vmem:[%s2627_s12 + $0x68] sm:$0xf0]  ;;  %v2245_v14 = vld [vmem:[%s2627_s12 + $0x3ec] sm:$0xf0] }
 0x184   : > { %1229 = vmatpush.bf16.msrb.mxu3 %v1695_v39  ;;  %v1836_v39 = vld [vmem:[%s2627_s12 + $0x1e8] sm:$0xf0]  ;;  %v1831_v41 = vor.u32 %v2171_v33, %v1828_v35  ;;  %v2237_v15 = vld [vmem:[%s2627_s12 + $0x3b4] sm:$0xf]  ;;  %v2246_v19 = vld [vmem:[%s2627_s12 + $0x3f4] sm:$0xf0]  ;;  %v1647_v24 = vor.u32 %v2124_v11, %v1644_v12  ;;  %v2099_v25 = vor.u32 %v2245_v14, %v2098_v13 }
 0x185   : > { %v2108_v23 = vld [vmem:[%s2627_s12 + $0x3f8] sm:$0xf0]  ;;  %v2036_v32 = vld [vmem:[%s2627_s12 + $0x370] sm:$0xf0]  ;;  %v2042_v33 = vld [vmem:[%s2627_s12 + $0x338] sm:$0xf] }
 0x186   : > { %1188 = vmatpush.bf16.msrb.mxu0 %v1619_v46  ;;  %1202 = vmatpush.bf16.msrb.mxu1 %v1623_v51  ;;  %v1839_v46 = vor.u32 %v2172_v38, %v1836_v39  ;;  %v2156_v51 = vld [vmem:[%s2627_s12 + $0x12c] sm:$0xf]  ;;  %v2222_v35 = vld [vmem:[%s2627_s12 + $0x33c] sm:$0xf]  ;;  %v1972_v44 = vld [vmem:[%s2627_s12 + $0x2f0] sm:$0xf0] }
 0x187   : > { %1216 = vmatpush.bf16.msrb.mxu2 %v1627_v52  ;;  %v1772_v52 = vld [vmem:[%s2627_s12 + $0x168] sm:$0xf0]  ;;  %v2044_v36 = vld [vmem:[%s2627_s12 + $0x378] sm:$0xf0]  ;;  %v1978_v45 = vld [vmem:[%s2627_s12 + $0x2b8] sm:$0xf] }
 0x188   : > { %1230 = vmatpush.bf16.msrb.mxu3 %v1631_v55  ;;  %v1771_v55 = vor.u32 %v2164_v50, %v1770_v49  ;;  %v1775_v59 = vor.u32 %v2156_v51, %v1772_v52  ;;  %v2047_v43 = vor.u32 %v2222_v35, %v2044_v36  ;;  %v2206_v48 = vld [vmem:[%s2627_s12 + $0x2bc] sm:$0xf]  ;;  %v1778_v13 = vld [vmem:[%s2627_s12 + $0x130] sm:$0xf] }
 0x189   : > { %1189 = vmatmul.bf16.vlgmr.msrb.gmra.mxu0 %v2730_v47  ;;  %1203 = vmatmul.bf16.vlgmr.msrb.gmra.mxu1 %v2730_v47  ;;  %v1980_v49 = vld [vmem:[%s2627_s12 + $0x2f8] sm:$0xf0]  ;;  %v2165_v14 = vld [vmem:[%s2627_s12 + $0x16c] sm:$0xf0] }
 0x18a   : > { %1237 = vmatpush.bf16.msra.mxu0 %v2083_v56  ;;  %1251 = vmatpush.bf16.msra.mxu1 %v2087_v57  ;;  %v1698_v56 = vld [vmem:[%s2627_s12 + $0xa0] sm:$0xf] }
 0x18b   : > { %1265 = vmatpush.bf16.msra.mxu2 %v2091_v58  ;;  %1231 = vmatmul.bf16.vlgmr.msrb.gmra.mxu3 %v2730_v47  ;;  %v2147_v57 = vld [vmem:[%s2627_s12 + $0xdc] sm:$0xf0]  ;;  %v2139_v58 = vld [vmem:[%s2627_s12 + $0xa4] sm:$0xf] }
 0x18c   : > { %1279 = vmatpush.bf16.msra.mxu3 %v2095_v62  ;;  %1217 = vmatmul.bf16.vlgmr.msrb.gmra.mxu2 %v2730_v47  ;;  %v2148_v62 = vld [vmem:[%s2627_s12 + $0xe4] sm:$0xf0]  ;;  %v1699_v1 = vor.u32 %v2147_v57, %v1698_v56  ;;  %v1983_v56 = vor.u32 %v2206_v48, %v1980_v49  ;;  %v1908_v57 = vld [vmem:[%s2627_s12 + $0x270] sm:$0xf0] }
 0x18e   : > { %1238 = vmatpush.bf16.msra.mxu0 %v2019_v4  ;;  %1252 = vmatpush.bf16.msra.mxu1 %v2023_v5  ;;  %v1703_v4 = vor.u32 %v2139_v58, %v1700_v60  ;;  %v1707_v5 = vor.u32 %v2148_v62, %v1706_v61  ;;  %v1914_v58 = vld [vmem:[%s2627_s12 + $0x238] sm:$0xf]  ;;  %v2190_v60 = vld [vmem:[%s2627_s12 + $0x23c] sm:$0xf] }
 0x18f   : > { %1266 = vmatpush.bf16.msra.mxu2 %v2027_v6  ;;  %v2123_v6 = vld [vmem:[%s2627_s12 + $0x24] sm:$0xf]  ;;  %v1916_v61 = vld [vmem:[%s2627_s12 + $0x278] sm:$0xf0] }
 0x190   : > { %1280 = vmatpush.bf16.msra.mxu3 %v2031_v10  ;;  %v2132_v10 = vld [vmem:[%s2627_s12 + $0x64] sm:$0xf0]  ;;  %v1639_v20 = vor.u32 %v2123_v6, %v1636_v7  ;;  %v1850_v6 = vld [vmem:[%s2627_s12 + $0x1b8] sm:$0xf] }
 0x191   : > { %v1643_v21 = vor.u32 %v2132_v10, %v1642_v8  ;;  %v2182_v7 = vld [vmem:[%s2627_s12 + $0x1f4] sm:$0xf0]  ;;  %v2174_v8 = vld [vmem:[%s2627_s12 + $0x1bc] sm:$0xf] }
 0x192   : > { %1239 = vmatpush.bf16.msra.mxu0 %v1955_v16  ;;  %1253 = vmatpush.bf16.msra.mxu1 %v1959_v17  ;;  %v1635_v16 = vor.u32 %v2131_v3, %v1634_v2  ;;  %v2100_v17 = vld [vmem:[%s2627_s12 + $0x3f0] sm:$0xf0]  ;;  %v2181_v2 = vld [vmem:[%s2627_s12 + $0x1ec] sm:$0xf0]  ;;  %v1851_v12 = vor.u32 %v2182_v7, %v1850_v6 }
 0x193   : > { %1267 = vmatpush.bf16.msra.mxu2 %v1963_v18  ;;  %v2106_v18 = vld [vmem:[%s2627_s12 + $0x3b8] sm:$0xf]  ;;  %v2103_v26 = vor.u32 %v2237_v15, %v2100_v17  ;;  %v2173_v3 = vld [vmem:[%s2627_s12 + $0x1b4] sm:$0xf] }
 0x194   : > { %1281 = vmatpush.bf16.msra.mxu3 %v1967_v22  ;;  %v2238_v22 = vld [vmem:[%s2627_s12 + $0x3bc] sm:$0xf]  ;;  %v2107_v27 = vor.u32 %v2246_v19, %v2106_v18  ;;  %v2157_v15 = vld [vmem:[%s2627_s12 + $0x134] sm:$0xf]  ;;  %v1786_v18 = vld [vmem:[%s2627_s12 + $0x138] sm:$0xf] }
 0x195   : > { %v2111_v31 = vor.u32 %v2238_v22, %v2108_v23  ;;  %v1780_v17 = vld [vmem:[%s2627_s12 + $0x170] sm:$0xf0]  ;;  %v2166_v19 = vld [vmem:[%s2627_s12 + $0x174] sm:$0xf0]  ;;  %v1779_v22 = vor.u32 %v2165_v14, %v1778_v13 }
 0x196   : > { %1240 = vmatpush.bf16.msra.mxu0 %v1891_v28  ;;  %1254 = vmatpush.bf16.msra.mxu1 %v1895_v29  ;;  %v2034_v28 = vld [vmem:[%s2627_s12 + $0x330] sm:$0xf]  ;;  %v1783_v23 = vor.u32 %v2157_v15, %v1780_v17 }
 0x197   : > { %1268 = vmatpush.bf16.msra.mxu2 %v1899_v30  ;;  %v2229_v29 = vld [vmem:[%s2627_s12 + $0x36c] sm:$0xf0]  ;;  %v2221_v30 = vld [vmem:[%s2627_s12 + $0x334] sm:$0xf] }
 0x198   : > { %1282 = vmatpush.bf16.msra.mxu3 %v1903_v34  ;;  %v2230_v34 = vld [vmem:[%s2627_s12 + $0x374] sm:$0xf0]  ;;  %v2035_v37 = vor.u32 %v2229_v29, %v2034_v28  ;;  %v2039_v38 = vor.u32 %v2221_v30, %v2036_v32  ;;  %v1716_v29 = vld [vmem:[%s2627_s12 + $0xf0] sm:$0xf0]  ;;  %v2142_v32 = vld [vmem:[%s2627_s12 + $0xbc] sm:$0xf] }
 0x199   : > { %v2043_v39 = vor.u32 %v2230_v34, %v2042_v33  ;;  %v1722_v30 = vld [vmem:[%s2627_s12 + $0xb8] sm:$0xf]  ;;  %v1724_v33 = vld [vmem:[%s2627_s12 + $0xf8] sm:$0xf0] }
 0x19a   : > { %1241 = vmatpush.bf16.msra.mxu0 %v1827_v40  ;;  %1255 = vmatpush.bf16.msra.mxu1 %v1831_v41  ;;  %v1970_v40 = vld [vmem:[%s2627_s12 + $0x2b0] sm:$0xf] }
 0x19b   : > { %1269 = vmatpush.bf16.msra.mxu2 %v1835_v42  ;;  %v2213_v41 = vld [vmem:[%s2627_s12 + $0x2ec] sm:$0xf0]  ;;  %v2205_v42 = vld [vmem:[%s2627_s12 + $0x2b4] sm:$0xf] }
 0x19c   : > { %1283 = vmatpush.bf16.msra.mxu3 %v1839_v46  ;;  %v2214_v46 = vld [vmem:[%s2627_s12 + $0x2f4] sm:$0xf0]  ;;  %v1971_v50 = vor.u32 %v2213_v41, %v1970_v40  ;;  %v1975_v51 = vor.u32 %v2205_v42, %v1972_v44  ;;  %v1727_v40 = vor.u32 %v2142_v32, %v1724_v33  ;;  %v1652_v41 = vld [vmem:[%s2627_s12 + $0x70] sm:$0xf0]  ;;  %v2126_v44 = vld [vmem:[%s2627_s12 + $0x3c] sm:$0xf] }
 0x19d   : > { %v1979_v52 = vor.u32 %v2214_v46, %v1978_v45  ;;  %v1658_v42 = vld [vmem:[%s2627_s12 + $0x38] sm:$0xf]  ;;  %v1660_v45 = vld [vmem:[%s2627_s12 + $0x78] sm:$0xf0] }
 0x19e   : > { %1242 = vmatpush.bf16.msra.mxu0 %v1763_v53  ;;  %1256 = vmatpush.bf16.msra.mxu1 %v1767_v54  ;;  %v1906_v53 = vld [vmem:[%s2627_s12 + $0x230] sm:$0xf] }
 0x19f   : > { %1270 = vmatpush.bf16.msra.mxu2 %v1771_v55  ;;  %v2197_v54 = vld [vmem:[%s2627_s12 + $0x26c] sm:$0xf0]  ;;  %v2189_v55 = vld [vmem:[%s2627_s12 + $0x234] sm:$0xf] }
 0x1a0   : > { %1284 = vmatpush.bf16.msra.mxu3 %v1775_v59  ;;  %v2198_v59 = vld [vmem:[%s2627_s12 + $0x274] sm:$0xf0]  ;;  %v1907_v62 = vor.u32 %v2197_v54, %v1906_v53  ;;  %v1911_v63 = vor.u32 %v2189_v55, %v1908_v57 }
 0x1a1   : > { %v1915_v0 = vor.u32 %v2198_v59, %v1914_v58 }
 0x1a2   : > { %1243 = vmatpush.bf16.msra.mxu0 %v1699_v1  ;;  %1257 = vmatpush.bf16.msra.mxu1 %v1703_v4  ;;  %v1842_v1 = vld [vmem:[%s2627_s12 + $0x1b0] sm:$0xf]  ;;  %v1919_v4 = vor.u32 %v2190_v60, %v1916_v61 }
 0x1a3   : > { %1271 = vmatpush.bf16.msra.mxu2 %v1707_v5  ;;  %v1844_v5 = vld [vmem:[%s2627_s12 + $0x1f0] sm:$0xf0]  ;;  %v1843_v10 = vor.u32 %v2181_v2, %v1842_v1 }
 0x1a4   : > { %1285 = vmatpush.bf16.msra.mxu3 %v1711_v9  ;;  %v1852_v9 = vld [vmem:[%s2627_s12 + $0x1f8] sm:$0xf0]  ;;  %v1847_v11 = vor.u32 %v2173_v3, %v1844_v5 }
 0x1a6   : > { %1244 = vmatpush.bf16.msra.mxu0 %v1635_v16  ;;  %1258 = vmatpush.bf16.msra.mxu1 %v1639_v20  ;;  %v1855_v16 = vor.u32 %v2174_v8, %v1852_v9  ;;  %v2158_v20 = vld [vmem:[%s2627_s12 + $0x13c] sm:$0xf] }
 0x1a7   : > { %1272 = vmatpush.bf16.msra.mxu2 %v1643_v21  ;;  %v1788_v21 = vld [vmem:[%s2627_s12 + $0x178] sm:$0xf0] }
 0x1a8   : > { %1286 = vmatpush.bf16.msra.mxu3 %v1647_v24  ;;  %v1787_v24 = vor.u32 %v2166_v19, %v1786_v18  ;;  %v1791_v28 = vor.u32 %v2158_v20, %v1788_v21 }
 0x1a9   : > { %1245 = vmatmul.bf16.vlgmr.msra.gmra.mxu0 %v2730_v47  ;;  %1259 = vmatmul.bf16.vlgmr.msra.gmra.mxu1 %v2730_v47 }
 0x1aa   : > { %1293 = vmatpush.bf16.msrb.mxu0 %v2099_v25  ;;  %1307 = vmatpush.bf16.msrb.mxu1 %v2103_v26  ;;  %v1714_v25 = vld [vmem:[%s2627_s12 + $0xb0] sm:$0xf] }
 0x1ab   : > { %1321 = vmatpush.bf16.msrb.mxu2 %v2107_v27  ;;  %1287 = vmatmul.bf16.vlgmr.msra.gmra.mxu3 %v2730_v47  ;;  %v2149_v26 = vld [vmem:[%s2627_s12 + $0xec] sm:$0xf0]  ;;  %v2141_v27 = vld [vmem:[%s2627_s12 + $0xb4] sm:$0xf] }
 0x1ac   : > { %1335 = vmatpush.bf16.msrb.mxu3 %v2111_v31  ;;  %1273 = vmatmul.bf16.vlgmr.msra.gmra.mxu2 %v2730_v47  ;;  %v2150_v31 = vld [vmem:[%s2627_s12 + $0xf4] sm:$0xf0]  ;;  %v1715_v34 = vor.u32 %v2149_v26, %v1714_v25  ;;  %v1719_v35 = vor.u32 %v2141_v27, %v1716_v29 }
 0x1ad   : > { %v1723_v36 = vor.u32 %v2150_v31, %v1722_v30 }
 0x1ae   : > { %1294 = vmatpush.bf16.msrb.mxu0 %v2035_v37  ;;  %1308 = vmatpush.bf16.msrb.mxu1 %v2039_v38  ;;  %v1650_v37 = vld [vmem:[%s2627_s12 + $0x30] sm:$0xf] }
 0x1af   : > { %1322 = vmatpush.bf16.msrb.mxu2 %v2043_v39  ;;  %v2133_v38 = vld [vmem:[%s2627_s12 + $0x6c] sm:$0xf0]  ;;  %v2125_v39 = vld [vmem:[%s2627_s12 + $0x34] sm:$0xf] }
 0x1b0   : > { %1336 = vmatpush.bf16.msrb.mxu3 %v2047_v43  ;;  %v2134_v43 = vld [vmem:[%s2627_s12 + $0x74] sm:$0xf0]  ;;  %v1651_v46 = vor.u32 %v2133_v38, %v1650_v37  ;;  %v1655_v48 = vor.u32 %v2125_v39, %v1652_v41 }
 0x1b1   : > { %v1659_v49 = vor.u32 %v2134_v43, %v1658_v42 }
 0x1b2   : > { %1295 = vmatpush.bf16.msrb.mxu0 %v1971_v50  ;;  %1309 = vmatpush.bf16.msrb.mxu1 %v1975_v51  ;;  %v1663_v50 = vor.u32 %v2126_v44, %v1660_v45 }
 0x1b3   : > { %1323 = vmatpush.bf16.msrb.mxu2 %v1979_v52 }
 0x1b4   : > { %1337 = vmatpush.bf16.msrb.mxu3 %v1983_v56 }
 0x1b6   : > { %1296 = vmatpush.bf16.msrb.mxu0 %v1907_v62  ;;  %1310 = vmatpush.bf16.msrb.mxu1 %v1911_v63 }
 0x1b7   : > { %1324 = vmatpush.bf16.msrb.mxu2 %v1915_v0 }
 0x1b8   : > { %1338 = vmatpush.bf16.msrb.mxu3 %v1919_v4 }
 0x1ba   : > { %1297 = vmatpush.bf16.msrb.mxu0 %v1843_v10  ;;  %1311 = vmatpush.bf16.msrb.mxu1 %v1847_v11 }
 0x1bb   : > { %1325 = vmatpush.bf16.msrb.mxu2 %v1851_v12 }
 0x1bc   : > { %1339 = vmatpush.bf16.msrb.mxu3 %v1855_v16 }
 0x1be   : > { %1298 = vmatpush.bf16.msrb.mxu0 %v1779_v22  ;;  %1312 = vmatpush.bf16.msrb.mxu1 %v1783_v23 }
 0x1bf   : > { %1326 = vmatpush.bf16.msrb.mxu2 %v1787_v24 }
 0x1c0   : > { %1340 = vmatpush.bf16.msrb.mxu3 %v1791_v28 }
 0x1c2   : > { %1299 = vmatpush.bf16.msrb.mxu0 %v1715_v34  ;;  %1313 = vmatpush.bf16.msrb.mxu1 %v1719_v35 }
 0x1c3   : > { %1327 = vmatpush.bf16.msrb.mxu2 %v1723_v36 }
 0x1c4   : > { %1341 = vmatpush.bf16.msrb.mxu3 %v1727_v40 }
 0x1c6   : > { %1300 = vmatpush.bf16.msrb.mxu0 %v1651_v46  ;;  %1314 = vmatpush.bf16.msrb.mxu1 %v1655_v48 }
 0x1c7   : > { %1328 = vmatpush.bf16.msrb.mxu2 %v1659_v49 }
 0x1c8   : > { %1342 = vmatpush.bf16.msrb.mxu3 %v1663_v50 }
 0x1c9   : > { %1301 = vmatmul.bf16.vlgmr.msrb.gmra.mxu0 %v2730_v47  ;;  %1315 = vmatmul.bf16.vlgmr.msrb.gmra.mxu1 %v2730_v47 }
 0x1ca   : > { %1329 = vmatmul.bf16.vlgmr.msrb.gmra.mxu2 %v2730_v47 }
 0x1cb   : > { %1343 = vmatmul.bf16.vlgmr.msrb.gmra.mxu3 %v2730_v47 }
 0x1e6   : > { %v1134_v51 = vpop.f32.mrf.mxu0  ;;  %v1148_v52 = vpop.f32.mrf.mxu1 }
 0x1e7   : > { %1349 = vst [vmem:[%s2633_s23] sm:$0xff] %v1134_v51 }
 0x1e8   : > { %1350 = vst [vmem:[%s2633_s23 + $0x8] sm:$0xff] %v1148_v52 }
 0x1ee   : > { %v1176_v54 = vpop.f32.mrf.mxu3  ;;  %v1136_v55 = vpop.f32.mrf.mxu0  ;;  %v1406_v18 = vld [vmem:[%s2633_s23] sm:$0xff] (%p2571_p8) }
 0x1ef   : > { %v1162_v53 = vpop.f32.mrf.mxu2  ;;  %1352 = vst [vmem:[%s2633_s23 + $0x18] sm:$0xff] %v1176_v54  ;;  %v1150_v56 = vpop.f32.mrf.mxu1  ;;  %v1408_v19 = vld [vmem:[%s2633_s23 + $0x8] sm:$0xff] (%p2571_p8) }
 0x1f0   : > { %1351 = vst [vmem:[%s2633_s23 + $0x10] sm:$0xff] %v1162_v53 }
 0x1f1   : > { %1365 = vst [vmem:[%s2633_s23 + $0x80] sm:$0xff] %v1136_v55 }
 0x1f2   : > { %1366 = vst [vmem:[%s2633_s23 + $0x88] sm:$0xff] %v1150_v56 }
 0x1f3   : > { %1407 = vst [vmem:[%s2956_s6] sm:$0xff] (%p2571_p8), %v1406_v18 }
 0x1f4   : > { %1409 = vst [vmem:[%s2956_s6 + $0x8] sm:$0xff] (%p2571_p8), %v1408_v19 }
 0x1f6   : > { %v1178_v57 = vpop.f32.mrf.mxu3  ;;  %v1412_v21 = vld [vmem:[%s2633_s23 + $0x18] sm:$0xff] (%p2571_p8) }
 0x1f7   : > { %v1164_v47 = vpop.f32.mrf.mxu2  ;;  %1368 = vst [vmem:[%s2633_s23 + $0x98] sm:$0xff] %v1178_v57  ;;  %v1410_v20 = vld [vmem:[%s2633_s23 + $0x10] sm:$0xff] (%p2571_p8) }
 0x1f8   : > { %1367 = vst [vmem:[%s2633_s23 + $0x90] sm:$0xff] %v1164_v47  ;;  %v1438_v34 = vld [vmem:[%s2633_s23 + $0x80] sm:$0xff] (%p2571_p8) }
 0x1f9   : > { %1411 = vst [vmem:[%s2956_s6 + $0x10] sm:$0xff] (%p2571_p8), %v1410_v20  ;;  %v1440_v35 = vld [vmem:[%s2633_s23 + $0x88] sm:$0xff] (%p2571_p8) }
 0x1fa   : > { %1413 = vst [vmem:[%s2956_s6 + $0x18] sm:$0xff] (%p2571_p8), %v1412_v21 }
 0x1fb   : > { %1439 = vst [vmem:[%s2956_s6 + $0xc80] sm:$0xff] (%p2571_p8), %v1438_v34 }
 0x1fc   : > { %1441 = vst [vmem:[%s2956_s6 + $0xc88] sm:$0xff] (%p2571_p8), %v1440_v35 }
 0x1fe   : > { %v1444_v37 = vld [vmem:[%s2633_s23 + $0x98] sm:$0xff] (%p2571_p8) }
 0x1ff   : > { %v1442_v36 = vld [vmem:[%s2633_s23 + $0x90] sm:$0xff] (%p2571_p8)  ;;  %1445 = vst [vmem:[%s2956_s6 + $0xc98] sm:$0xff] (%p2571_p8), %v1444_v37 }
 0x200   : > { %1443 = vst [vmem:[%s2956_s6 + $0xc90] sm:$0xff] (%p2571_p8), %v1442_v36 }
 0x206   : > { %v1190_v58 = vpop.f32.mrf.mxu0  ;;  %v1204_v59 = vpop.f32.mrf.mxu1 }
 0x207   : > { %1353 = vst [vmem:[%s2633_s23 + $0x20] sm:$0xff] %v1190_v58 }
 0x208   : > { %1354 = vst [vmem:[%s2633_s23 + $0x28] sm:$0xff] %v1204_v59 }
 0x20e   : > { %v1232_v61 = vpop.f32.mrf.mxu3  ;;  %v1192_v62 = vpop.f32.mrf.mxu0  ;;  %v1414_v22 = vld [vmem:[%s2633_s23 + $0x20] sm:$0xff] (%p2571_p8) }
 0x20f   : > { %v1218_v60 = vpop.f32.mrf.mxu2  ;;  %1356 = vst [vmem:[%s2633_s23 + $0x38] sm:$0xff] %v1232_v61  ;;  %v1206_v63 = vpop.f32.mrf.mxu1  ;;  %v1416_v23 = vld [vmem:[%s2633_s23 + $0x28] sm:$0xff] (%p2571_p8) }
 0x210   : > { %1355 = vst [vmem:[%s2633_s23 + $0x30] sm:$0xff] %v1218_v60 }
 0x211   : > { %1369 = vst [vmem:[%s2633_s23 + $0xa0] sm:$0xff] %v1192_v62 }
 0x212   : > { %1370 = vst [vmem:[%s2633_s23 + $0xa8] sm:$0xff] %v1206_v63 }
 0x213   : > { %1415 = vst [vmem:[%s2956_s6 + $0x20] sm:$0xff] (%p2571_p8), %v1414_v22 }
 0x214   : > { %1417 = vst [vmem:[%s2956_s6 + $0x28] sm:$0xff] (%p2571_p8), %v1416_v23 }
 0x216   : > { %v1234_v1 = vpop.f32.mrf.mxu3  ;;  %v1420_v25 = vld [vmem:[%s2633_s23 + $0x38] sm:$0xff] (%p2571_p8) }
 0x217   : > { %v1220_v0 = vpop.f32.mrf.mxu2  ;;  %1372 = vst [vmem:[%s2633_s23 + $0xb8] sm:$0xff] %v1234_v1  ;;  %v1418_v24 = vld [vmem:[%s2633_s23 + $0x30] sm:$0xff] (%p2571_p8) }
 0x218   : > { %1371 = vst [vmem:[%s2633_s23 + $0xb0] sm:$0xff] %v1220_v0  ;;  %v1446_v38 = vld [vmem:[%s2633_s23 + $0xa0] sm:$0xff] (%p2571_p8) }
 0x219   : > { %1419 = vst [vmem:[%s2956_s6 + $0x30] sm:$0xff] (%p2571_p8), %v1418_v24  ;;  %v1448_v39 = vld [vmem:[%s2633_s23 + $0xa8] sm:$0xff] (%p2571_p8) }
 0x21a   : > { %1421 = vst [vmem:[%s2956_s6 + $0x38] sm:$0xff] (%p2571_p8), %v1420_v25 }
 0x21b   : > { %1447 = vst [vmem:[%s2956_s6 + $0xca0] sm:$0xff] (%p2571_p8), %v1446_v38 }
 0x21c   : > { %1449 = vst [vmem:[%s2956_s6 + $0xca8] sm:$0xff] (%p2571_p8), %v1448_v39 }
 0x21e   : > { %v1452_v41 = vld [vmem:[%s2633_s23 + $0xb8] sm:$0xff] (%p2571_p8) }
 0x21f   : > { %v1450_v40 = vld [vmem:[%s2633_s23 + $0xb0] sm:$0xff] (%p2571_p8)  ;;  %1453 = vst [vmem:[%s2956_s6 + $0xcb8] sm:$0xff] (%p2571_p8), %v1452_v41 }
 0x220   : > { %1451 = vst [vmem:[%s2956_s6 + $0xcb0] sm:$0xff] (%p2571_p8), %v1450_v40 }
 0x226   : > { %v1246_v2 = vpop.f32.mrf.mxu0  ;;  %v1260_v3 = vpop.f32.mrf.mxu1 }
 0x227   : > { %1357 = vst [vmem:[%s2633_s23 + $0x40] sm:$0xff] %v1246_v2 }
 0x228   : > { %1358 = vst [vmem:[%s2633_s23 + $0x48] sm:$0xff] %v1260_v3 }
 0x22e   : > { %v1288_v5 = vpop.f32.mrf.mxu3  ;;  %v1248_v6 = vpop.f32.mrf.mxu0  ;;  %v1422_v26 = vld [vmem:[%s2633_s23 + $0x40] sm:$0xff] (%p2571_p8) }
 0x22f   : > { %v1274_v4 = vpop.f32.mrf.mxu2  ;;  %1360 = vst [vmem:[%s2633_s23 + $0x58] sm:$0xff] %v1288_v5  ;;  %v1262_v7 = vpop.f32.mrf.mxu1  ;;  %v1424_v27 = vld [vmem:[%s2633_s23 + $0x48] sm:$0xff] (%p2571_p8) }
 0x230   : > { %1359 = vst [vmem:[%s2633_s23 + $0x50] sm:$0xff] %v1274_v4 }
 0x231   : > { %1373 = vst [vmem:[%s2633_s23 + $0xc0] sm:$0xff] %v1248_v6 }
 0x232   : > { %1374 = vst [vmem:[%s2633_s23 + $0xc8] sm:$0xff] %v1262_v7 }
 0x233   : > { %1423 = vst [vmem:[%s2956_s6 + $0x40] sm:$0xff] (%p2571_p8), %v1422_v26 }
 0x234   : > { %1425 = vst [vmem:[%s2956_s6 + $0x48] sm:$0xff] (%p2571_p8), %v1424_v27 }
 0x236   : > { %v1290_v9 = vpop.f32.mrf.mxu3  ;;  %v1428_v29 = vld [vmem:[%s2633_s23 + $0x58] sm:$0xff] (%p2571_p8) }
 0x237   : > { %v1276_v8 = vpop.f32.mrf.mxu2  ;;  %1376 = vst [vmem:[%s2633_s23 + $0xd8] sm:$0xff] %v1290_v9  ;;  %v1426_v28 = vld [vmem:[%s2633_s23 + $0x50] sm:$0xff] (%p2571_p8) }
 0x238   : > { %1375 = vst [vmem:[%s2633_s23 + $0xd0] sm:$0xff] %v1276_v8  ;;  %v1454_v42 = vld [vmem:[%s2633_s23 + $0xc0] sm:$0xff] (%p2571_p8) }
 0x239   : > { %1427 = vst [vmem:[%s2956_s6 + $0x50] sm:$0xff] (%p2571_p8), %v1426_v28  ;;  %v1456_v43 = vld [vmem:[%s2633_s23 + $0xc8] sm:$0xff] (%p2571_p8) }
 0x23a   : > { %1429 = vst [vmem:[%s2956_s6 + $0x58] sm:$0xff] (%p2571_p8), %v1428_v29 }
 0x23b   : > { %1455 = vst [vmem:[%s2956_s6 + $0xcc0] sm:$0xff] (%p2571_p8), %v1454_v42 }
 0x23c   : > { %1457 = vst [vmem:[%s2956_s6 + $0xcc8] sm:$0xff] (%p2571_p8), %v1456_v43 }
 0x23e   : > { %v1460_v45 = vld [vmem:[%s2633_s23 + $0xd8] sm:$0xff] (%p2571_p8) }
 0x23f   : > { %v1458_v44 = vld [vmem:[%s2633_s23 + $0xd0] sm:$0xff] (%p2571_p8)  ;;  %1461 = vst [vmem:[%s2956_s6 + $0xcd8] sm:$0xff] (%p2571_p8), %v1460_v45 }
 0x240   : > { %1459 = vst [vmem:[%s2956_s6 + $0xcd0] sm:$0xff] (%p2571_p8), %v1458_v44 }
 0x246   : > { %v1302_v10 = vpop.f32.mrf.mxu0  ;;  %v1316_v11 = vpop.f32.mrf.mxu1 }
 0x247   : > { %1361 = vst [vmem:[%s2633_s23 + $0x60] sm:$0xff] %v1302_v10 }
 0x248   : > { %1362 = vst [vmem:[%s2633_s23 + $0x68] sm:$0xff] %v1316_v11 }
 0x24d   : > { %v1330_v12 = vpop.f32.mrf.mxu2 }
 0x24e   : > { %1363 = vst [vmem:[%s2633_s23 + $0x70] sm:$0xff] %v1330_v12  ;;  %v1344_v13 = vpop.f32.mrf.mxu3  ;;  %v1304_v14 = vpop.f32.mrf.mxu0  ;;  %v1430_v30 = vld [vmem:[%s2633_s23 + $0x60] sm:$0xff] (%p2571_p8) }
 0x24f   : > { %1364 = vst [vmem:[%s2633_s23 + $0x78] sm:$0xff] %v1344_v13  ;;  %v1318_v15 = vpop.f32.mrf.mxu1  ;;  %v1432_v31 = vld [vmem:[%s2633_s23 + $0x68] sm:$0xff] (%p2571_p8) }
 0x250   : > { %1377 = vst [vmem:[%s2633_s23 + $0xe0] sm:$0xff] %v1304_v14 }
 0x251   : > { %1378 = vst [vmem:[%s2633_s23 + $0xe8] sm:$0xff] %v1318_v15 }
 0x252   : > { %1431 = vst [vmem:[%s2956_s6 + $0x60] sm:$0xff] (%p2571_p8), %v1430_v30 }
 0x253   : > { %1387 = sbr.rel (!%p2571_p8) target bundleno = 608 (0x260), region = 56  ;;  %1433 = vst [vmem:[%s2956_s6 + $0x68] sm:$0xff] (%p2571_p8), %v1432_v31 }
 0x255   : > { %v1332_v16 = vpop.f32.mrf.mxu2  ;;  %v1434_v32 = vld [vmem:[%s2633_s23 + $0x70] sm:$0xff] (%p2571_p8) }
 0x256   : > { %1379 = vst [vmem:[%s2633_s23 + $0xf0] sm:$0xff] %v1332_v16  ;;  %v1346_v17 = vpop.f32.mrf.mxu3  ;;  %v1436_v33 = vld [vmem:[%s2633_s23 + $0x78] sm:$0xff] (%p2571_p8) }
 0x257   : > { %1380 = vst [vmem:[%s2633_s23 + $0xf8] sm:$0xff] %v1346_v17  ;;  %v1462_v46 = vld [vmem:[%s2633_s23 + $0xe0] sm:$0xff] (%p2571_p8) }
 0x258   : > { %1435 = vst [vmem:[%s2956_s6 + $0x70] sm:$0xff] %v1434_v32  ;;  %v1464_v48 = vld [vmem:[%s2633_s23 + $0xe8] sm:$0xff] }
 0x259   : > { %1437 = vst [vmem:[%s2956_s6 + $0x78] sm:$0xff] %v1436_v33 }
 0x25a   : > { %1463 = vst [vmem:[%s2956_s6 + $0xce0] sm:$0xff] %v1462_v46 }
 0x25b   : > { %1465 = vst [vmem:[%s2956_s6 + $0xce8] sm:$0xff] %v1464_v48 }
 0x25d   : > { %v1466_v49 = vld [vmem:[%s2633_s23 + $0xf0] sm:$0xff] }
 0x25e   : > { %v1468_v50 = vld [vmem:[%s2633_s23 + $0xf8] sm:$0xff]  ;;  %1467 = vst [vmem:[%s2956_s6 + $0xcf0] sm:$0xff] %v1466_v49 }
 0x25f   : > { %1469 = vst [vmem:[%s2956_s6 + $0xcf8] sm:$0xff] %v1468_v50 }
 0x260 PF: > { %s16_s20 = sadd.s32 1, %s2489_s20   ;;  %s3050_s15 = smov %s2473_s16 }
 0x261   : > { %p13_p3 = scmp.ge.s32.totalorder %s16_s20, 27   ;;  %s3051_s16 = smov %s2477_s17 }
 0x262   : > { %s3052_s17 = smov %s2611_s8  ;;  %s3053_s18 = smov %s2485_s19 }
 0x263   : > { %s3054_s19 = smov %s3056_s13  ;;  %15 = sbr.rel (!%p13_p3) target bundleno = 6 (0x6), region = 113 }
 0x268   :  { %1485 = vsyncpa [#allocation4], 1 }
 0x269   :  { %1487 = vsyncpa [#allocation4 + $0x1], 1 }
 0x26a   :  { %1488 = vsyncpa [#allocation6], 1 }

// kernel: gpt2_forward.9
= control target key start
LH: loop header
LB: loop body
LE: loop exit
PB: predicated region body
PF: predicated region fallthrough
CT: control target
= control target key end

     0   :  { %15 = vsyncpa [#allocation3], 0  ;;  %s1740_s0 = inlined_call_operand.vmem [shape: f32[16,128], index: 0, kind: input, shape index: {}]   ;;  %s1741_s1 = inlined_call_operand.vmem [shape: bf16[16,128], index: 1, kind: input, shape index: {}]   ;;  %s1742_s2 = inlined_call_operand.hbm [shape: bf16[128,128], index: 2, kind: input, shape index: {}]   ;;  %s1743_s3 = inlined_call_operand.hbm [shape: f32[1,128], index: 3, kind: input, shape index: {}]   ;;  %s1744_s4 = inlined_call_operand.hbm [shape: f32[1,128], index: 4, kind: input, shape index: {}]   ;;  %s1745_s5 = inlined_call_operand.hbm [shape: f32[1,128], index: 5, kind: input, shape index: {}]   ;;  %s1746_s6 = inlined_call_operand.hbm [shape: bf16[128,512], index: 6, kind: input, shape index: {}]   ;;  %s1747_s7 = inlined_call_operand.hbm [shape: f32[1,512], index: 7, kind: input, shape index: {}]   ;;  %s1748_s8 = inlined_call_operand.hbm [shape: bf16[512,128], index: 8, kind: input, shape index: {}]   ;;  %s1749_s9 = inlined_call_operand.hbm [shape: f32[1,128], index: 9, kind: input, shape index: {}]   ;;  %s1750_s10 = inlined_call_operand.vmem [shape: f32[16,128], index: 10, kind: output, shape index: {}]  }
   0x1   :  { %16 = vsyncpa [#allocation5], 0 }
   0x2   :  { %17 = vsyncpa [#allocation8], 0 }
   0x3   :  { %18 = vsyncpa [#allocation11], 0  ;;  %s42_s15 = sshll.u32 %s1743_s3, 4  ;;  %s43_s15 = int_to_ptr.hbm [resolvable:$true] %s42_s15 }
   0x4   :  { %19 = vsyncpa [#allocation14], 0  ;;  %s1573_s16 = smov [#allocation4]   ;;  %s64_s20 = sshll.u32 %s1745_s5, 4  ;;  %s65_s20 = int_to_ptr.hbm [resolvable:$true] %s64_s20 }
   0x5   :  { %s44_s17 = sshll.u32 %s1573_s16, 4  ;;  %s1574_s21 = smov [#allocation7]   ;;  %s45_s17 = int_to_ptr.vmem [resolvable:$true] %s44_s17 }
   0x6   :  { %47 = dma.hbm_to_vmem [thread:$0]  %s43_s15, 16, %s45_s17, [#allocation5]  }
   0x7   :  { %s66_s22 = sshll.u32 %s1574_s21, 4  ;;  %s88_s25 = sshll.u32 %s1747_s7, 4  ;;  %s67_s22 = int_to_ptr.vmem [resolvable:$true] %s66_s22  ;;  %s89_s25 = int_to_ptr.hbm [resolvable:$true] %s88_s25 }
   0x8   :  { %69 = dma.hbm_to_vmem [thread:$0]  %s65_s20, 16, %s67_s22, [#allocation8]  }
   0x9   :  { %s28_s27 = sshll.u32 %s1742_s2, 4  ;;  %s1575_s28 = smov [#allocation10]   ;;  %s29_s27 = int_to_ptr.hbm [resolvable:$true] %s28_s27 }
   0xa   :  { %s90_s29 = sshll.u32 %s1575_s28, 4  ;;  %s1576_s5 = smov [#allocation2]   ;;  %s91_s29 = int_to_ptr.vmem [resolvable:$true] %s90_s29 }
   0xb   :  { %93 = dma.hbm_to_vmem [thread:$0]  %s89_s25, 64, %s91_s29, [#allocation11]  }
   0xc   :  { %s30_s30 = sshll.u32 %s1576_s5, 4  ;;  %s1577_s11 = smov 64   ;;  %s31_s30 = int_to_ptr.vmem [resolvable:$true] %s30_s30 }
   0xd   :  { %s1578_s12 = smov 4   ;;  %s53_s14 = sshll.u32 %s1744_s4, 4  ;;  %s54_s14 = int_to_ptr.hbm [resolvable:$true] %s53_s14 }
   0xe   :  { %36 = dma.hbm_to_vmem [thread:$0]  %s29_s27, 1024, %s31_s30, [#allocation3], %s1577_s11, %s1577_s11, %s1578_s12  }
   0xf   :  { %s1579_s15 = smov [#allocation6]   ;;  %s74_s18 = sshll.u32 %s1746_s6, 4  ;;  %s75_s18 = int_to_ptr.hbm [resolvable:$true] %s74_s18 }
  0x10   :  { %s55_s16 = sshll.u32 %s1579_s15, 4  ;;  %s1580_s19 = smov [#allocation9]   ;;  %s56_s16 = int_to_ptr.vmem [resolvable:$true] %s55_s16 }
  0x11   :  { %58 = dma.hbm_to_vmem [thread:$0]  %s54_s14, 16, %s56_s16, [#allocation5]  }
  0x12   :  { %s76_s20 = sshll.u32 %s1580_s19, 4  ;;  %s1581_s21 = smov 256   ;;  %s77_s20 = int_to_ptr.vmem [resolvable:$true] %s76_s20 }
  0x13   :  { %s1582_s22 = smov 16   ;;  %s98_s4 = sshll.u32 %s1748_s8, 4  ;;  %s99_s4 = int_to_ptr.hbm [resolvable:$true] %s98_s4 }
  0x14   :  { %82 = dma.hbm_to_vmem [thread:$0]  %s75_s18, 4096, %s77_s20, [#allocation8], %s1581_s21, %s1581_s21, %s1582_s22  }
  0x15   :  { %s1583_s25 = smov [#allocation12]   ;;  %s112_s6 = sshll.u32 %s1749_s9, 4  ;;  %s113_s6 = int_to_ptr.hbm [resolvable:$true] %s112_s6 }
  0x16   :  { %s100_s3 = sshll.u32 %s1583_s25, 4  ;;  %s1584_s28 = smov [#allocation13]   ;;  %s101_s3 = int_to_ptr.vmem [resolvable:$true] %s100_s3 }
  0x17   :  { %106 = dma.hbm_to_vmem [thread:$0]  %s99_s4, 4096, %s101_s3, [#allocation11], %s1577_s11, %s1577_s11, %s1578_s12  }
  0x18   :  { %s114_s29 = sshll.u32 %s1584_s28, 4  ;;  %s115_s29 = int_to_ptr.vmem [resolvable:$true] %s114_s29 }
  0x19   :  { %117 = dma.hbm_to_vmem [thread:$0]  %s113_s6, 16, %s115_s29, [#allocation14]  }
  0x1a   :  { %1563 = dma.done.wait [#allocation3], 1024  }
  0x1b   :  { %1564 = vsyncadd [#allocation3], 4294966272 }
  0x1c   :  { %1565 = dma.done.wait [#allocation5], 32  }
  0x1d   :  { %1566 = vsyncadd [#allocation5], 4294967264 }
  0x1e   :  { %1567 = dma.done.wait [#allocation8], 4112  }
  0x1f   :  { %1568 = vsyncadd [#allocation8], 4294963184 }
  0x20   :  { %1569 = dma.done.wait [#allocation11], 4160  }
  0x21   :  { %1570 = vsyncadd [#allocation11], 4294963136 }
  0x22   :  { %1571 = dma.done.wait [#allocation14], 16  }
  0x23   :  { %1572 = vsyncadd [#allocation14], 4294967280  ;;  %v1267_v0 = vld [vmem:[#allocation2 + $0x38] sm:$0xff]  ;;  %v1266_v1 = vld [vmem:[#allocation2 + $0x30] sm:$0xff]  ;;  %v1585_v18 = vmov 128.0  }
  0x24   :  { %228 = vmatpush.bf16.msra.mxu0 %v1267_v0  ;;  %v1265_v2 = vld [vmem:[#allocation2 + $0x28] sm:$0xff]  ;;  %v1264_v3 = vld [vmem:[#allocation2 + $0x20] sm:$0xff]  ;;  %v1263_v4 = vld [vmem:[#allocation2 + $0x18] sm:$0xff]  ;;  %1349 = vrcp.f32 %v1585_v18 }
  0x25   :  { %v1262_v5 = vld [vmem:[#allocation2 + $0x10] sm:$0xff]  ;;  %v1261_v6 = vld [vmem:[#allocation2 + $0x8] sm:$0xff]  ;;  %v1260_v7 = vld [vmem:[#allocation2] sm:$0xff] }
  0x26   :  { %v1259_v8 = vld [vmem:[%s1741_s1] sm:$0xff]  ;;  %v151_v14 = vld [vmem:[%s1740_s0 + $0x8] sm:$0xff]  ;;  %v1298_v34 = vld [vmem:[#allocation9 + $0xec] sm:$0xf0] }
  0x27   :  { %v1345_v9 = vld [vmem:[#allocation4] ss:$0 sm:$0xff]  ;;  %v1117_v33 = vld [vmem:[#allocation9 + $0xe0] sm:$0xf]  ;;  %v1296_v35 = vld [vmem:[#allocation9 + $0xe4] sm:$0xf] }
  0x28   :  { %229 = vmatpush.bf16.msra.mxu0 %v1266_v1  ;;  %v150_v10 = vld [vmem:[%s1740_s0] sm:$0xff]  ;;  %v1118_v36 = vor.u32 %v1298_v34, %v1117_v33  ;;  %v1119_v37 = vld [vmem:[#allocation9 + $0xf0] sm:$0xf0]  ;;  %v1125_v38 = vld [vmem:[#allocation9 + $0xe8] sm:$0xf] }
  0x29   :  { %v1299_v39 = vld [vmem:[#allocation9 + $0xf4] sm:$0xf0]  ;;  %v1122_v40 = vor.u32 %v1296_v35, %v1119_v37  ;;  %v1297_v42 = vld [vmem:[#allocation9 + $0xec] sm:$0xf]  ;;  %v1127_v43 = vld [vmem:[#allocation9 + $0xf8] sm:$0xf0] }
  0x2a   :  { %v1350_v19 = vpop.eup %1349  ;;  %v1126_v41 = vor.u32 %v1299_v39, %v1125_v38  ;;  %506 = vmatpush.bf16.msra.mxu1 %v1118_v36  ;;  %v1130_v44 = vor.u32 %v1297_v42, %v1127_v43  ;;  %v1101_v45 = vld [vmem:[#allocation9 + $0xc0] sm:$0xf]  ;;  %v1294_v46 = vld [vmem:[#allocation9 + $0xcc] sm:$0xf0]  ;;  %v1292_v47 = vld [vmem:[#allocation9 + $0xc4] sm:$0xf] }
  0x2b   :  { %v251_v20 = vmul.f32 128.0, %v1350_v19  ;;  %vm255_vm0 = vweird.f32 %v1350_v19  ;;  %520 = vmatpush.bf16.msra.mxu2 %v1122_v40  ;;  %v1102_v48 = vor.u32 %v1294_v46, %v1101_v45  ;;  %v1103_v49 = vld [vmem:[#allocation9 + $0xd0] sm:$0xf0]  ;;  %v1109_v50 = vld [vmem:[#allocation9 + $0xc8] sm:$0xf] }
  0x2c   :  { %230 = vmatpush.bf16.msra.mxu0 %v1265_v2  ;;  %534 = vmatpush.bf16.msra.mxu3 %v1126_v41  ;;  %v1295_v51 = vld [vmem:[#allocation9 + $0xd4] sm:$0xf0]  ;;  %v1106_v52 = vor.u32 %v1292_v47, %v1103_v49  ;;  %v1293_v54 = vld [vmem:[#allocation9 + $0xcc] sm:$0xf]  ;;  %v1111_v55 = vld [vmem:[#allocation9 + $0xd8] sm:$0xf0] }
  0x2d   :  { %v252_v21 = vsub.f32 1.0, %v251_v20  ;;  %v1110_v53 = vor.u32 %v1295_v51, %v1109_v50  ;;  %v1114_v56 = vor.u32 %v1293_v54, %v1111_v55  ;;  %v1085_v57 = vld [vmem:[#allocation9 + $0xa0] sm:$0xf]  ;;  %v1290_v58 = vld [vmem:[#allocation9 + $0xac] sm:$0xf0] }
  0x2e   :  { %507 = vmatpush.bf16.msra.mxu1 %v1102_v48  ;;  %v1288_v59 = vld [vmem:[#allocation9 + $0xa4] sm:$0xf]  ;;  %v1086_v60 = vor.u32 %v1290_v58, %v1085_v57  ;;  %v1087_v61 = vld [vmem:[#allocation9 + $0xb0] sm:$0xf0]  ;;  %v1093_v62 = vld [vmem:[#allocation9 + $0xa8] sm:$0xf] }
  0x2f   :  { %v253_v22 = vmul.f32 %v1350_v19, %v252_v21  ;;  %521 = vmatpush.bf16.msra.mxu2 %v1106_v52  ;;  %v1291_v63 = vld [vmem:[#allocation9 + $0xb4] sm:$0xf0]  ;;  %v1090_v0 = vor.u32 %v1288_v59, %v1087_v61  ;;  %v1289_v2 = vld [vmem:[#allocation9 + $0xac] sm:$0xf]  ;;  %v1282_v20 = vld [vmem:[#allocation9 + $0x6c] sm:$0xf0] }
  0x30   :  { %231 = vmatpush.bf16.msra.mxu0 %v1264_v3  ;;  %535 = vmatpush.bf16.msra.mxu3 %v1110_v53  ;;  %v1094_v1 = vor.u32 %v1291_v63, %v1093_v62  ;;  %v1095_v3 = vld [vmem:[#allocation9 + $0xb8] sm:$0xf0]  ;;  %v1280_v21 = vld [vmem:[#allocation9 + $0x64] sm:$0xf]  ;;  %v1037_v34 = vld [vmem:[#allocation9 + $0x40] sm:$0xf] }
  0x31   :  { %v254_v23 = vadd.f32 %v1350_v19, %v253_v22  ;;  %v1278_v35 = vld [vmem:[#allocation9 + $0x4c] sm:$0xf0]  ;;  %v1276_v36 = vld [vmem:[#allocation9 + $0x44] sm:$0xf]  ;;  %v1039_v38 = vld [vmem:[#allocation9 + $0x50] sm:$0xf0] }
  0x32   :  { %508 = vmatpush.bf16.msra.mxu1 %v1086_v60  ;;  %v1038_v37 = vor.u32 %v1278_v35, %v1037_v34  ;;  %v1045_v39 = vld [vmem:[#allocation9 + $0x48] sm:$0xf]  ;;  %v1279_v40 = vld [vmem:[#allocation9 + $0x54] sm:$0xf0]  ;;  %v1042_v41 = vor.u32 %v1276_v36, %v1039_v38  ;;  %v1277_v43 = vld [vmem:[#allocation9 + $0x4c] sm:$0xf] }
  0x33   :  { %v1680_v24 = vsel %vm255_vm0, %v1350_v19, %v254_v23  ;;  %522 = vmatpush.bf16.msra.mxu2 %v1090_v0  ;;  %v1053_v19 = vld [vmem:[#allocation9 + $0x60] sm:$0xf]  ;;  %v1055_v23 = vld [vmem:[#allocation9 + $0x70] sm:$0xf0]  ;;  %v1046_v42 = vor.u32 %v1279_v40, %v1045_v39  ;;  %v1274_v47 = vld [vmem:[#allocation9 + $0x2c] sm:$0xf0] }
  0x34   :  { %232 = vmatpush.bf16.msra.mxu0 %v1263_v4  ;;  %v1098_v4 = vor.u32 %v1289_v2, %v1095_v3  ;;  %536 = vmatpush.bf16.msra.mxu3 %v1094_v1  ;;  %v1054_v22 = vor.u32 %v1282_v20, %v1053_v19  ;;  %v1021_v46 = vld [vmem:[#allocation9 + $0x20] sm:$0xf]  ;;  %v1272_v48 = vld [vmem:[#allocation9 + $0x24] sm:$0xf]  ;;  %v1023_v50 = vld [vmem:[#allocation9 + $0x30] sm:$0xf0] }
  0x35   :  { %v1022_v49 = vor.u32 %v1274_v47, %v1021_v46  ;;  %v1029_v51 = vld [vmem:[#allocation9 + $0x28] sm:$0xf]  ;;  %v1275_v52 = vld [vmem:[#allocation9 + $0x34] sm:$0xf0]  ;;  %v1026_v53 = vor.u32 %v1272_v48, %v1023_v50  ;;  %v1273_v55 = vld [vmem:[#allocation9 + $0x2c] sm:$0xf] }
  0x36   :  { %v1030_v54 = vor.u32 %v1275_v52, %v1029_v51  ;;  %v1005_v57 = vld [vmem:[#allocation9] sm:$0xf]  ;;  %v1270_v60 = vld [vmem:[#allocation9 + $0xc] sm:$0xf0]  ;;  %v1268_v61 = vld [vmem:[#allocation9 + $0x4] sm:$0xf] }
  0x37   :  { %v1007_v62 = vld [vmem:[#allocation9 + $0x10] sm:$0xf0]  ;;  %v1006_v0 = vor.u32 %v1270_v60, %v1005_v57  ;;  %v1013_v2 = vld [vmem:[#allocation9 + $0x8] sm:$0xf]  ;;  %v1271_v3 = vld [vmem:[#allocation9 + $0x14] sm:$0xf0] }
  0x38   :  { %233 = vmatpush.bf16.msra.mxu0 %v1262_v5  ;;  %v1069_v5 = vld [vmem:[#allocation9 + $0x80] sm:$0xf]  ;;  %v1010_v1 = vor.u32 %v1268_v61, %v1007_v62  ;;  %v1347_v34 = vld [vmem:[#allocation7] ss:$0 sm:$0xff]  ;;  %v1322_v46 = vld [vmem:[#allocation12 + $0xb0] sm:$0xff] }
  0x39   :  { %v1307_v39 = vld [vmem:[#allocation12 + $0x38] sm:$0xff]  ;;  %v1304_v47 = vld [vmem:[#allocation12 + $0x20] sm:$0xff]  ;;  %v1321_v50 = vld [vmem:[#allocation12 + $0xa8] sm:$0xff] }
  0x3a   :  { %v1331_v40 = vld [vmem:[#allocation12 + $0xf8] sm:$0xff]  ;;  %v1328_v48 = vld [vmem:[#allocation12 + $0xe0] sm:$0xff]  ;;  %v1325_v60 = vld [vmem:[#allocation12 + $0xc8] sm:$0xff] }
  0x3b   :  { %v1303_v51 = vld [vmem:[#allocation12 + $0x18] sm:$0xff]  ;;  %v1310_v62 = vld [vmem:[#allocation12 + $0x50] sm:$0xff] }
  0x3c   :  { %234 = vmatpush.bf16.msra.mxu0 %v1261_v6  ;;  %v1286_v6 = vld [vmem:[#allocation9 + $0x8c] sm:$0xf0]  ;;  %v1327_v52 = vld [vmem:[#allocation12 + $0xd8] sm:$0xff] }
  0x3d   :  { %v1311_v57 = vld [vmem:[#allocation12 + $0x58] sm:$0xff] }
  0x3e   :  { %v1698_v61 = vld [vmem:[#allocation10] sm:$0xf] }
  0x40   :  { %235 = vmatpush.bf16.msra.mxu0 %v1260_v7  ;;  %v1284_v7 = vld [vmem:[#allocation9 + $0x84] sm:$0xf] }
  0x43   :  { %236 = vmatmul.bf16.vlgmr.msra.gmra.mxu0 %v1259_v8  ;;  %v1070_v8 = vor.u32 %v1286_v6, %v1069_v5  ;;  %v1014_v5 = vor.u32 %v1271_v3, %v1013_v2  ;;  %v1015_v6 = vld [vmem:[#allocation9 + $0x18] sm:$0xf0]  ;;  %v338_v2 = vperm.slane %v1698_v61, 0  ;;  %v341_v3 = vperm.slane %v1698_v61, 3 }
  0x44   :  { %548 = vmatpush.bf16.msrb.mxu0 %v1130_v44  ;;  %v1047_v44 = vld [vmem:[#allocation9 + $0x58] sm:$0xf0] }
  0x45   :  { %509 = vmatpush.bf16.msra.mxu1 %v1070_v8  ;;  %v1050_v45 = vor.u32 %v1277_v43, %v1047_v44  ;;  %v1305_v43 = vld [vmem:[#allocation12 + $0x28] sm:$0xff] }
  0x46   :  { %v1329_v44 = vld [vmem:[#allocation12 + $0xe8] sm:$0xff] }
  0x48   :  { %549 = vmatpush.bf16.msrb.mxu0 %v1114_v56  ;;  %v1031_v56 = vld [vmem:[#allocation9 + $0x38] sm:$0xf0] }
  0x49   :  { %510 = vmatpush.bf16.msra.mxu1 %v1054_v22  ;;  %v1034_v59 = vor.u32 %v1273_v55, %v1031_v56  ;;  %v1302_v55 = vld [vmem:[#allocation12 + $0x10] sm:$0xff] }
  0x4a   :  { %v1326_v56 = vld [vmem:[#allocation12 + $0xd0] sm:$0xff] }
  0x4c   :  { %550 = vmatpush.bf16.msrb.mxu0 %v1098_v4  ;;  %v1269_v4 = vld [vmem:[#allocation9 + $0xc] sm:$0xf] }
  0x4d   :  { %511 = vmatpush.bf16.msra.mxu1 %v1038_v37  ;;  %v1018_v8 = vor.u32 %v1269_v4, %v1015_v6  ;;  %v1309_v4 = vld [vmem:[#allocation12 + $0x48] sm:$0xff] }
  0x51   :  { %512 = vmatpush.bf16.msra.mxu1 %v1022_v49  ;;  %v1313_v49 = vld [vmem:[#allocation12 + $0x68] sm:$0xff] }
  0x55   :  { %513 = vmatpush.bf16.msra.mxu1 %v1006_v0  ;;  %v1300_v0 = vld [vmem:[#allocation12] sm:$0xff] }
  0x59   :  { %898 = vmatpush.bf16.msrb.mxu1 %v1307_v39 }
  0xc0   :  { %v237_v11 = vpop.f32.mrf.mxu0 }
  0xc1   :  { %v238_v12 = vadd.f32 %v1345_v9, %v237_v11  ;;  %v1287_v11 = vld [vmem:[#allocation9 + $0x94] sm:$0xf0] }
  0xc3   :  { %v1671_v13 = vadd.f32 %v238_v12, %v150_v10  ;;  %v1077_v10 = vld [vmem:[#allocation9 + $0x88] sm:$0xf] }
  0xc5   :  { %246 = vadd.xlane.f32.xlu0 %v1671_v13 }
  0xc8   :  { %v239_v15 = vpop.f32.mrf.mxu0 }
  0xc9   :  { %v240_v16 = vadd.f32 %v1345_v9, %v239_v15  ;;  %v1071_v9 = vld [vmem:[#allocation9 + $0x90] sm:$0xf0]  ;;  %v1285_v15 = vld [vmem:[#allocation9 + $0x8c] sm:$0xf] }
  0xca   :  { %v1074_v12 = vor.u32 %v1284_v7, %v1071_v9 }
  0xcb   :  { %v1677_v17 = vadd.f32 %v240_v16, %v151_v14  ;;  %v1078_v14 = vor.u32 %v1287_v11, %v1077_v10  ;;  %v1079_v16 = vld [vmem:[#allocation9 + $0x98] sm:$0xf0] }
  0xcc   :  { %v1082_v18 = vor.u32 %v1285_v15, %v1079_v16  ;;  %523 = vmatpush.bf16.msra.mxu2 %v1074_v12 }
  0xcd   :  { %248 = vadd.xlane.f32.xlu0 %v1677_v17  ;;  %537 = vmatpush.bf16.msra.mxu3 %v1078_v14 }
  0xce   :  { %551 = vmatpush.bf16.msrb.mxu0 %v1082_v18 }
 0x138   :  { %v247_v25 = vpop.xlane.xlu0 %246 }
 0x139   :  { %v257_v26 = vmul.f32 %v1680_v24, %v247_v25  ;;  %v1061_v25 = vld [vmem:[#allocation9 + $0x68] sm:$0xf] }
 0x13b   :  { %v1684_v27 = vsub.f32 %v1671_v13, %v257_v26  ;;  %v1283_v26 = vld [vmem:[#allocation9 + $0x74] sm:$0xf0] }
 0x13d   :  { %v261_v28 = vmul.f32 %v1684_v27, %v1684_v27 }
 0x13f   :  { %263 = vadd.xlane.f32.xlu1 %v261_v28  ;;  %v1058_v28 = vor.u32 %v1280_v21, %v1055_v23 }
 0x140   :  { %v249_v29 = vpop.xlane.xlu0 %248 }
 0x141   :  { %v258_v30 = vmul.f32 %v1680_v24, %v249_v29  ;;  %v1062_v29 = vor.u32 %v1283_v26, %v1061_v25  ;;  %524 = vmatpush.bf16.msra.mxu2 %v1058_v28  ;;  %v1346_v28 = vld [vmem:[#allocation6] ss:$0 sm:$0xff] }
 0x143   :  { %v1690_v31 = vsub.f32 %v1677_v17, %v258_v30  ;;  %v1281_v30 = vld [vmem:[#allocation9 + $0x6c] sm:$0xf]  ;;  %538 = vmatpush.bf16.msra.mxu3 %v1062_v29 }
 0x145   :  { %v262_v32 = vmul.f32 %v1690_v31, %v1690_v31  ;;  %525 = vmatpush.bf16.msra.mxu2 %v1042_v41  ;;  %v1330_v41 = vld [vmem:[#allocation12 + $0xf0] sm:$0xff] }
 0x147   :  { %265 = vadd.xlane.f32.xlu1 %v262_v32  ;;  %v1063_v32 = vld [vmem:[#allocation9 + $0x78] sm:$0xf0]  ;;  %539 = vmatpush.bf16.msra.mxu3 %v1046_v42 }
 0x148   :  { %v1066_v33 = vor.u32 %v1281_v30, %v1063_v32  ;;  %v1315_v42 = vld [vmem:[#allocation12 + $0x78] sm:$0xff] }
 0x149   :  { %526 = vmatpush.bf16.msra.mxu2 %v1026_v53  ;;  %v1312_v53 = vld [vmem:[#allocation12 + $0x60] sm:$0xff] }
 0x14a   :  { %552 = vmatpush.bf16.msrb.mxu0 %v1066_v33 }
 0x14b   :  { %540 = vmatpush.bf16.msra.mxu3 %v1030_v54  ;;  %v1320_v54 = vld [vmem:[#allocation12 + $0xa0] sm:$0xff] }
 0x14d   :  { %527 = vmatpush.bf16.msra.mxu2 %v1010_v1  ;;  %v1324_v1 = vld [vmem:[#allocation12 + $0xc0] sm:$0xff] }
 0x14e   :  { %553 = vmatpush.bf16.msrb.mxu0 %v1050_v45  ;;  %v1314_v45 = vld [vmem:[#allocation12 + $0x70] sm:$0xff] }
 0x14f   :  { %541 = vmatpush.bf16.msra.mxu3 %v1014_v5  ;;  %v1317_v5 = vld [vmem:[#allocation12 + $0x88] sm:$0xff] }
 0x151   :  { %912 = vmatpush.bf16.msrb.mxu2 %v1315_v42 }
 0x152   :  { %554 = vmatpush.bf16.msrb.mxu0 %v1034_v59  ;;  %v1301_v59 = vld [vmem:[#allocation12 + $0x8] sm:$0xff] }
 0x155   :  { %913 = vmatpush.bf16.msrb.mxu2 %v1314_v45 }
 0x156   :  { %555 = vmatpush.bf16.msrb.mxu0 %v1018_v8 }
 0x159   :  { %914 = vmatpush.bf16.msrb.mxu2 %v1313_v49 }
 0x15a   :  { %940 = vmatpush.bf16.msra.mxu0 %v1331_v40 }
 0x15d   :  { %915 = vmatpush.bf16.msrb.mxu2 %v1312_v53 }
 0x15e   :  { %941 = vmatpush.bf16.msra.mxu0 %v1330_v41 }
 0x161   :  { %916 = vmatpush.bf16.msrb.mxu2 %v1311_v57 }
 0x162   :  { %942 = vmatpush.bf16.msra.mxu0 %v1329_v44 }
 0x165   :  { %917 = vmatpush.bf16.msrb.mxu2 %v1310_v62 }
 0x166   :  { %943 = vmatpush.bf16.msra.mxu0 %v1328_v48 }
 0x169   :  { %918 = vmatpush.bf16.msrb.mxu2 %v1309_v4 }
 0x16a   :  { %944 = vmatpush.bf16.msra.mxu0 %v1327_v52 }
 0x16e   :  { %945 = vmatpush.bf16.msra.mxu0 %v1326_v56 }
 0x172   :  { %946 = vmatpush.bf16.msra.mxu0 %v1325_v60 }
 0x176   :  { %947 = vmatpush.bf16.msra.mxu0 %v1324_v1 }
 0x1b2   :  { %v264_v58 = vpop.xlane.xlu1 %263 }
 0x1b3   :  { %v267_v63 = vmul.f32 %v264_v58, %v1680_v24  ;;  %v1319_v58 = vld [vmem:[#allocation12 + $0x98] sm:$0xff] }
 0x1b5   :  { %v269_v7 = vadd.f32 1e-05, %v267_v63  ;;  %v1318_v63 = vld [vmem:[#allocation12 + $0x90] sm:$0xff] }
 0x1b7   :  { %1351 = vrsqrt.f32 %v269_v7  ;;  %vm277_vm2 = vweird.f32 %v269_v7 }
 0x1ba   :  { %v266_v9 = vpop.xlane.xlu1 %265 }
 0x1bb   :  { %v268_v10 = vmul.f32 %v266_v9, %v1680_v24 }
 0x1bd   :  { %v1352_v11 = vpop.eup %1351  ;;  %v270_v12 = vadd.f32 1e-05, %v268_v10 }
 0x1be   :  { %v272_v14 = vmul.f32 %v1352_v11, %v269_v7  ;;  %vm278_vm1 = vweird.f32 %v1352_v11 }
 0x1bf   :  { %1353 = vrsqrt.f32 %v270_v12  ;;  %vm279_vm3 = vmor %vm277_vm2, %vm278_vm1  ;;  %vm287_vm5 = vweird.f32 %v270_v12 }
 0x1c0   :  { %v273_v15 = vmul.f32 %v1352_v11, %v272_v14  ;;  %v1316_v14 = vld [vmem:[#allocation12 + $0x80] sm:$0xff] }
 0x1c2   :  { %v274_v16 = vmul.f32 0.5, %v273_v15 }
 0x1c4   :  { %v275_v18 = vsub.f32 1.5, %v274_v16  ;;  %v340_v16 = vperm.slane %v1698_v61, 2 }
 0x1c5   :  { %v1354_v19 = vpop.eup %1353 }
 0x1c6   :  { %v276_v20 = vmul.f32 %v1352_v11, %v275_v18  ;;  %v282_v21 = vmul.f32 %v1354_v19, %v270_v12  ;;  %vm288_vm4 = vweird.f32 %v1354_v19  ;;  %v1308_v12 = vld [vmem:[#allocation12 + $0x40] sm:$0xff] }
 0x1c7   :  { %vm289_vm6 = vmor %vm287_vm5, %vm288_vm4  ;;  %919 = vmatpush.bf16.msrb.mxu2 %v1308_v12 }
 0x1c8   :  { %v283_v22 = vmul.f32 %v1354_v19, %v282_v21  ;;  %v280_v23 = vsel %vm279_vm3, %v1352_v11, %v276_v20  ;;  %v339_v11 = vperm.slane %v1698_v61, 1 }
 0x1c9   :  { %v291_v24 = vmul.f32 %v280_v23, %v1684_v27  ;;  %v1306_v27 = vld [vmem:[#allocation12 + $0x30] sm:$0xff] }
 0x1ca   :  { %v284_v25 = vmul.f32 0.5, %v283_v22  ;;  %899 = vmatpush.bf16.msrb.mxu1 %v1306_v27 }
 0x1cb   :  { %v296_v33 = vmul.f32 %v1346_v28, %v291_v24 }
 0x1cc   :  { %v285_v26 = vsub.f32 1.5, %v284_v25 }
 0x1cd   :  { %v301_v36 = vadd.f32 %v1347_v34, %v296_v33 }
 0x1ce   :  { %v286_v29 = vmul.f32 %v1354_v19, %v285_v26  ;;  %900 = vmatpush.bf16.msrb.mxu1 %v1305_v43 }
 0x1d0   :  { %v290_v30 = vsel %vm289_vm6, %v1354_v19, %v286_v29 }
 0x1d1   :  { %v292_v32 = vmul.f32 %v290_v30, %v1690_v31  ;;  %v1323_v31 = vld [vmem:[#allocation12 + $0xb8] sm:$0xff] }
 0x1d2   :  { %926 = vmatpush.bf16.msrb.mxu3 %v1323_v31  ;;  %901 = vmatpush.bf16.msrb.mxu1 %v1304_v47 }
 0x1d3   :  { %v297_v35 = vmul.f32 %v1346_v28, %v292_v32 }
 0x1d5   :  { %v302_v37 = vadd.f32 %v1347_v34, %v297_v35 }
 0x1d6   :  { %927 = vmatpush.bf16.msrb.mxu3 %v1322_v46  ;;  %902 = vmatpush.bf16.msrb.mxu1 %v1303_v51 }
 0x1d7   :  { %v303_v38 = vpack.c.bf16 %v302_v37, %v301_v36 }
 0x1d9   :  { %514 = vmatmul.bf16.vlgmr.msra.gmra.mxu1 %v303_v38  ;;  %528 = vmatmul.bf16.vlgmr.msra.gmra.mxu2 %v303_v38 }
 0x1da   :  { %542 = vmatmul.bf16.vlgmr.msra.gmra.mxu3 %v303_v38  ;;  %556 = vmatmul.bf16.vlgmr.msrb.gmra.mxu0 %v303_v38 }
 0x1db   :  { %928 = vmatpush.bf16.msrb.mxu3 %v1321_v50  ;;  %903 = vmatpush.bf16.msrb.mxu1 %v1302_v55 }
 0x1df   :  { %929 = vmatpush.bf16.msrb.mxu3 %v1320_v54  ;;  %904 = vmatpush.bf16.msrb.mxu1 %v1301_v59 }
 0x1e3   :  { %930 = vmatpush.bf16.msrb.mxu3 %v1319_v58  ;;  %905 = vmatpush.bf16.msrb.mxu1 %v1300_v0 }
 0x1e7   :  { %931 = vmatpush.bf16.msrb.mxu3 %v1318_v63 }
 0x1eb   :  { %932 = vmatpush.bf16.msrb.mxu3 %v1317_v5 }
 0x1ef   :  { %933 = vmatpush.bf16.msrb.mxu3 %v1316_v14 }
 0x256   :  { %v515_v6 = vpop.f32.mrf.mxu1 }
 0x257   :  { %v1702_v7 = vadd.f32 %v515_v6, %v338_v2  ;;  %v557_v8 = vpop.f32.mrf.mxu0 }
 0x258   :  { %v1704_v9 = vadd.f32 %v557_v8, %v341_v3 }
 0x259   :  { %v570_v10 = vmul.f32 0.044715, %v1702_v7  ;;  %v562_v12 = vmul.f32 0.5, %v1702_v7 }
 0x25a   :  { %v573_v15 = vmul.f32 0.044715, %v1704_v9 }
 0x25b   :  { %v578_v18 = vmul.f32 %v570_v10, %v1702_v7 }
 0x25c   :  { %v581_v19 = vmul.f32 %v573_v15, %v1704_v9  ;;  %v529_v20 = vpop.f32.mrf.mxu2 }
 0x25d   :  { %v1712_v21 = vadd.f32 %v529_v20, %v339_v11  ;;  %v543_v22 = vpop.f32.mrf.mxu3  ;;  %v586_v23 = vmul.f32 %v578_v18, %v1702_v7  ;;  %v565_v18 = vmul.f32 0.5, %v1704_v9 }
 0x25e   :  { %v589_v25 = vmul.f32 %v581_v19, %v1704_v9  ;;  %v1716_v26 = vadd.f32 %v543_v22, %v340_v16  ;;  %v517_v24 = vpop.f32.mrf.mxu1 }
 0x25f   :  { %v571_v28 = vmul.f32 0.044715, %v1712_v21  ;;  %v518_v29 = vadd.f32 %v517_v24, %v338_v2  ;;  %v559_v30 = vpop.f32.mrf.mxu0  ;;  %v594_v32 = vadd.f32 %v586_v23, %v1702_v7  ;;  %v563_v7 = vmul.f32 0.5, %v1712_v21 }
 0x260   :  { %v597_v33 = vadd.f32 %v589_v25, %v1704_v9  ;;  %v572_v34 = vmul.f32 0.044715, %v1716_v26  ;;  %v560_v35 = vadd.f32 %v559_v30, %v341_v3  ;;  %v564_v9 = vmul.f32 0.5, %v1716_v26 }
 0x261   :  { %v579_v36 = vmul.f32 %v571_v28, %v1712_v21  ;;  %v574_v37 = vmul.f32 0.044715, %v518_v29  ;;  %v602_v27 = vmul.f32 0.7978846, %v594_v32  ;;  %v566_v14 = vmul.f32 0.5, %v518_v29 }
 0x262   :  { %v580_v38 = vmul.f32 %v572_v34, %v1716_v26  ;;  %v577_v39 = vmul.f32 0.044715, %v560_v35  ;;  %v605_v42 = vmul.f32 0.7978846, %v597_v33  ;;  %v569_v19 = vmul.f32 0.5, %v560_v35 }
 0x263   :  { %v582_v40 = vmul.f32 %v574_v37, %v518_v29  ;;  %v587_v41 = vmul.f32 %v579_v36, %v1712_v21  ;;  %1355 = vtanh.f32 %v602_v27 }
 0x264   :  { %v585_v31 = vmul.f32 %v577_v39, %v560_v35  ;;  %v531_v43 = vpop.f32.mrf.mxu2  ;;  %v588_v44 = vmul.f32 %v580_v38, %v1716_v26  ;;  %1357 = vtanh.f32 %v605_v42 }
 0x265   :  { %v532_v45 = vadd.f32 %v531_v43, %v339_v11  ;;  %v545_v46 = vpop.f32.mrf.mxu3  ;;  %v590_v47 = vmul.f32 %v582_v40, %v518_v29  ;;  %v595_v48 = vadd.f32 %v587_v41, %v1712_v21 }
 0x266   :  { %v593_v49 = vmul.f32 %v585_v31, %v560_v35  ;;  %v546_v50 = vadd.f32 %v545_v46, %v340_v16  ;;  %v596_v51 = vadd.f32 %v588_v44, %v1716_v26  ;;  %v1348_v46 = vld [vmem:[#allocation13] ss:$0 sm:$0xff] }
 0x267   :  { %v575_v52 = vmul.f32 0.044715, %v532_v45  ;;  %v598_v53 = vadd.f32 %v590_v47, %v518_v29  ;;  %v603_v58 = vmul.f32 0.7978846, %v595_v48  ;;  %v567_v29 = vmul.f32 0.5, %v532_v45 }
 0x268   :  { %v601_v54 = vadd.f32 %v593_v49, %v560_v35  ;;  %v576_v55 = vmul.f32 0.044715, %v546_v50  ;;  %v604_v61 = vmul.f32 0.7978846, %v596_v51  ;;  %v568_v35 = vmul.f32 0.5, %v546_v50 }
 0x269   :  { %v583_v56 = vmul.f32 %v575_v52, %v532_v45  ;;  %v606_v57 = vmul.f32 0.7978846, %v598_v53  ;;  %v1356_v0 = vpop.eup %1355 }
 0x26a   :  { %v609_v59 = vmul.f32 0.7978846, %v601_v54  ;;  %v584_v60 = vmul.f32 %v576_v55, %v546_v50  ;;  %v1358_v2 = vpop.eup %1357  ;;  %v618_v5 = vadd.f32 1.0, %v1356_v0 }
 0x26b   :  { %1359 = vtanh.f32 %v606_v57  ;;  %v591_v62 = vmul.f32 %v583_v56, %v532_v45  ;;  %v621_v10 = vadd.f32 1.0, %v1358_v2 }
 0x26c   :  { %1361 = vtanh.f32 %v609_v59  ;;  %v592_v63 = vmul.f32 %v584_v60, %v546_v50  ;;  %v626_v23 = vmul.f32 %v618_v5, %v562_v12 }
 0x26d   :  { %v599_v1 = vadd.f32 %v591_v62, %v532_v45  ;;  %1363 = vtanh.f32 %v603_v58  ;;  %v629_v24 = vmul.f32 %v621_v10, %v565_v18 }
 0x26e   :  { %v600_v3 = vadd.f32 %v592_v63, %v546_v50  ;;  %1365 = vtanh.f32 %v604_v61 }
 0x26f   :  { %v607_v4 = vmul.f32 0.7978846, %v599_v1 }
 0x270   :  { %v608_v6 = vmul.f32 0.7978846, %v600_v3 }
 0x271   :  { %v1360_v8 = vpop.eup %1359  ;;  %1367 = vtanh.f32 %v607_v4 }
 0x272   :  { %v1362_v11 = vpop.eup %1361  ;;  %v622_v15 = vadd.f32 1.0, %v1360_v8  ;;  %1369 = vtanh.f32 %v608_v6 }
 0x273   :  { %v1364_v16 = vpop.eup %1363  ;;  %v625_v20 = vadd.f32 1.0, %v1362_v11 }
 0x274   :  { %v1366_v22 = vpop.eup %1365  ;;  %v630_v25 = vmul.f32 %v622_v15, %v566_v14  ;;  %v619_v32 = vadd.f32 1.0, %v1364_v16 }
 0x275   :  { %v633_v28 = vmul.f32 %v625_v20, %v569_v19  ;;  %v620_v36 = vadd.f32 1.0, %v1366_v22 }
 0x276   :  { %v634_v30 = vpack.c.bf16 %v630_v25, %v626_v23  ;;  %v627_v40 = vmul.f32 %v619_v32, %v563_v7 }
 0x277   :  { %v1368_v33 = vpop.eup %1367  ;;  %v637_v34 = vpack.c.bf16 %v633_v28, %v629_v24  ;;  %v628_v41 = vmul.f32 %v620_v36, %v564_v9 }
 0x278   :  { %v1370_v37 = vpop.eup %1369  ;;  %906 = vmatmul.bf16.vlgmr.msrb.gmra.mxu1 %v634_v30  ;;  %v623_v38 = vadd.f32 1.0, %v1368_v33 }
 0x279   :  { %948 = vmatmul.bf16.vlgmr.msra.gmra.mxu0 %v637_v34  ;;  %v624_v39 = vadd.f32 1.0, %v1370_v37 }
 0x27a   :  { %v631_v27 = vmul.f32 %v623_v38, %v567_v29 }
 0x27b   :  { %v632_v42 = vmul.f32 %v624_v39, %v568_v35 }
 0x27c   :  { %v635_v31 = vpack.c.bf16 %v631_v27, %v627_v40 }
 0x27d   :  { %v636_v43 = vpack.c.bf16 %v632_v42, %v628_v41 }
 0x27e   :  { %920 = vmatmul.bf16.vlgmr.msrb.gmra.mxu2 %v635_v31 }
 0x27f   :  { %934 = vmatmul.bf16.vlgmr.msrb.gmra.mxu3 %v636_v43 }
 0x2f5   :  { %v907_v44 = vpop.f32.mrf.mxu1 }
 0x2f6   :  { %v908_v47 = vadd.f32 %v1348_v46, %v907_v44  ;;  %v949_v49 = vpop.f32.mrf.mxu0 }
 0x2fd   :  { %v909_v52 = vpop.f32.mrf.mxu1 }
 0x2fe   :  { %v910_v50 = vadd.f32 %v1348_v46, %v909_v52  ;;  %v951_v58 = vpop.f32.mrf.mxu0 }
 0x301   :  { %v921_v48 = vpop.f32.mrf.mxu2 }
 0x302   :  { %v922_v21 = vadd.f32 %v921_v48, %v908_v47  ;;  %v935_v45 = vpop.f32.mrf.mxu3 }
 0x304   :  { %v936_v51 = vadd.f32 %v935_v45, %v922_v21 }
 0x306   :  { %v950_v26 = vadd.f32 %v949_v49, %v936_v51 }
 0x308   :  { %v954_v53 = vadd.f32 %v950_v26, %v1671_v13 }
 0x309   :  { %v923_v54 = vpop.f32.mrf.mxu2 }
 0x30a   :  { %956 = vst [vmem:[%s1750_s10] sm:$0xff] %v954_v53  ;;  %v924_v55 = vadd.f32 %v923_v54, %v910_v50  ;;  %v937_v56 = vpop.f32.mrf.mxu3 }
 0x30c   :  { %v938_v57 = vadd.f32 %v937_v56, %v924_v55 }
 0x30e   :  { %v952_v59 = vadd.f32 %v951_v58, %v938_v57 }
 0x310   :  { %v955_v60 = vadd.f32 %v952_v59, %v1677_v17 }
 0x312   :  { %957 = vst [vmem:[%s1750_s10 + $0x8] sm:$0xff] %v955_v60 }
 0x313   :  { %962 = vsyncpa [#allocation3], 1 }
 0x314   :  { %963 = vsyncpa [#allocation5], 1 }
 0x315   :  { %964 = vsyncpa [#allocation8], 1 }
 0x316   :  { %965 = vsyncpa [#allocation11], 1 }
 0x317   :  { %966 = vsyncpa [#allocation14], 1 }

</bundles_post_ra>
